<compile_context>
chip_gen: v6e
topology: v6e:2x2x1
jax: 0.10.0
libtpu: 0.0.40
codegen_flags: <defaults>
</compile_context>

<pallas_src>
import jax
import jax.numpy as jnp
from jax.experimental import pallas as pl
from jax.experimental.pallas import tpu as pltpu

LANES = 128  # all channel axes are zero-padded to this many lanes


# ----------------------- encoder + LayerNorm + input 1x1 conv -----------------

def _make_encoder_kernel(n_real):
    inv_n = 1.0 / n_real

    def kernel(fr_ref, encw_ref, lng_ref, lnb_ref, inw_ref, inb_ref,
               emb_ref, x0_ref):
        f = fr_ref[0].astype(jnp.bfloat16)                       # (T, W)
        emb = jnp.maximum(
            jnp.dot(f, encw_ref[...], preferred_element_type=jnp.float32), 0.0)
        emb_ref[0] = emb                                         # (T, P), padded lanes 0

        # LayerNorm over the real N channels (padded lanes are zero -> sums ok)
        mu = jnp.sum(emb, axis=-1, keepdims=True) * inv_n
        msq = jnp.sum(emb * emb, axis=-1, keepdims=True) * inv_n
        var = jnp.maximum(msq - mu * mu, 0.0)
        xn = (emb - mu) * jax.lax.rsqrt(var + 1e-5)
        xn = xn * lng_ref[...] + lnb_ref[...]                    # zero-padded gamma/beta

        x0_ref[0] = (jnp.dot(xn.astype(jnp.bfloat16), inw_ref[...],
                             preferred_element_type=jnp.float32)
                     + inb_ref[...])                             # input 1x1 conv

    return kernel


def encoder_frontend(frames, params, cfg):
    B, T, Wf = frames.shape
    P = LANES
    kernel = _make_encoder_kernel(cfg['latent_channel_size'])
    emb, x0 = pl.pallas_call(
        kernel,
        grid=(B,),
        in_specs=[pl.BlockSpec((1, T, Wf), lambda b: (b, 0, 0)),
                  pl.BlockSpec((Wf, P), lambda b: (0, 0)),
                  pl.BlockSpec((1, P), lambda b: (0, 0)),
                  pl.BlockSpec((1, P), lambda b: (0, 0)),
                  pl.BlockSpec((P, P), lambda b: (0, 0)),
                  pl.BlockSpec((1, P), lambda b: (0, 0))],
        out_specs=(pl.BlockSpec((1, T, P), lambda b: (b, 0, 0)),
                   pl.BlockSpec((1, T, P), lambda b: (b, 0, 0))),
        out_shape=(jax.ShapeDtypeStruct((B, T, P), jnp.float32),
                   jax.ShapeDtypeStruct((B, T, P), jnp.float32)),
        compiler_params=pltpu.CompilerParams(dimension_semantics=("parallel",)),
    )(frames, params['enc_w'], params['ln_g'], params['ln_b'],
      params['in_w'], params['in_b'])
    return emb, x0


# ----------------------- fused TCN: all separation blocks ---------------------

def _make_tcn_kernel(T, Cb, n_blocks, n_total):
    inv_cnt = 1.0 / (T * Cb)

    def kernel(x0_ref, w1_ref, wd_ref, wsk_ref, wout_ref, vec_ref, skip_ref):
        # Static 0/1 shift matrices (one pair per unique dilation).  prev = S_p @ h
        # gives h[t-d] (zero out of range), nxt = S_n @ h gives h[t+d].  Tiny
        # (T,T) MXU matmuls replace halo scratch + unaligned sublane shifts.
        row = jax.lax.broadcasted_iota(jnp.int32, (T, T), 0)
        col = jax.lax.broadcasted_iota(jnp.int32, (T, T), 1)
        shift = {}
        for d in sorted({2 ** (i % n_blocks) for i in range(n_total)}):
            shift[d] = ((col == row - d).astype(jnp.float32),
                        (col == row + d).astype(jnp.float32))

        x = x0_ref[0]                                            # (T, P) residual stream
        skip = jnp.zeros_like(x)

        for j in range(n_total):                                 # fully unrolled
            d = 2 ** (j % n_blocks)                              # static dilation
            vec = vec_ref[j]                                     # (10, P) packed params
            b1, g1, be1 = vec[0:1], vec[1:2], vec[2:3]
            bd, g2, be2 = vec[3:4], vec[4:5], vec[5:6]
            bsk, bout = vec[6:7], vec[7:8]
            a1, a2 = vec[8:9], vec[9:10]                         # PReLU alphas (bcast)

            # 1x1 embed conv + PReLU + gLN (GroupNorm(1, Cb), eps=1e-10)
            h = jnp.dot(x.astype(jnp.bfloat16), w1_ref[j],
                        preferred_element_type=jnp.float32) + b1
            h = jnp.where(h >= 0, h, a1 * h)
            m = jnp.sum(h) * inv_cnt
            msq = jnp.sum(h * h) * inv_cnt
            var = jnp.maximum(msq - m * m, 0.0)
            h = (h - m) * jax.lax.rsqrt(var + 1e-10) * g1 + be1

            # depthwise dilated conv (K=3, padding=d): w0*h[t-d]+w1*h[t]+w2*h[t+d]
            sp_mat, sn_mat = shift[d]
            wd = wd_ref[j]                                       # (3, P) f32
            h_prev = jnp.dot(sp_mat, h, preferred_element_type=jnp.float32)
            h_next = jnp.dot(sn_mat, h, preferred_element_type=jnp.float32)
            h2 = h_prev * wd[0:1] + h * wd[1:2] + h_next * wd[2:3] + bd

            # PReLU + gLN
            h2 = jnp.where(h2 >= 0, h2, a2 * h2)
            m2 = jnp.sum(h2) * inv_cnt
            msq2 = jnp.sum(h2 * h2) * inv_cnt
            var2 = jnp.maximum(msq2 - m2 * m2, 0.0)
            h2 = (h2 - m2) * jax.lax.rsqrt(var2 + 1e-10) * g2 + be2

            # skip / output heads; residual + skip accumulation stay in values
            h2b = h2.astype(jnp.bfloat16)
            skip = skip + jnp.dot(h2b, wsk_ref[j],
                                  preferred_element_type=jnp.float32) + bsk
            x = x + jnp.dot(h2b, wout_ref[j],
                            preferred_element_type=jnp.float32) + bout

        skip_ref[0] = skip

    return kernel


def tcn_fused(x0, params, cfg):
    B, T, P = x0.shape
    Cb = cfg['block_channel_size']
    K = cfg['kernel_size']
    n_blocks = cfg['n_blocks']
    n_total = cfg['n_repeats'] * n_blocks
    kernel = _make_tcn_kernel(T, Cb, n_blocks, n_total)
    return pl.pallas_call(
        kernel,
        grid=(B,),
        in_specs=[pl.BlockSpec((1, T, P), lambda b: (b, 0, 0)),
                  pl.BlockSpec((n_total, P, P), lambda b: (0, 0, 0)),
                  pl.BlockSpec((n_total, K, P), lambda b: (0, 0, 0)),
                  pl.BlockSpec((n_total, P, P), lambda b: (0, 0, 0)),
                  pl.BlockSpec((n_total, P, P), lambda b: (0, 0, 0)),
                  pl.BlockSpec((n_total, 10, P), lambda b: (0, 0, 0))],
        out_specs=pl.BlockSpec((1, T, P), lambda b: (b, 0, 0)),
        out_shape=jax.ShapeDtypeStruct((B, T, P), jnp.float32),
        compiler_params=pltpu.CompilerParams(dimension_semantics=("parallel",)),
    )(x0, params['w1_all'], params['wd_all'], params['wsk_all'],
      params['wout_all'], params['vec_all'])


# ----------------------- mask head + decoder + overlap-add --------------------

def _make_mask_kernel(T, S, hop):
    P = LANES

    def kernel(skip_ref, emb_ref, alpha_ref, ow_ref, ob_ref, dwa_ref, dwb_ref,
               out_ref):
        s = skip_ref[0]                                          # (T, P)
        s = jnp.where(s >= 0, s, alpha_ref[...] * s)             # PReLU
        masks = jax.nn.sigmoid(
            jnp.dot(s.astype(jnp.bfloat16), ow_ref[...],
                    preferred_element_type=jnp.float32) + ob_ref[...])  # (T, S*P)
        e = emb_ref[0]                                           # (T, P), padded lanes 0

        # static overlap-add placement matrices (frame halves -> rows t / t+1)
        r = jax.lax.broadcasted_iota(jnp.int32, (T + 1, T), 0)
        c = jax.lax.broadcasted_iota(jnp.int32, (T + 1, T), 1)
        pa = (r == c).astype(jnp.float32)
        pb = (r == c + 1).astype(jnp.float32)

        for sp in range(S):
            me = (e * masks[:, sp * P:(sp + 1) * P]).astype(jnp.bfloat16)
            fa = jnp.dot(me, dwa_ref[...], preferred_element_type=jnp.float32)
            fb = jnp.dot(me, dwb_ref[...], preferred_element_type=jnp.float32)
            out_ref[0, sp] = (jnp.dot(pa, fa, preferred_element_type=jnp.float32)
                              + jnp.dot(pb, fb, preferred_element_type=jnp.float32))

    return kernel


def mask_decode(skip, emb, params, cfg):
    B, T, P = skip.shape
    S = cfg['num_speakers']
    hop = cfg['input_window_size'] // 2
    kernel = _make_mask_kernel(T, S, hop)
    return pl.pallas_call(
        kernel,
        grid=(B,),
        in_specs=[pl.BlockSpec((1, T, P), lambda b: (b, 0, 0)),
                  pl.BlockSpec((1, T, P), lambda b: (b, 0, 0)),
                  pl.BlockSpec((1, P), lambda b: (0, 0)),
                  pl.BlockSpec((P, S * P), lambda b: (0, 0)),
                  pl.BlockSpec((1, S * P), lambda b: (0, 0)),
                  pl.BlockSpec((P, hop), lambda b: (0, 0)),
                  pl.BlockSpec((P, hop), lambda b: (0, 0))],
        out_specs=pl.BlockSpec((1, S, T + 1, hop), lambda b: (b, 0, 0, 0)),
        out_shape=jax.ShapeDtypeStruct((B, S, T + 1, hop), jnp.float32),
        compiler_params=pltpu.CompilerParams(dimension_semantics=("parallel",)),
    )(skip, emb, params['out_alpha'], params['ow_all'], params['ob_all'],
      params['dec_wa'], params['dec_wb'])


# ----------------------------- parameters -------------------------------------

def init_params(key, cfg):
    P = LANES
    Wwin = cfg['input_window_size']
    N = cfg['latent_channel_size']
    Ce = cfg['embed_channel_size']
    Cb = cfg['block_channel_size']
    Cs = cfg['skip_connection_channel_size']
    K = cfg['kernel_size']
    S = cfg['num_speakers']
    n_blocks = cfg['n_blocks']
    n_total = cfg['n_repeats'] * n_blocks
    hop = Wwin // 2
    keys = jax.random.split(key, 8 + n_total)

    def nrm(k, shape, scale=0.1):
        return jax.random.normal(k, shape, jnp.float32) * scale

    def pad2(a, rows, cols):
        return jnp.pad(a, ((0, rows - a.shape[0]), (0, cols - a.shape[1])))

    def padrow(v):
        return jnp.pad(v, (0, P - v.shape[0]))

    enc_w = pad2(nrm(keys[0], (Wwin, N)), Wwin, P).astype(jnp.bfloat16)
    ln_g = padrow(jnp.ones((N,), jnp.float32)).reshape(1, P)
    ln_b = jnp.zeros((1, P), jnp.float32)
    in_w = pad2(nrm(keys[1], (N, Ce)), P, P).astype(jnp.bfloat16)
    in_b = padrow(nrm(keys[2], (Ce,), 0.01)).reshape(1, P)
    out_alpha = jnp.full((1, P), 0.25, jnp.float32)

    # mask head: per-speaker (Cs, N) blocks stacked along lanes -> (P, S*P)
    ow = jnp.zeros((P, S * P), jnp.float32)
    ob = jnp.zeros((1, S * P), jnp.float32)
    for s in range(S):
        ks = jax.random.fold_in(keys[3], s)
        kb = jax.random.fold_in(keys[4], s)
        ow = ow.at[:Cs, s * P:s * P + N].set(nrm(ks, (Cs, N)))
        ob = ob.at[0, s * P:s * P + N].set(nrm(kb, (N,), 0.01))

    dec = nrm(keys[5], (N, Wwin))                  # ConvTranspose1d(N,1,W) weight
    dec_wa = pad2(dec[:, :hop], P, hop).astype(jnp.bfloat16)
    dec_wb = pad2(dec[:, hop:], P, hop).astype(jnp.bfloat16)

    w1l, wdl, wskl, woutl, vecl = [], [], [], [], []
    for i in range(n_total):
        bk = jax.random.split(keys[8 + i], 8)
        w1l.append(pad2(nrm(bk[0], (Ce, Cb)), P, P))
        wdl.append(pad2(nrm(bk[2], (K, Cb)), K, P))
        wskl.append(pad2(nrm(bk[4], (Cb, Cs)), P, P))
        woutl.append(pad2(nrm(bk[6], (Cb, Ce)), P, P))
        vecl.append(jnp.stack([
            padrow(nrm(bk[1], (Cb,), 0.01)),           # 0: b1
            padrow(jnp.ones((Cb,), jnp.float32)),      # 1: g1 (0 on padded lanes)
            padrow(jnp.zeros((Cb,), jnp.float32)),     # 2: be1
            padrow(nrm(bk[3], (Cb,), 0.01)),           # 3: bd
            padrow(jnp.ones((Cb,), jnp.float32)),      # 4: g2
            padrow(jnp.zeros((Cb,), jnp.float32)),     # 5: be2
            padrow(nrm(bk[5], (Cs,), 0.01)),           # 6: bsk
            padrow(nrm(bk[7], (Ce,), 0.01)),           # 7: bout
            jnp.full((P,), 0.25, jnp.float32),         # 8: a1 (PReLU, scalar bcast)
            jnp.full((P,), 0.25, jnp.float32),         # 9: a2
        ]))

    return dict(
        enc_w=enc_w, ln_g=ln_g, ln_b=ln_b, in_w=in_w, in_b=in_b,
        out_alpha=out_alpha, ow_all=ow.astype(jnp.bfloat16), ob_all=ob,
        dec_wa=dec_wa, dec_wb=dec_wb,
        w1_all=jnp.stack(w1l).astype(jnp.bfloat16),
        wd_all=jnp.stack(wdl),
        wsk_all=jnp.stack(wskl).astype(jnp.bfloat16),
        wout_all=jnp.stack(woutl).astype(jnp.bfloat16),
        vec_all=jnp.stack(vecl),
    )


# ----------------------------- forward pass ------------------------------------

def conv_tasnet_forward(mix, params, cfg):
    Wwin = cfg['input_window_size']
    hop = Wwin // 2
    K = cfg['kernel_size']
    # The PyTorch module's residual add works only when the depthwise conv
    # preserves length (padding == dilation, kernel 3) and when Ce == Cs.
    assert K == 3, "Conv1dSeparationBlock residual path requires kernel_size == 3"
    assert cfg['embed_channel_size'] == cfg['skip_connection_channel_size']

    if mix.ndim == 1:
        mix = mix[None, :]
    B, L = mix.shape

    # pad_sequence semantics (residual pad at the end + hop padding both sides)
    residual = Wwin - (hop + L % Wwin) % Wwin
    padded = jnp.concatenate(
        [jnp.zeros((B, hop), mix.dtype), mix,
         jnp.zeros((B, residual), mix.dtype),
         jnp.zeros((B, hop), mix.dtype)], axis=-1)
    Lp = padded.shape[1]
    Tn = Lp // hop
    T = Tn - 1

    # framing (stride = hop, window = 2*hop): frame t = [aud[t], aud[t+1]]
    aud = padded.reshape(B, Tn, hop)
    frames = jnp.concatenate([aud[:, :T], aud[:, 1:]], axis=-1)    # (B, T, Wwin)

    emb, x0 = encoder_frontend(frames, params, cfg)                # (B, T, P) each
    skip = tcn_fused(x0, params, cfg)                              # (B, T, P)
    oa = mask_decode(skip, emb, params, cfg)                       # (B, S, T+1, hop)

    full = oa.reshape(B, cfg['num_speakers'], (T + 1) * hop)
    est = full[:, :, hop:(T + 1) * hop - (residual + hop)]         # un-pad
    return {'estimated': est}


if __name__ == "__main__":
    cfg = dict(input_window_size=16, latent_channel_size=16,
               embed_channel_size=16, block_channel_size=32,
               skip_connection_channel_size=16,
               n_blocks=3, n_repeats=2, kernel_size=3, num_speakers=2)

    key = jax.random.PRNGKey(0)
    pkey, mkey = jax.random.split(key)
    params = init_params(pkey, cfg)
    mix = jax.random.normal(mkey, (2, 160), jnp.float32)           # (B, L)

    fwd = jax.jit(lambda m, p: conv_tasnet_forward(m, p, cfg))
    out = fwd(mix, params)
    est = jax.block_until_ready(out['estimated'])
    assert est.shape == (2, cfg['num_speakers'], 160), est.shape
    assert bool(jnp.all(jnp.isfinite(est)))
    print("KERNEL_OK")
</pallas_src>

<mosaic_0001>
module attributes {stable_mosaic.version = 11 : i64} {
  func.func @kernel(%arg0: i32, %arg1: memref<1x22x16xf32, #tpu.memory_space<vmem>>, %arg2: memref<16x128xbf16, #tpu.memory_space<vmem>>, %arg3: memref<1x128xf32, #tpu.memory_space<vmem>>, %arg4: memref<1x128xf32, #tpu.memory_space<vmem>>, %arg5: memref<128x128xbf16, #tpu.memory_space<vmem>>, %arg6: memref<1x128xf32, #tpu.memory_space<vmem>>, %arg7: memref<1x22x128xf32, #tpu.memory_space<vmem>>, %arg8: memref<1x22x128xf32, #tpu.memory_space<vmem>>) attributes {dimension_semantics = [#tpu.dimension_semantics<parallel>], iteration_bounds = array<i64: 2>, scalar_prefetch = 0 : i64, scratch_operands = 0 : i64, tpu.core_type = #tpu.core_type<tc>, window_params = [{transform_indices = @transform_0, window_bounds = array<i64: 1, 22, 16>}, {pipeline_mode = #tpu.pipeline_mode<synchronous>, transform_indices = @transform_1, window_bounds = array<i64: 16, 128>}, {pipeline_mode = #tpu.pipeline_mode<synchronous>, transform_indices = @transform_2, window_bounds = array<i64: 1, 128>}, {pipeline_mode = #tpu.pipeline_mode<synchronous>, transform_indices = @transform_3, window_bounds = array<i64: 1, 128>}, {pipeline_mode = #tpu.pipeline_mode<synchronous>, transform_indices = @transform_4, window_bounds = array<i64: 128, 128>}, {pipeline_mode = #tpu.pipeline_mode<synchronous>, transform_indices = @transform_5, window_bounds = array<i64: 1, 128>}, {transform_indices = @transform_6, window_bounds = array<i64: 1, 22, 128>}, {transform_indices = @transform_7, window_bounds = array<i64: 1, 22, 128>}]} {
    %c0 = arith.constant 0 : index
    %c0_0 = arith.constant 0 : index
    %c0_1 = arith.constant 0 : index
    %0 = vector.load %arg1[%c0, %c0_0, %c0_1] : memref<1x22x16xf32, #tpu.memory_space<vmem>>, vector<1x22x16xf32>
    %1 = vector.shape_cast %0 : vector<1x22x16xf32> to vector<22x16xf32>
    %2 = arith.truncf %1 : vector<22x16xf32> to vector<22x16xbf16>
    %c0_2 = arith.constant 0 : index
    %c0_3 = arith.constant 0 : index
    %3 = vector.load %arg2[%c0_2, %c0_3] : memref<16x128xbf16, #tpu.memory_space<vmem>>, vector<16x128xbf16>
    %cst = arith.constant dense<0.000000e+00> : vector<22x128xf32>
    %4 = tpu.matmul %2, %3, %cst {dimension_numbers = #tpu.dot_dimension_numbers<[1], [0], [0], [1], [0, 0, 1, 1], [], []>} : vector<22x16xbf16>, vector<16x128xbf16>, vector<22x128xf32> -> vector<22x128xf32>
    %cst_4 = arith.constant 0.000000e+00 : f32
    %5 = vector.broadcast %cst_4 : f32 to vector<22x128xf32>
    %6 = arith.maximumf %4, %5 : vector<22x128xf32>
    %c0_5 = arith.constant 0 : index
    %c0_6 = arith.constant 0 : index
    %c0_7 = arith.constant 0 : index
    %7 = vector.load %arg7[%c0_5, %c0_6, %c0_7] : memref<1x22x128xf32, #tpu.memory_space<vmem>>, vector<1x22x128xf32>
    %8 = vector.shape_cast %7 : vector<1x22x128xf32> to vector<22x128xf32>
    %9 = vector.shape_cast %6 : vector<22x128xf32> to vector<1x22x128xf32>
    tpu.vector_store %arg7[%c0_5, %c0_6, %c0_7], %9 {strides = array<i32>} : memref<1x22x128xf32, #tpu.memory_space<vmem>>, vector<1x22x128xf32>,
    %cst_8 = arith.constant dense<0.000000e+00> : vector<22xf32>
    %10 = vector.multi_reduction <add>, %6, %cst_8 [1] : vector<22x128xf32> to vector<22xf32>
    %11 = vector.shape_cast %10 : vector<22xf32> to vector<22x1xf32>
    %cst_9 = arith.constant 6.250000e-02 : f32
    %12 = vector.broadcast %cst_9 : f32 to vector<22x1xf32>
    %13 = arith.mulf %11, %12 : vector<22x1xf32>
    %14 = arith.mulf %6, %6 : vector<22x128xf32>
    %cst_10 = arith.constant dense<0.000000e+00> : vector<22xf32>
    %15 = vector.multi_reduction <add>, %14, %cst_10 [1] : vector<22x128xf32> to vector<22xf32>
    %16 = vector.shape_cast %15 : vector<22xf32> to vector<22x1xf32>
    %cst_11 = arith.constant 6.250000e-02 : f32
    %17 = vector.broadcast %cst_11 : f32 to vector<22x1xf32>
    %18 = arith.mulf %16, %17 : vector<22x1xf32>
    %19 = arith.mulf %13, %13 : vector<22x1xf32>
    %20 = arith.subf %18, %19 : vector<22x1xf32>
    %cst_12 = arith.constant 0.000000e+00 : f32
    %21 = vector.broadcast %cst_12 : f32 to vector<22x1xf32>
    %22 = arith.maximumf %20, %21 : vector<22x1xf32>
    %23 = vector.broadcast %13 : vector<22x1xf32> to vector<22x128xf32>
    %24 = arith.subf %6, %23 : vector<22x128xf32>
    %cst_13 = arith.constant 9.99999974E-6 : f32
    %25 = vector.broadcast %cst_13 : f32 to vector<22x1xf32>
    %26 = arith.addf %22, %25 : vector<22x1xf32>
    %27 = math.rsqrt %26 : vector<22x1xf32>
    %28 = vector.broadcast %27 : vector<22x1xf32> to vector<22x128xf32>
    %29 = arith.mulf %24, %28 : vector<22x128xf32>
    %c0_14 = arith.constant 0 : index
    %c0_15 = arith.constant 0 : index
    %30 = vector.load %arg3[%c0_14, %c0_15] : memref<1x128xf32, #tpu.memory_space<vmem>>, vector<1x128xf32>
    %31 = vector.broadcast %30 : vector<1x128xf32> to vector<22x128xf32>
    %32 = arith.mulf %29, %31 : vector<22x128xf32>
    %c0_16 = arith.constant 0 : index
    %c0_17 = arith.constant 0 : index
    %33 = vector.load %arg4[%c0_16, %c0_17] : memref<1x128xf32, #tpu.memory_space<vmem>>, vector<1x128xf32>
    %34 = vector.broadcast %33 : vector<1x128xf32> to vector<22x128xf32>
    %35 = arith.addf %32, %34 : vector<22x128xf32>
    %36 = arith.truncf %35 : vector<22x128xf32> to vector<22x128xbf16>
    %c0_18 = arith.constant 0 : index
    %c0_19 = arith.constant 0 : index
    %37 = vector.load %arg5[%c0_18, %c0_19] : memref<128x128xbf16, #tpu.memory_space<vmem>>, vector<128x128xbf16>
    %cst_20 = arith.constant dense<0.000000e+00> : vector<22x128xf32>
    %38 = tpu.matmul %36, %37, %cst_20 {dimension_numbers = #tpu.dot_dimension_numbers<[1], [0], [0], [1], [0, 0, 1, 1], [], []>} : vector<22x128xbf16>, vector<128x128xbf16>, vector<22x128xf32> -> vector<22x128xf32>
    %c0_21 = arith.constant 0 : index
    %c0_22 = arith.constant 0 : index
    %39 = vector.load %arg6[%c0_21, %c0_22] : memref<1x128xf32, #tpu.memory_space<vmem>>, vector<1x128xf32>
    %40 = vector.broadcast %39 : vector<1x128xf32> to vector<22x128xf32>
    %41 = arith.addf %38, %40 : vector<22x128xf32>
    %c0_23 = arith.constant 0 : index
    %c0_24 = arith.constant 0 : index
    %c0_25 = arith.constant 0 : index
    %42 = vector.load %arg8[%c0_23, %c0_24, %c0_25] : memref<1x22x128xf32, #tpu.memory_space<vmem>>, vector<1x22x128xf32>
    %43 = vector.shape_cast %42 : vector<1x22x128xf32> to vector<22x128xf32>
    %44 = vector.shape_cast %41 : vector<22x128xf32> to vector<1x22x128xf32>
    tpu.vector_store %arg8[%c0_23, %c0_24, %c0_25], %44 {strides = array<i32>} : memref<1x22x128xf32, #tpu.memory_space<vmem>>, vector<1x22x128xf32>,
    return
  }
  func.func @transform_0(%arg0: i32) -> (i32, i32, i32) {
    %c0_i32 = arith.constant 0 : i32
    %c0_i32_0 = arith.constant 0 : i32
    %c0_i32_1 = arith.constant 0 : i32
    return %arg0, %c0_i32, %c0_i32_0 : i32, i32, i32
  }
  func.func @transform_1(%arg0: i32) -> (i32, i32) {
    %c0_i32 = arith.constant 0 : i32
    %c0_i32_0 = arith.constant 0 : i32
    %c0_i32_1 = arith.constant 0 : i32
    return %c0_i32, %c0_i32_0 : i32, i32
  }
  func.func @transform_2(%arg0: i32) -> (i32, i32) {
    %c0_i32 = arith.constant 0 : i32
    %c0_i32_0 = arith.constant 0 : i32
    %c0_i32_1 = arith.constant 0 : i32
    return %c0_i32, %c0_i32_0 : i32, i32
  }
  func.func @transform_3(%arg0: i32) -> (i32, i32) {
    %c0_i32 = arith.constant 0 : i32
    %c0_i32_0 = arith.constant 0 : i32
    %c0_i32_1 = arith.constant 0 : i32
    return %c0_i32, %c0_i32_0 : i32, i32
  }
  func.func @transform_4(%arg0: i32) -> (i32, i32) {
    %c0_i32 = arith.constant 0 : i32
    %c0_i32_0 = arith.constant 0 : i32
    %c0_i32_1 = arith.constant 0 : i32
    return %c0_i32, %c0_i32_0 : i32, i32
  }
  func.func @transform_5(%arg0: i32) -> (i32, i32) {
    %c0_i32 = arith.constant 0 : i32
    %c0_i32_0 = arith.constant 0 : i32
    %c0_i32_1 = arith.constant 0 : i32
    return %c0_i32, %c0_i32_0 : i32, i32
  }
  func.func @transform_6(%arg0: i32) -> (i32, i32, i32) {
    %c0_i32 = arith.constant 0 : i32
    %c0_i32_0 = arith.constant 0 : i32
    %c0_i32_1 = arith.constant 0 : i32
    return %arg0, %c0_i32, %c0_i32_0 : i32, i32, i32
  }
  func.func @transform_7(%arg0: i32) -> (i32, i32, i32) {
    %c0_i32 = arith.constant 0 : i32
    %c0_i32_0 = arith.constant 0 : i32
    %c0_i32_1 = arith.constant 0 : i32
    return %arg0, %c0_i32, %c0_i32_0 : i32, i32, i32
  }
}

module attributes {stable_mosaic.version = 11 : i64} {
  func.func @kernel(%arg0: i32, %arg1: memref<1x22x128xf32, #tpu.memory_space<vmem>>, %arg2: memref<1x22x128xf32, #tpu.memory_space<vmem>>, %arg3: memref<1x128xf32, #tpu.memory_space<vmem>>, %arg4: memref<128x256xbf16, #tpu.memory_space<vmem>>, %arg5: memref<1x256xf32, #tpu.memory_space<vmem>>, %arg6: memref<128x8xbf16, #tpu.memory_space<vmem>>, %arg7: memref<128x8xbf16, #tpu.memory_space<vmem>>, %arg8: memref<1x2x23x8xf32, #tpu.memory_space<vmem>>) attributes {dimension_semantics = [#tpu.dimension_semantics<parallel>], iteration_bounds = array<i64: 2>, scalar_prefetch = 0 : i64, scratch_operands = 0 : i64, tpu.core_type = #tpu.core_type<tc>, window_params = [{transform_indices = @transform_0, window_bounds = array<i64: 1, 22, 128>}, {transform_indices = @transform_1, window_bounds = array<i64: 1, 22, 128>}, {pipeline_mode = #tpu.pipeline_mode<synchronous>, transform_indices = @transform_2, window_bounds = array<i64: 1, 128>}, {pipeline_mode = #tpu.pipeline_mode<synchronous>, transform_indices = @transform_3, window_bounds = array<i64: 128, 256>}, {pipeline_mode = #tpu.pipeline_mode<synchronous>, transform_indices = @transform_4, window_bounds = array<i64: 1, 256>}, {pipeline_mode = #tpu.pipeline_mode<synchronous>, transform_indices = @transform_5, window_bounds = array<i64: 128, 8>}, {pipeline_mode = #tpu.pipeline_mode<synchronous>, transform_indices = @transform_6, window_bounds = array<i64: 128, 8>}, {transform_indices = @transform_7, window_bounds = array<i64: 1, 2, 23, 8>}]} {
    %c0 = arith.constant 0 : index
    %c0_0 = arith.constant 0 : index
    %c0_1 = arith.constant 0 : index
    %0 = vector.load %arg1[%c0, %c0_0, %c0_1] : memref<1x22x128xf32, #tpu.memory_space<vmem>>, vector<1x22x128xf32>
    %1 = vector.shape_cast %0 : vector<1x22x128xf32> to vector<22x128xf32>
    %cst = arith.constant 0.000000e+00 : f32
    %2 = vector.broadcast %cst : f32 to vector<22x128xf32>
    %3 = arith.cmpf oge, %1, %2 : vector<22x128xf32>
    %c0_2 = arith.constant 0 : index
    %c0_3 = arith.constant 0 : index
    %4 = vector.load %arg3[%c0_2, %c0_3] : memref<1x128xf32, #tpu.memory_space<vmem>>, vector<1x128xf32>
    %5 = vector.broadcast %4 : vector<1x128xf32> to vector<22x128xf32>
    %6 = arith.mulf %5, %1 : vector<22x128xf32>
    %7 = arith.select %3, %1, %6 : vector<22x128xi1>, vector<22x128xf32>
    %8 = arith.truncf %7 : vector<22x128xf32> to vector<22x128xbf16>
    %c0_4 = arith.constant 0 : index
    %c0_5 = arith.constant 0 : index
    %9 = vector.load %arg4[%c0_4, %c0_5] : memref<128x256xbf16, #tpu.memory_space<vmem>>, vector<128x256xbf16>
    %cst_6 = arith.constant dense<0.000000e+00> : vector<22x256xf32>
    %10 = tpu.matmul %8, %9, %cst_6 {dimension_numbers = #tpu.dot_dimension_numbers<[1], [0], [0], [1], [0, 0, 1, 1], [], []>} : vector<22x128xbf16>, vector<128x256xbf16>, vector<22x256xf32> -> vector<22x256xf32>
    %c0_7 = arith.constant 0 : index
    %c0_8 = arith.constant 0 : index
    %11 = vector.load %arg5[%c0_7, %c0_8] : memref<1x256xf32, #tpu.memory_space<vmem>>, vector<1x256xf32>
    %12 = vector.broadcast %11 : vector<1x256xf32> to vector<22x256xf32>
    %13 = arith.addf %10, %12 : vector<22x256xf32>
    %14 = arith.negf %13 : vector<22x256xf32>
    %15 = math.exp %14 : vector<22x256xf32>
    %cst_9 = arith.constant 1.000000e+00 : f32
    %16 = vector.broadcast %cst_9 : f32 to vector<22x256xf32>
    %17 = arith.addf %16, %15 : vector<22x256xf32>
    %18 = arith.divf %16, %17 : vector<22x256xf32>
    %c0_10 = arith.constant 0 : index
    %c0_11 = arith.constant 0 : index
    %c0_12 = arith.constant 0 : index
    %19 = vector.load %arg2[%c0_10, %c0_11, %c0_12] : memref<1x22x128xf32, #tpu.memory_space<vmem>>, vector<1x22x128xf32>
    %20 = vector.shape_cast %19 : vector<1x22x128xf32> to vector<22x128xf32>
    %21 = tpu.iota {dimensions = array<i32: 0>} : vector<23x22xi32>
    %22 = tpu.iota {dimensions = array<i32: 1>} : vector<23x22xi32>
    %23 = arith.cmpi eq, %21, %22 : vector<23x22xi32>
    %24 = arith.extui %23 : vector<23x22xi1> to vector<23x22xi32>
    %25 = arith.sitofp %24 : vector<23x22xi32> to vector<23x22xf32>
    %c1_i32 = arith.constant 1 : i32
    %26 = vector.broadcast %c1_i32 : i32 to vector<23x22xi32>
    %27 = arith.addi %22, %26 : vector<23x22xi32>
    %28 = arith.cmpi eq, %21, %27 : vector<23x22xi32>
    %29 = arith.extui %28 : vector<23x22xi1> to vector<23x22xi32>
    %30 = arith.sitofp %29 : vector<23x22xi32> to vector<23x22xf32>
    %31 = vector.extract_strided_slice %18 {offsets = [0, 0], sizes = [22, 128], strides = [1, 1]} : vector<22x256xf32> to vector<22x128xf32>
    %32 = arith.mulf %20, %31 : vector<22x128xf32>
    %33 = arith.truncf %32 : vector<22x128xf32> to vector<22x128xbf16>
    %c0_13 = arith.constant 0 : index
    %c0_14 = arith.constant 0 : index
    %34 = vector.load %arg6[%c0_13, %c0_14] : memref<128x8xbf16, #tpu.memory_space<vmem>>, vector<128x8xbf16>
    %cst_15 = arith.constant dense<0.000000e+00> : vector<22x8xf32>
    %35 = tpu.matmul %33, %34, %cst_15 {dimension_numbers = #tpu.dot_dimension_numbers<[1], [0], [0], [1], [0, 0, 1, 1], [], []>} : vector<22x128xbf16>, vector<128x8xbf16>, vector<22x8xf32> -> vector<22x8xf32>
    %c0_16 = arith.constant 0 : index
    %c0_17 = arith.constant 0 : index
    %36 = vector.load %arg7[%c0_16, %c0_17] : memref<128x8xbf16, #tpu.memory_space<vmem>>, vector<128x8xbf16>
    %cst_18 = arith.constant dense<0.000000e+00> : vector<22x8xf32>
    %37 = tpu.matmul %33, %36, %cst_18 {dimension_numbers = #tpu.dot_dimension_numbers<[1], [0], [0], [1], [0, 0, 1, 1], [], []>} : vector<22x128xbf16>, vector<128x8xbf16>, vector<22x8xf32> -> vector<22x8xf32>
    %cst_19 = arith.constant dense<0.000000e+00> : vector<23x8xf32>
    %38 = tpu.matmul %25, %35, %cst_19 {dimension_numbers = #tpu.dot_dimension_numbers<[1], [0], [0], [1], [0, 0, 1, 1], [], []>} : vector<23x22xf32>, vector<22x8xf32>, vector<23x8xf32> -> vector<23x8xf32>
    %cst_20 = arith.constant dense<0.000000e+00> : vector<23x8xf32>
    %39 = tpu.matmul %30, %37, %cst_20 {dimension_numbers = #tpu.dot_dimension_numbers<[1], [0], [0], [1], [0, 0, 1, 1], [], []>} : vector<23x22xf32>, vector<22x8xf32>, vector<23x8xf32> -> vector<23x8xf32>
    %40 = arith.addf %38, %39 : vector<23x8xf32>
    %c0_21 = arith.constant 0 : index
    %c0_22 = arith.constant 0 : index
    %c0_23 = arith.constant 0 : index
    %c0_24 = arith.constant 0 : index
    %41 = vector.load %arg8[%c0_21, %c0_22, %c0_23, %c0_24] : memref<1x2x23x8xf32, #tpu.memory_space<vmem>>, vector<1x1x23x8xf32>
    %42 = vector.shape_cast %41 : vector<1x1x23x8xf32> to vector<23x8xf32>
    %43 = vector.shape_cast %40 : vector<23x8xf32> to vector<1x1x23x8xf32>
    tpu.vector_store %arg8[%c0_21, %c0_22, %c0_23, %c0_24], %43 {strides = array<i32>} : memref<1x2x23x8xf32, #tpu.memory_space<vmem>>, vector<1x1x23x8xf32>,
    %44 = vector.extract_strided_slice %18 {offsets = [0, 128], sizes = [22, 128], strides = [1, 1]} : vector<22x256xf32> to vector<22x128xf32>
    %45 = arith.mulf %20, %44 : vector<22x128xf32>
    %46 = arith.truncf %45 : vector<22x128xf32> to vector<22x128xbf16>
    %c0_25 = arith.constant 0 : index
    %c0_26 = arith.constant 0 : index
    %47 = vector.load %arg6[%c0_25, %c0_26] : memref<128x8xbf16, #tpu.memory_space<vmem>>, vector<128x8xbf16>
    %cst_27 = arith.constant dense<0.000000e+00> : vector<22x8xf32>
    %48 = tpu.matmul %46, %47, %cst_27 {dimension_numbers = #tpu.dot_dimension_numbers<[1], [0], [0], [1], [0, 0, 1, 1], [], []>} : vector<22x128xbf16>, vector<128x8xbf16>, vector<22x8xf32> -> vector<22x8xf32>
    %c0_28 = arith.constant 0 : index
    %c0_29 = arith.constant 0 : index
    %49 = vector.load %arg7[%c0_28, %c0_29] : memref<128x8xbf16, #tpu.memory_space<vmem>>, vector<128x8xbf16>
    %cst_30 = arith.constant dense<0.000000e+00> : vector<22x8xf32>
    %50 = tpu.matmul %46, %49, %cst_30 {dimension_numbers = #tpu.dot_dimension_numbers<[1], [0], [0], [1], [0, 0, 1, 1], [], []>} : vector<22x128xbf16>, vector<128x8xbf16>, vector<22x8xf32> -> vector<22x8xf32>
    %cst_31 = arith.constant dense<0.000000e+00> : vector<23x8xf32>
    %51 = tpu.matmul %25, %48, %cst_31 {dimension_numbers = #tpu.dot_dimension_numbers<[1], [0], [0], [1], [0, 0, 1, 1], [], []>} : vector<23x22xf32>, vector<22x8xf32>, vector<23x8xf32> -> vector<23x8xf32>
    %cst_32 = arith.constant dense<0.000000e+00> : vector<23x8xf32>
    %52 = tpu.matmul %30, %50, %cst_32 {dimension_numbers = #tpu.dot_dimension_numbers<[1], [0], [0], [1], [0, 0, 1, 1], [], []>} : vector<23x22xf32>, vector<22x8xf32>, vector<23x8xf32> -> vector<23x8xf32>
    %53 = arith.addf %51, %52 : vector<23x8xf32>
    %c0_33 = arith.constant 0 : index
    %c1 = arith.constant 1 : index
    %c0_34 = arith.constant 0 : index
    %c0_35 = arith.constant 0 : index
    %54 = vector.load %arg8[%c0_33, %c1, %c0_34, %c0_35] : memref<1x2x23x8xf32, #tpu.memory_space<vmem>>, vector<1x1x23x8xf32>
    %55 = vector.shape_cast %54 : vector<1x1x23x8xf32> to vector<23x8xf32>
    %56 = vector.shape_cast %53 : vector<23x8xf32> to vector<1x1x23x8xf32>
    tpu.vector_store %arg8[%c0_33, %c1, %c0_34, %c0_35], %56 {strides = array<i32>} : memref<1x2x23x8xf32, #tpu.memory_space<vmem>>, vector<1x1x23x8xf32>,
    return
  }
  func.func @transform_0(%arg0: i32) -> (i32, i32, i32) {
    %c0_i32 = arith.constant 0 : i32
    %c0_i32_0 = arith.constant 0 : i32
    %c0_i32_1 = arith.constant 0 : i32
    return %arg0, %c0_i32, %c0_i32_0 : i32, i32, i32
  }
  func.func @transform_1(%arg0: i32) -> (i32, i32, i32) {
    %c0_i32 = arith.constant 0 : i32
    %c0_i32_0 = arith.constant 0 : i32
    %c0_i32_1 = arith.constant 0 : i32
    return %arg0, %c0_i32, %c0_i32_0 : i32, i32, i32
  }
  func.func @transform_2(%arg0: i32) -> (i32, i32) {
    %c0_i32 = arith.constant 0 : i32
    %c0_i32_0 = arith.constant 0 : i32
    %c0_i32_1 = arith.constant 0 : i32
    return %c0_i32, %c0_i32_0 : i32, i32
  }
  func.func @transform_3(%arg0: i32) -> (i32, i32) {
    %c0_i32 = arith.constant 0 : i32
    %c0_i32_0 = arith.constant 0 : i32
    %c0_i32_1 = arith.constant 0 : i32
    return %c0_i32, %c0_i32_0 : i32, i32
  }
  func.func @transform_4(%arg0: i32) -> (i32, i32) {
    %c0_i32 = arith.constant 0 : i32
    %c0_i32_0 = arith.constant 0 : i32
    %c0_i32_1 = arith.constant 0 : i32
    return %c0_i32, %c0_i32_0 : i32, i32
  }
  func.func @transform_5(%arg0: i32) -> (i32, i32) {
    %c0_i32 = arith.constant 0 : i32
    %c0_i32_0 = arith.constant 0 : i32
    %c0_i32_1 = arith.constant 0 : i32
    return %c0_i32, %c0_i32_0 : i32, i32
  }
  func.func @transform_6(%arg0: i32) -> (i32, i32) {
    %c0_i32 = arith.constant 0 : i32
    %c0_i32_0 = arith.constant 0 : i32
    %c0_i32_1 = arith.constant 0 : i32
    return %c0_i32, %c0_i32_0 : i32, i32
  }
  func.func @transform_7(%arg0: i32) -> (i32, i32, i32, i32) {
    %c0_i32 = arith.constant 0 : i32
    %c0_i32_0 = arith.constant 0 : i32
    %c0_i32_1 = arith.constant 0 : i32
    %c0_i32_2 = arith.constant 0 : i32
    return %arg0, %c0_i32, %c0_i32_0, %c0_i32_1 : i32, i32, i32, i32
  }
}

module attributes {stable_mosaic.version = 11 : i64} {
  func.func @kernel(%arg0: i32, %arg1: memref<1x22x128xf32, #tpu.memory_space<vmem>>, %arg2: memref<6x128x128xbf16, #tpu.memory_space<vmem>>, %arg3: memref<6x3x128xf32, #tpu.memory_space<vmem>>, %arg4: memref<6x128x128xbf16, #tpu.memory_space<vmem>>, %arg5: memref<6x128x128xbf16, #tpu.memory_space<vmem>>, %arg6: memref<6x10x128xf32, #tpu.memory_space<vmem>>, %arg7: memref<1x22x128xf32, #tpu.memory_space<vmem>>) attributes {dimension_semantics = [#tpu.dimension_semantics<parallel>], iteration_bounds = array<i64: 2>, scalar_prefetch = 0 : i64, scratch_operands = 0 : i64, tpu.core_type = #tpu.core_type<tc>, window_params = [{transform_indices = @transform_0, window_bounds = array<i64: 1, 22, 128>}, {pipeline_mode = #tpu.pipeline_mode<synchronous>, transform_indices = @transform_1, window_bounds = array<i64: 6, 128, 128>}, {pipeline_mode = #tpu.pipeline_mode<synchronous>, transform_indices = @transform_2, window_bounds = array<i64: 6, 3, 128>}, {pipeline_mode = #tpu.pipeline_mode<synchronous>, transform_indices = @transform_3, window_bounds = array<i64: 6, 128, 128>}, {pipeline_mode = #tpu.pipeline_mode<synchronous>, transform_indices = @transform_4, window_bounds = array<i64: 6, 128, 128>}, {pipeline_mode = #tpu.pipeline_mode<synchronous>, transform_indices = @transform_5, window_bounds = array<i64: 6, 10, 128>}, {transform_indices = @transform_6, window_bounds = array<i64: 1, 22, 128>}]} {
    %0 = tpu.iota {dimensions = array<i32: 0>} : vector<22x22xi32>
    %1 = tpu.iota {dimensions = array<i32: 1>} : vector<22x22xi32>
    %c1_i32 = arith.constant 1 : i32
    %2 = vector.broadcast %c1_i32 : i32 to vector<22x22xi32>
    %3 = arith.subi %0, %2 : vector<22x22xi32>
    %4 = arith.cmpi eq, %1, %3 : vector<22x22xi32>
    %5 = arith.extui %4 : vector<22x22xi1> to vector<22x22xi32>
    %6 = arith.sitofp %5 : vector<22x22xi32> to vector<22x22xf32>
    %c1_i32_0 = arith.constant 1 : i32
    %7 = vector.broadcast %c1_i32_0 : i32 to vector<22x22xi32>
    %8 = arith.addi %0, %7 : vector<22x22xi32>
    %9 = arith.cmpi eq, %1, %8 : vector<22x22xi32>
    %10 = arith.extui %9 : vector<22x22xi1> to vector<22x22xi32>
    %11 = arith.sitofp %10 : vector<22x22xi32> to vector<22x22xf32>
    %c2_i32 = arith.constant 2 : i32
    %12 = vector.broadcast %c2_i32 : i32 to vector<22x22xi32>
    %13 = arith.subi %0, %12 : vector<22x22xi32>
    %14 = arith.cmpi eq, %1, %13 : vector<22x22xi32>
    %15 = arith.extui %14 : vector<22x22xi1> to vector<22x22xi32>
    %16 = arith.sitofp %15 : vector<22x22xi32> to vector<22x22xf32>
    %c2_i32_1 = arith.constant 2 : i32
    %17 = vector.broadcast %c2_i32_1 : i32 to vector<22x22xi32>
    %18 = arith.addi %0, %17 : vector<22x22xi32>
    %19 = arith.cmpi eq, %1, %18 : vector<22x22xi32>
    %20 = arith.extui %19 : vector<22x22xi1> to vector<22x22xi32>
    %21 = arith.sitofp %20 : vector<22x22xi32> to vector<22x22xf32>
    %c4_i32 = arith.constant 4 : i32
    %22 = vector.broadcast %c4_i32 : i32 to vector<22x22xi32>
    %23 = arith.subi %0, %22 : vector<22x22xi32>
    %24 = arith.cmpi eq, %1, %23 : vector<22x22xi32>
    %25 = arith.extui %24 : vector<22x22xi1> to vector<22x22xi32>
    %26 = arith.sitofp %25 : vector<22x22xi32> to vector<22x22xf32>
    %c4_i32_2 = arith.constant 4 : i32
    %27 = vector.broadcast %c4_i32_2 : i32 to vector<22x22xi32>
    %28 = arith.addi %0, %27 : vector<22x22xi32>
    %29 = arith.cmpi eq, %1, %28 : vector<22x22xi32>
    %30 = arith.extui %29 : vector<22x22xi1> to vector<22x22xi32>
    %31 = arith.sitofp %30 : vector<22x22xi32> to vector<22x22xf32>
    %c0 = arith.constant 0 : index
    %c0_3 = arith.constant 0 : index
    %c0_4 = arith.constant 0 : index
    %32 = vector.load %arg1[%c0, %c0_3, %c0_4] : memref<1x22x128xf32, #tpu.memory_space<vmem>>, vector<1x22x128xf32>
    %33 = vector.shape_cast %32 : vector<1x22x128xf32> to vector<22x128xf32>
    %cst = arith.constant 0.000000e+00 : f32
    %34 = vector.broadcast %cst : f32 to vector<22x128xf32>
    %c0_5 = arith.constant 0 : index
    %c0_6 = arith.constant 0 : index
    %c0_7 = arith.constant 0 : index
    %35 = vector.load %arg6[%c0_5, %c0_6, %c0_7] : memref<6x10x128xf32, #tpu.memory_space<vmem>>, vector<1x10x128xf32>
    %36 = vector.shape_cast %35 : vector<1x10x128xf32> to vector<10x128xf32>
    %37 = vector.extract_strided_slice %36 {offsets = [0, 0], sizes = [1, 128], strides = [1, 1]} : vector<10x128xf32> to vector<1x128xf32>
    %38 = vector.extract_strided_slice %36 {offsets = [1, 0], sizes = [1, 128], strides = [1, 1]} : vector<10x128xf32> to vector<1x128xf32>
    %39 = vector.extract_strided_slice %36 {offsets = [2, 0], sizes = [1, 128], strides = [1, 1]} : vector<10x128xf32> to vector<1x128xf32>
    %40 = vector.extract_strided_slice %36 {offsets = [3, 0], sizes = [1, 128], strides = [1, 1]} : vector<10x128xf32> to vector<1x128xf32>
    %41 = vector.extract_strided_slice %36 {offsets = [4, 0], sizes = [1, 128], strides = [1, 1]} : vector<10x128xf32> to vector<1x128xf32>
    %42 = vector.extract_strided_slice %36 {offsets = [5, 0], sizes = [1, 128], strides = [1, 1]} : vector<10x128xf32> to vector<1x128xf32>
    %43 = vector.extract_strided_slice %36 {offsets = [6, 0], sizes = [1, 128], strides = [1, 1]} : vector<10x128xf32> to vector<1x128xf32>
    %44 = vector.extract_strided_slice %36 {offsets = [7, 0], sizes = [1, 128], strides = [1, 1]} : vector<10x128xf32> to vector<1x128xf32>
    %45 = vector.extract_strided_slice %36 {offsets = [8, 0], sizes = [1, 128], strides = [1, 1]} : vector<10x128xf32> to vector<1x128xf32>
    %46 = vector.extract_strided_slice %36 {offsets = [9, 0], sizes = [1, 128], strides = [1, 1]} : vector<10x128xf32> to vector<1x128xf32>
    %47 = arith.truncf %33 : vector<22x128xf32> to vector<22x128xbf16>
    %c0_8 = arith.constant 0 : index
    %c0_9 = arith.constant 0 : index
    %c0_10 = arith.constant 0 : index
    %48 = vector.load %arg2[%c0_8, %c0_9, %c0_10] : memref<6x128x128xbf16, #tpu.memory_space<vmem>>, vector<1x128x128xbf16>
    %49 = vector.shape_cast %48 : vector<1x128x128xbf16> to vector<128x128xbf16>
    %cst_11 = arith.constant dense<0.000000e+00> : vector<22x128xf32>
    %50 = tpu.matmul %47, %49, %cst_11 {dimension_numbers = #tpu.dot_dimension_numbers<[1], [0], [0], [1], [0, 0, 1, 1], [], []>} : vector<22x128xbf16>, vector<128x128xbf16>, vector<22x128xf32> -> vector<22x128xf32>
    %51 = vector.broadcast %37 : vector<1x128xf32> to vector<22x128xf32>
    %52 = arith.addf %50, %51 : vector<22x128xf32>
    %cst_12 = arith.constant 0.000000e+00 : f32
    %53 = vector.broadcast %cst_12 : f32 to vector<22x128xf32>
    %54 = arith.cmpf oge, %52, %53 : vector<22x128xf32>
    %55 = vector.broadcast %45 : vector<1x128xf32> to vector<22x128xf32>
    %56 = arith.mulf %55, %52 : vector<22x128xf32>
    %57 = arith.select %54, %52, %56 : vector<22x128xi1>, vector<22x128xf32>
    %58 = vector.shape_cast %57 : vector<22x128xf32> to vector<1x22x128xf32>
    %cst_13 = arith.constant dense<0.000000e+00> : vector<1xf32>
    %59 = vector.multi_reduction <add>, %58, %cst_13 [1, 2] : vector<1x22x128xf32> to vector<1xf32>
    %60 = vector.shape_cast %59 : vector<1xf32> to vector<1x1x1xf32>
    %61 = vector.extract %60[0, 0, 0] : f32 from vector<1x1x1xf32>
    %cst_14 = arith.constant 0.00142045459 : f32
    %62 = arith.mulf %61, %cst_14 : f32
    %63 = arith.mulf %57, %57 : vector<22x128xf32>
    %64 = vector.shape_cast %63 : vector<22x128xf32> to vector<1x22x128xf32>
    %cst_15 = arith.constant dense<0.000000e+00> : vector<1xf32>
    %65 = vector.multi_reduction <add>, %64, %cst_15 [1, 2] : vector<1x22x128xf32> to vector<1xf32>
    %66 = vector.shape_cast %65 : vector<1xf32> to vector<1x1x1xf32>
    %67 = vector.extract %66[0, 0, 0] : f32 from vector<1x1x1xf32>
    %cst_16 = arith.constant 0.00142045459 : f32
    %68 = arith.mulf %67, %cst_16 : f32
    %69 = arith.mulf %62, %62 : f32
    %70 = arith.subf %68, %69 : f32
    %cst_17 = arith.constant 0.000000e+00 : f32
    %71 = arith.maximumf %70, %cst_17 : f32
    %72 = vector.broadcast %62 : f32 to vector<22x128xf32>
    %73 = arith.subf %57, %72 : vector<22x128xf32>
    %cst_18 = arith.constant 1.000000e-10 : f32
    %74 = arith.addf %71, %cst_18 : f32
    %75 = math.rsqrt %74 : f32
    %76 = vector.broadcast %75 : f32 to vector<22x128xf32>
    %77 = arith.mulf %73, %76 : vector<22x128xf32>
    %78 = vector.broadcast %38 : vector<1x128xf32> to vector<22x128xf32>
    %79 = arith.mulf %77, %78 : vector<22x128xf32>
    %80 = vector.broadcast %39 : vector<1x128xf32> to vector<22x128xf32>
    %81 = arith.addf %79, %80 : vector<22x128xf32>
    %c0_19 = arith.constant 0 : index
    %c0_20 = arith.constant 0 : index
    %c0_21 = arith.constant 0 : index
    %82 = vector.load %arg3[%c0_19, %c0_20, %c0_21] : memref<6x3x128xf32, #tpu.memory_space<vmem>>, vector<1x3x128xf32>
    %83 = vector.shape_cast %82 : vector<1x3x128xf32> to vector<3x128xf32>
    %cst_22 = arith.constant dense<0.000000e+00> : vector<22x128xf32>
    %84 = tpu.matmul %6, %81, %cst_22 {dimension_numbers = #tpu.dot_dimension_numbers<[1], [0], [0], [1], [0, 0, 1, 1], [], []>} : vector<22x22xf32>, vector<22x128xf32>, vector<22x128xf32> -> vector<22x128xf32>
    %cst_23 = arith.constant dense<0.000000e+00> : vector<22x128xf32>
    %85 = tpu.matmul %11, %81, %cst_23 {dimension_numbers = #tpu.dot_dimension_numbers<[1], [0], [0], [1], [0, 0, 1, 1], [], []>} : vector<22x22xf32>, vector<22x128xf32>, vector<22x128xf32> -> vector<22x128xf32>
    %86 = vector.extract_strided_slice %83 {offsets = [0, 0], sizes = [1, 128], strides = [1, 1]} : vector<3x128xf32> to vector<1x128xf32>
    %87 = vector.broadcast %86 : vector<1x128xf32> to vector<22x128xf32>
    %88 = arith.mulf %84, %87 : vector<22x128xf32>
    %89 = vector.extract_strided_slice %83 {offsets = [1, 0], sizes = [1, 128], strides = [1, 1]} : vector<3x128xf32> to vector<1x128xf32>
    %90 = vector.broadcast %89 : vector<1x128xf32> to vector<22x128xf32>
    %91 = arith.mulf %81, %90 : vector<22x128xf32>
    %92 = arith.addf %88, %91 : vector<22x128xf32>
    %93 = vector.extract_strided_slice %83 {offsets = [2, 0], sizes = [1, 128], strides = [1, 1]} : vector<3x128xf32> to vector<1x128xf32>
    %94 = vector.broadcast %93 : vector<1x128xf32> to vector<22x128xf32>
    %95 = arith.mulf %85, %94 : vector<22x128xf32>
    %96 = arith.addf %92, %95 : vector<22x128xf32>
    %97 = vector.broadcast %40 : vector<1x128xf32> to vector<22x128xf32>
    %98 = arith.addf %96, %97 : vector<22x128xf32>
    %cst_24 = arith.constant 0.000000e+00 : f32
    %99 = vector.broadcast %cst_24 : f32 to vector<22x128xf32>
    %100 = arith.cmpf oge, %98, %99 : vector<22x128xf32>
    %101 = vector.broadcast %46 : vector<1x128xf32> to vector<22x128xf32>
    %102 = arith.mulf %101, %98 : vector<22x128xf32>
    %103 = arith.select %100, %98, %102 : vector<22x128xi1>, vector<22x128xf32>
    %104 = vector.shape_cast %103 : vector<22x128xf32> to vector<1x22x128xf32>
    %cst_25 = arith.constant dense<0.000000e+00> : vector<1xf32>
    %105 = vector.multi_reduction <add>, %104, %cst_25 [1, 2] : vector<1x22x128xf32> to vector<1xf32>
    %106 = vector.shape_cast %105 : vector<1xf32> to vector<1x1x1xf32>
    %107 = vector.extract %106[0, 0, 0] : f32 from vector<1x1x1xf32>
    %cst_26 = arith.constant 0.00142045459 : f32
    %108 = arith.mulf %107, %cst_26 : f32
    %109 = arith.mulf %103, %103 : vector<22x128xf32>
    %110 = vector.shape_cast %109 : vector<22x128xf32> to vector<1x22x128xf32>
    %cst_27 = arith.constant dense<0.000000e+00> : vector<1xf32>
    %111 = vector.multi_reduction <add>, %110, %cst_27 [1, 2] : vector<1x22x128xf32> to vector<1xf32>
    %112 = vector.shape_cast %111 : vector<1xf32> to vector<1x1x1xf32>
    %113 = vector.extract %112[0, 0, 0] : f32 from vector<1x1x1xf32>
    %cst_28 = arith.constant 0.00142045459 : f32
    %114 = arith.mulf %113, %cst_28 : f32
    %115 = arith.mulf %108, %108 : f32
    %116 = arith.subf %114, %115 : f32
    %cst_29 = arith.constant 0.000000e+00 : f32
    %117 = arith.maximumf %116, %cst_29 : f32
    %118 = vector.broadcast %108 : f32 to vector<22x128xf32>
    %119 = arith.subf %103, %118 : vector<22x128xf32>
    %cst_30 = arith.constant 1.000000e-10 : f32
    %120 = arith.addf %117, %cst_30 : f32
    %121 = math.rsqrt %120 : f32
    %122 = vector.broadcast %121 : f32 to vector<22x128xf32>
    %123 = arith.mulf %119, %122 : vector<22x128xf32>
    %124 = vector.broadcast %41 : vector<1x128xf32> to vector<22x128xf32>
    %125 = arith.mulf %123, %124 : vector<22x128xf32>
    %126 = vector.broadcast %42 : vector<1x128xf32> to vector<22x128xf32>
    %127 = arith.addf %125, %126 : vector<22x128xf32>
    %128 = arith.truncf %127 : vector<22x128xf32> to vector<22x128xbf16>
    %c0_31 = arith.constant 0 : index
    %c0_32 = arith.constant 0 : index
    %c0_33 = arith.constant 0 : index
    %129 = vector.load %arg4[%c0_31, %c0_32, %c0_33] : memref<6x128x128xbf16, #tpu.memory_space<vmem>>, vector<1x128x128xbf16>
    %130 = vector.shape_cast %129 : vector<1x128x128xbf16> to vector<128x128xbf16>
    %cst_34 = arith.constant dense<0.000000e+00> : vector<22x128xf32>
    %131 = tpu.matmul %128, %130, %cst_34 {dimension_numbers = #tpu.dot_dimension_numbers<[1], [0], [0], [1], [0, 0, 1, 1], [], []>} : vector<22x128xbf16>, vector<128x128xbf16>, vector<22x128xf32> -> vector<22x128xf32>
    %132 = arith.addf %34, %131 : vector<22x128xf32>
    %133 = vector.broadcast %43 : vector<1x128xf32> to vector<22x128xf32>
    %134 = arith.addf %132, %133 : vector<22x128xf32>
    %c0_35 = arith.constant 0 : index
    %c0_36 = arith.constant 0 : index
    %c0_37 = arith.constant 0 : index
    %135 = vector.load %arg5[%c0_35, %c0_36, %c0_37] : memref<6x128x128xbf16, #tpu.memory_space<vmem>>, vector<1x128x128xbf16>
    %136 = vector.shape_cast %135 : vector<1x128x128xbf16> to vector<128x128xbf16>
    %cst_38 = arith.constant dense<0.000000e+00> : vector<22x128xf32>
    %137 = tpu.matmul %128, %136, %cst_38 {dimension_numbers = #tpu.dot_dimension_numbers<[1], [0], [0], [1], [0, 0, 1, 1], [], []>} : vector<22x128xbf16>, vector<128x128xbf16>, vector<22x128xf32> -> vector<22x128xf32>
    %138 = arith.addf %33, %137 : vector<22x128xf32>
    %139 = vector.broadcast %44 : vector<1x128xf32> to vector<22x128xf32>
    %140 = arith.addf %138, %139 : vector<22x128xf32>
    %c1 = arith.constant 1 : index
    %c0_39 = arith.constant 0 : index
    %c0_40 = arith.constant 0 : index
    %141 = vector.load %arg6[%c1, %c0_39, %c0_40] : memref<6x10x128xf32, #tpu.memory_space<vmem>>, vector<1x10x128xf32>
    %142 = vector.shape_cast %141 : vector<1x10x128xf32> to vector<10x128xf32>
    %143 = vector.extract_strided_slice %142 {offsets = [0, 0], sizes = [1, 128], strides = [1, 1]} : vector<10x128xf32> to vector<1x128xf32>
    %144 = vector.extract_strided_slice %142 {offsets = [1, 0], sizes = [1, 128], strides = [1, 1]} : vector<10x128xf32> to vector<1x128xf32>
    %145 = vector.extract_strided_slice %142 {offsets = [2, 0], sizes = [1, 128], strides = [1, 1]} : vector<10x128xf32> to vector<1x128xf32>
    %146 = vector.extract_strided_slice %142 {offsets = [3, 0], sizes = [1, 128], strides = [1, 1]} : vector<10x128xf32> to vector<1x128xf32>
    %147 = vector.extract_strided_slice %142 {offsets = [4, 0], sizes = [1, 128], strides = [1, 1]} : vector<10x128xf32> to vector<1x128xf32>
    %148 = vector.extract_strided_slice %142 {offsets = [5, 0], sizes = [1, 128], strides = [1, 1]} : vector<10x128xf32> to vector<1x128xf32>
    %149 = vector.extract_strided_slice %142 {offsets = [6, 0], sizes = [1, 128], strides = [1, 1]} : vector<10x128xf32> to vector<1x128xf32>
    %150 = vector.extract_strided_slice %142 {offsets = [7, 0], sizes = [1, 128], strides = [1, 1]} : vector<10x128xf32> to vector<1x128xf32>
    %151 = vector.extract_strided_slice %142 {offsets = [8, 0], sizes = [1, 128], strides = [1, 1]} : vector<10x128xf32> to vector<1x128xf32>
    %152 = vector.extract_strided_slice %142 {offsets = [9, 0], sizes = [1, 128], strides = [1, 1]} : vector<10x128xf32> to vector<1x128xf32>
    %153 = arith.truncf %140 : vector<22x128xf32> to vector<22x128xbf16>
    %c1_41 = arith.constant 1 : index
    %c0_42 = arith.constant 0 : index
    %c0_43 = arith.constant 0 : index
    %154 = vector.load %arg2[%c1_41, %c0_42, %c0_43] : memref<6x128x128xbf16, #tpu.memory_space<vmem>>, vector<1x128x128xbf16>
    %155 = vector.shape_cast %154 : vector<1x128x128xbf16> to vector<128x128xbf16>
    %cst_44 = arith.constant dense<0.000000e+00> : vector<22x128xf32>
    %156 = tpu.matmul %153, %155, %cst_44 {dimension_numbers = #tpu.dot_dimension_numbers<[1], [0], [0], [1], [0, 0, 1, 1], [], []>} : vector<22x128xbf16>, vector<128x128xbf16>, vector<22x128xf32> -> vector<22x128xf32>
    %157 = vector.broadcast %143 : vector<1x128xf32> to vector<22x128xf32>
    %158 = arith.addf %156, %157 : vector<22x128xf32>
    %cst_45 = arith.constant 0.000000e+00 : f32
    %159 = vector.broadcast %cst_45 : f32 to vector<22x128xf32>
    %160 = arith.cmpf oge, %158, %159 : vector<22x128xf32>
    %161 = vector.broadcast %151 : vector<1x128xf32> to vector<22x128xf32>
    %162 = arith.mulf %161, %158 : vector<22x128xf32>
    %163 = arith.select %160, %158, %162 : vector<22x128xi1>, vector<22x128xf32>
    %164 = vector.shape_cast %163 : vector<22x128xf32> to vector<1x22x128xf32>
    %cst_46 = arith.constant dense<0.000000e+00> : vector<1xf32>
    %165 = vector.multi_reduction <add>, %164, %cst_46 [1, 2] : vector<1x22x128xf32> to vector<1xf32>
    %166 = vector.shape_cast %165 : vector<1xf32> to vector<1x1x1xf32>
    %167 = vector.extract %166[0, 0, 0] : f32 from vector<1x1x1xf32>
    %cst_47 = arith.constant 0.00142045459 : f32
    %168 = arith.mulf %167, %cst_47 : f32
    %169 = arith.mulf %163, %163 : vector<22x128xf32>
    %170 = vector.shape_cast %169 : vector<22x128xf32> to vector<1x22x128xf32>
    %cst_48 = arith.constant dense<0.000000e+00> : vector<1xf32>
    %171 = vector.multi_reduction <add>, %170, %cst_48 [1, 2] : vector<1x22x128xf32> to vector<1xf32>
    %172 = vector.shape_cast %171 : vector<1xf32> to vector<1x1x1xf32>
    %173 = vector.extract %172[0, 0, 0] : f32 from vector<1x1x1xf32>
    %cst_49 = arith.constant 0.00142045459 : f32
    %174 = arith.mulf %173, %cst_49 : f32
    %175 = arith.mulf %168, %168 : f32
    %176 = arith.subf %174, %175 : f32
    %cst_50 = arith.constant 0.000000e+00 : f32
    %177 = arith.maximumf %176, %cst_50 : f32
    %178 = vector.broadcast %168 : f32 to vector<22x128xf32>
    %179 = arith.subf %163, %178 : vector<22x128xf32>
    %cst_51 = arith.constant 1.000000e-10 : f32
    %180 = arith.addf %177, %cst_51 : f32
    %181 = math.rsqrt %180 : f32
    %182 = vector.broadcast %181 : f32 to vector<22x128xf32>
    %183 = arith.mulf %179, %182 : vector<22x128xf32>
    %184 = vector.broadcast %144 : vector<1x128xf32> to vector<22x128xf32>
    %185 = arith.mulf %183, %184 : vector<22x128xf32>
    %186 = vector.broadcast %145 : vector<1x128xf32> to vector<22x128xf32>
    %187 = arith.addf %185, %186 : vector<22x128xf32>
    %c1_52 = arith.constant 1 : index
    %c0_53 = arith.constant 0 : index
    %c0_54 = arith.constant 0 : index
    %188 = vector.load %arg3[%c1_52, %c0_53, %c0_54] : memref<6x3x128xf32, #tpu.memory_space<vmem>>, vector<1x3x128xf32>
    %189 = vector.shape_cast %188 : vector<1x3x128xf32> to vector<3x128xf32>
    %cst_55 = arith.constant dense<0.000000e+00> : vector<22x128xf32>
    %190 = tpu.matmul %16, %187, %cst_55 {dimension_numbers = #tpu.dot_dimension_numbers<[1], [0], [0], [1], [0, 0, 1, 1], [], []>} : vector<22x22xf32>, vector<22x128xf32>, vector<22x128xf32> -> vector<22x128xf32>
    %cst_56 = arith.constant dense<0.000000e+00> : vector<22x128xf32>
    %191 = tpu.matmul %21, %187, %cst_56 {dimension_numbers = #tpu.dot_dimension_numbers<[1], [0], [0], [1], [0, 0, 1, 1], [], []>} : vector<22x22xf32>, vector<22x128xf32>, vector<22x128xf32> -> vector<22x128xf32>
    %192 = vector.extract_strided_slice %189 {offsets = [0, 0], sizes = [1, 128], strides = [1, 1]} : vector<3x128xf32> to vector<1x128xf32>
    %193 = vector.broadcast %192 : vector<1x128xf32> to vector<22x128xf32>
    %194 = arith.mulf %190, %193 : vector<22x128xf32>
    %195 = vector.extract_strided_slice %189 {offsets = [1, 0], sizes = [1, 128], strides = [1, 1]} : vector<3x128xf32> to vector<1x128xf32>
    %196 = vector.broadcast %195 : vector<1x128xf32> to vector<22x128xf32>
    %197 = arith.mulf %187, %196 : vector<22x128xf32>
    %198 = arith.addf %194, %197 : vector<22x128xf32>
    %199 = vector.extract_strided_slice %189 {offsets = [2, 0], sizes = [1, 128], strides = [1, 1]} : vector<3x128xf32> to vector<1x128xf32>
    %200 = vector.broadcast %199 : vector<1x128xf32> to vector<22x128xf32>
    %201 = arith.mulf %191, %200 : vector<22x128xf32>
    %202 = arith.addf %198, %201 : vector<22x128xf32>
    %203 = vector.broadcast %146 : vector<1x128xf32> to vector<22x128xf32>
    %204 = arith.addf %202, %203 : vector<22x128xf32>
    %cst_57 = arith.constant 0.000000e+00 : f32
    %205 = vector.broadcast %cst_57 : f32 to vector<22x128xf32>
    %206 = arith.cmpf oge, %204, %205 : vector<22x128xf32>
    %207 = vector.broadcast %152 : vector<1x128xf32> to vector<22x128xf32>
    %208 = arith.mulf %207, %204 : vector<22x128xf32>
    %209 = arith.select %206, %204, %208 : vector<22x128xi1>, vector<22x128xf32>
    %210 = vector.shape_cast %209 : vector<22x128xf32> to vector<1x22x128xf32>
    %cst_58 = arith.constant dense<0.000000e+00> : vector<1xf32>
    %211 = vector.multi_reduction <add>, %210, %cst_58 [1, 2] : vector<1x22x128xf32> to vector<1xf32>
    %212 = vector.shape_cast %211 : vector<1xf32> to vector<1x1x1xf32>
    %213 = vector.extract %212[0, 0, 0] : f32 from vector<1x1x1xf32>
    %cst_59 = arith.constant 0.00142045459 : f32
    %214 = arith.mulf %213, %cst_59 : f32
    %215 = arith.mulf %209, %209 : vector<22x128xf32>
    %216 = vector.shape_cast %215 : vector<22x128xf32> to vector<1x22x128xf32>
    %cst_60 = arith.constant dense<0.000000e+00> : vector<1xf32>
    %217 = vector.multi_reduction <add>, %216, %cst_60 [1, 2] : vector<1x22x128xf32> to vector<1xf32>
    %218 = vector.shape_cast %217 : vector<1xf32> to vector<1x1x1xf32>
    %219 = vector.extract %218[0, 0, 0] : f32 from vector<1x1x1xf32>
    %cst_61 = arith.constant 0.00142045459 : f32
    %220 = arith.mulf %219, %cst_61 : f32
    %221 = arith.mulf %214, %214 : f32
    %222 = arith.subf %220, %221 : f32
    %cst_62 = arith.constant 0.000000e+00 : f32
    %223 = arith.maximumf %222, %cst_62 : f32
    %224 = vector.broadcast %214 : f32 to vector<22x128xf32>
    %225 = arith.subf %209, %224 : vector<22x128xf32>
    %cst_63 = arith.constant 1.000000e-10 : f32
    %226 = arith.addf %223, %cst_63 : f32
    %227 = math.rsqrt %226 : f32
    %228 = vector.broadcast %227 : f32 to vector<22x128xf32>
    %229 = arith.mulf %225, %228 : vector<22x128xf32>
    %230 = vector.broadcast %147 : vector<1x128xf32> to vector<22x128xf32>
    %231 = arith.mulf %229, %230 : vector<22x128xf32>
    %232 = vector.broadcast %148 : vector<1x128xf32> to vector<22x128xf32>
    %233 = arith.addf %231, %232 : vector<22x128xf32>
    %234 = arith.truncf %233 : vector<22x128xf32> to vector<22x128xbf16>
    %c1_64 = arith.constant 1 : index
    %c0_65 = arith.constant 0 : index
    %c0_66 = arith.constant 0 : index
    %235 = vector.load %arg4[%c1_64, %c0_65, %c0_66] : memref<6x128x128xbf16, #tpu.memory_space<vmem>>, vector<1x128x128xbf16>
    %236 = vector.shape_cast %235 : vector<1x128x128xbf16> to vector<128x128xbf16>
    %cst_67 = arith.constant dense<0.000000e+00> : vector<22x128xf32>
    %237 = tpu.matmul %234, %236, %cst_67 {dimension_numbers = #tpu.dot_dimension_numbers<[1], [0], [0], [1], [0, 0, 1, 1], [], []>} : vector<22x128xbf16>, vector<128x128xbf16>, vector<22x128xf32> -> vector<22x128xf32>
    %238 = arith.addf %134, %237 : vector<22x128xf32>
    %239 = vector.broadcast %149 : vector<1x128xf32> to vector<22x128xf32>
    %240 = arith.addf %238, %239 : vector<22x128xf32>
    %c1_68 = arith.constant 1 : index
    %c0_69 = arith.constant 0 : index
    %c0_70 = arith.constant 0 : index
    %241 = vector.load %arg5[%c1_68, %c0_69, %c0_70] : memref<6x128x128xbf16, #tpu.memory_space<vmem>>, vector<1x128x128xbf16>
    %242 = vector.shape_cast %241 : vector<1x128x128xbf16> to vector<128x128xbf16>
    %cst_71 = arith.constant dense<0.000000e+00> : vector<22x128xf32>
    %243 = tpu.matmul %234, %242, %cst_71 {dimension_numbers = #tpu.dot_dimension_numbers<[1], [0], [0], [1], [0, 0, 1, 1], [], []>} : vector<22x128xbf16>, vector<128x128xbf16>, vector<22x128xf32> -> vector<22x128xf32>
    %244 = arith.addf %140, %243 : vector<22x128xf32>
    %245 = vector.broadcast %150 : vector<1x128xf32> to vector<22x128xf32>
    %246 = arith.addf %244, %245 : vector<22x128xf32>
    %c2 = arith.constant 2 : index
    %c0_72 = arith.constant 0 : index
    %c0_73 = arith.constant 0 : index
    %247 = vector.load %arg6[%c2, %c0_72, %c0_73] : memref<6x10x128xf32, #tpu.memory_space<vmem>>, vector<1x10x128xf32>
    %248 = vector.shape_cast %247 : vector<1x10x128xf32> to vector<10x128xf32>
    %249 = vector.extract_strided_slice %248 {offsets = [0, 0], sizes = [1, 128], strides = [1, 1]} : vector<10x128xf32> to vector<1x128xf32>
    %250 = vector.extract_strided_slice %248 {offsets = [1, 0], sizes = [1, 128], strides = [1, 1]} : vector<10x128xf32> to vector<1x128xf32>
    %251 = vector.extract_strided_slice %248 {offsets = [2, 0], sizes = [1, 128], strides = [1, 1]} : vector<10x128xf32> to vector<1x128xf32>
    %252 = vector.extract_strided_slice %248 {offsets = [3, 0], sizes = [1, 128], strides = [1, 1]} : vector<10x128xf32> to vector<1x128xf32>
    %253 = vector.extract_strided_slice %248 {offsets = [4, 0], sizes = [1, 128], strides = [1, 1]} : vector<10x128xf32> to vector<1x128xf32>
    %254 = vector.extract_strided_slice %248 {offsets = [5, 0], sizes = [1, 128], strides = [1, 1]} : vector<10x128xf32> to vector<1x128xf32>
    %255 = vector.extract_strided_slice %248 {offsets = [6, 0], sizes = [1, 128], strides = [1, 1]} : vector<10x128xf32> to vector<1x128xf32>
    %256 = vector.extract_strided_slice %248 {offsets = [7, 0], sizes = [1, 128], strides = [1, 1]} : vector<10x128xf32> to vector<1x128xf32>
    %257 = vector.extract_strided_slice %248 {offsets = [8, 0], sizes = [1, 128], strides = [1, 1]} : vector<10x128xf32> to vector<1x128xf32>
    %258 = vector.extract_strided_slice %248 {offsets = [9, 0], sizes = [1, 128], strides = [1, 1]} : vector<10x128xf32> to vector<1x128xf32>
    %259 = arith.truncf %246 : vector<22x128xf32> to vector<22x128xbf16>
    %c2_74 = arith.constant 2 : index
    %c0_75 = arith.constant 0 : index
    %c0_76 = arith.constant 0 : index
    %260 = vector.load %arg2[%c2_74, %c0_75, %c0_76] : memref<6x128x128xbf16, #tpu.memory_space<vmem>>, vector<1x128x128xbf16>
    %261 = vector.shape_cast %260 : vector<1x128x128xbf16> to vector<128x128xbf16>
    %cst_77 = arith.constant dense<0.000000e+00> : vector<22x128xf32>
    %262 = tpu.matmul %259, %261, %cst_77 {dimension_numbers = #tpu.dot_dimension_numbers<[1], [0], [0], [1], [0, 0, 1, 1], [], []>} : vector<22x128xbf16>, vector<128x128xbf16>, vector<22x128xf32> -> vector<22x128xf32>
    %263 = vector.broadcast %249 : vector<1x128xf32> to vector<22x128xf32>
    %264 = arith.addf %262, %263 : vector<22x128xf32>
    %cst_78 = arith.constant 0.000000e+00 : f32
    %265 = vector.broadcast %cst_78 : f32 to vector<22x128xf32>
    %266 = arith.cmpf oge, %264, %265 : vector<22x128xf32>
    %267 = vector.broadcast %257 : vector<1x128xf32> to vector<22x128xf32>
    %268 = arith.mulf %267, %264 : vector<22x128xf32>
    %269 = arith.select %266, %264, %268 : vector<22x128xi1>, vector<22x128xf32>
    %270 = vector.shape_cast %269 : vector<22x128xf32> to vector<1x22x128xf32>
    %cst_79 = arith.constant dense<0.000000e+00> : vector<1xf32>
    %271 = vector.multi_reduction <add>, %270, %cst_79 [1, 2] : vector<1x22x128xf32> to vector<1xf32>
    %272 = vector.shape_cast %271 : vector<1xf32> to vector<1x1x1xf32>
    %273 = vector.extract %272[0, 0, 0] : f32 from vector<1x1x1xf32>
    %cst_80 = arith.constant 0.00142045459 : f32
    %274 = arith.mulf %273, %cst_80 : f32
    %275 = arith.mulf %269, %269 : vector<22x128xf32>
    %276 = vector.shape_cast %275 : vector<22x128xf32> to vector<1x22x128xf32>
    %cst_81 = arith.constant dense<0.000000e+00> : vector<1xf32>
    %277 = vector.multi_reduction <add>, %276, %cst_81 [1, 2] : vector<1x22x128xf32> to vector<1xf32>
    %278 = vector.shape_cast %277 : vector<1xf32> to vector<1x1x1xf32>
    %279 = vector.extract %278[0, 0, 0] : f32 from vector<1x1x1xf32>
    %cst_82 = arith.constant 0.00142045459 : f32
    %280 = arith.mulf %279, %cst_82 : f32
    %281 = arith.mulf %274, %274 : f32
    %282 = arith.subf %280, %281 : f32
    %cst_83 = arith.constant 0.000000e+00 : f32
    %283 = arith.maximumf %282, %cst_83 : f32
    %284 = vector.broadcast %274 : f32 to vector<22x128xf32>
    %285 = arith.subf %269, %284 : vector<22x128xf32>
    %cst_84 = arith.constant 1.000000e-10 : f32
    %286 = arith.addf %283, %cst_84 : f32
    %287 = math.rsqrt %286 : f32
    %288 = vector.broadcast %287 : f32 to vector<22x128xf32>
    %289 = arith.mulf %285, %288 : vector<22x128xf32>
    %290 = vector.broadcast %250 : vector<1x128xf32> to vector<22x128xf32>
    %291 = arith.mulf %289, %290 : vector<22x128xf32>
    %292 = vector.broadcast %251 : vector<1x128xf32> to vector<22x128xf32>
    %293 = arith.addf %291, %292 : vector<22x128xf32>
    %c2_85 = arith.constant 2 : index
    %c0_86 = arith.constant 0 : index
    %c0_87 = arith.constant 0 : index
    %294 = vector.load %arg3[%c2_85, %c0_86, %c0_87] : memref<6x3x128xf32, #tpu.memory_space<vmem>>, vector<1x3x128xf32>
    %295 = vector.shape_cast %294 : vector<1x3x128xf32> to vector<3x128xf32>
    %cst_88 = arith.constant dense<0.000000e+00> : vector<22x128xf32>
    %296 = tpu.matmul %26, %293, %cst_88 {dimension_numbers = #tpu.dot_dimension_numbers<[1], [0], [0], [1], [0, 0, 1, 1], [], []>} : vector<22x22xf32>, vector<22x128xf32>, vector<22x128xf32> -> vector<22x128xf32>
    %cst_89 = arith.constant dense<0.000000e+00> : vector<22x128xf32>
    %297 = tpu.matmul %31, %293, %cst_89 {dimension_numbers = #tpu.dot_dimension_numbers<[1], [0], [0], [1], [0, 0, 1, 1], [], []>} : vector<22x22xf32>, vector<22x128xf32>, vector<22x128xf32> -> vector<22x128xf32>
    %298 = vector.extract_strided_slice %295 {offsets = [0, 0], sizes = [1, 128], strides = [1, 1]} : vector<3x128xf32> to vector<1x128xf32>
    %299 = vector.broadcast %298 : vector<1x128xf32> to vector<22x128xf32>
    %300 = arith.mulf %296, %299 : vector<22x128xf32>
    %301 = vector.extract_strided_slice %295 {offsets = [1, 0], sizes = [1, 128], strides = [1, 1]} : vector<3x128xf32> to vector<1x128xf32>
    %302 = vector.broadcast %301 : vector<1x128xf32> to vector<22x128xf32>
    %303 = arith.mulf %293, %302 : vector<22x128xf32>
    %304 = arith.addf %300, %303 : vector<22x128xf32>
    %305 = vector.extract_strided_slice %295 {offsets = [2, 0], sizes = [1, 128], strides = [1, 1]} : vector<3x128xf32> to vector<1x128xf32>
    %306 = vector.broadcast %305 : vector<1x128xf32> to vector<22x128xf32>
    %307 = arith.mulf %297, %306 : vector<22x128xf32>
    %308 = arith.addf %304, %307 : vector<22x128xf32>
    %309 = vector.broadcast %252 : vector<1x128xf32> to vector<22x128xf32>
    %310 = arith.addf %308, %309 : vector<22x128xf32>
    %cst_90 = arith.constant 0.000000e+00 : f32
    %311 = vector.broadcast %cst_90 : f32 to vector<22x128xf32>
    %312 = arith.cmpf oge, %310, %311 : vector<22x128xf32>
    %313 = vector.broadcast %258 : vector<1x128xf32> to vector<22x128xf32>
    %314 = arith.mulf %313, %310 : vector<22x128xf32>
    %315 = arith.select %312, %310, %314 : vector<22x128xi1>, vector<22x128xf32>
    %316 = vector.shape_cast %315 : vector<22x128xf32> to vector<1x22x128xf32>
    %cst_91 = arith.constant dense<0.000000e+00> : vector<1xf32>
    %317 = vector.multi_reduction <add>, %316, %cst_91 [1, 2] : vector<1x22x128xf32> to vector<1xf32>
    %318 = vector.shape_cast %317 : vector<1xf32> to vector<1x1x1xf32>
    %319 = vector.extract %318[0, 0, 0] : f32 from vector<1x1x1xf32>
    %cst_92 = arith.constant 0.00142045459 : f32
    %320 = arith.mulf %319, %cst_92 : f32
    %321 = arith.mulf %315, %315 : vector<22x128xf32>
    %322 = vector.shape_cast %321 : vector<22x128xf32> to vector<1x22x128xf32>
    %cst_93 = arith.constant dense<0.000000e+00> : vector<1xf32>
    %323 = vector.multi_reduction <add>, %322, %cst_93 [1, 2] : vector<1x22x128xf32> to vector<1xf32>
    %324 = vector.shape_cast %323 : vector<1xf32> to vector<1x1x1xf32>
    %325 = vector.extract %324[0, 0, 0] : f32 from vector<1x1x1xf32>
    %cst_94 = arith.constant 0.00142045459 : f32
    %326 = arith.mulf %325, %cst_94 : f32
    %327 = arith.mulf %320, %320 : f32
    %328 = arith.subf %326, %327 : f32
    %cst_95 = arith.constant 0.000000e+00 : f32
    %329 = arith.maximumf %328, %cst_95 : f32
    %330 = vector.broadcast %320 : f32 to vector<22x128xf32>
    %331 = arith.subf %315, %330 : vector<22x128xf32>
    %cst_96 = arith.constant 1.000000e-10 : f32
    %332 = arith.addf %329, %cst_96 : f32
    %333 = math.rsqrt %332 : f32
    %334 = vector.broadcast %333 : f32 to vector<22x128xf32>
    %335 = arith.mulf %331, %334 : vector<22x128xf32>
    %336 = vector.broadcast %253 : vector<1x128xf32> to vector<22x128xf32>
    %337 = arith.mulf %335, %336 : vector<22x128xf32>
    %338 = vector.broadcast %254 : vector<1x128xf32> to vector<22x128xf32>
    %339 = arith.addf %337, %338 : vector<22x128xf32>
    %340 = arith.truncf %339 : vector<22x128xf32> to vector<22x128xbf16>
    %c2_97 = arith.constant 2 : index
    %c0_98 = arith.constant 0 : index
    %c0_99 = arith.constant 0 : index
    %341 = vector.load %arg4[%c2_97, %c0_98, %c0_99] : memref<6x128x128xbf16, #tpu.memory_space<vmem>>, vector<1x128x128xbf16>
    %342 = vector.shape_cast %341 : vector<1x128x128xbf16> to vector<128x128xbf16>
    %cst_100 = arith.constant dense<0.000000e+00> : vector<22x128xf32>
    %343 = tpu.matmul %340, %342, %cst_100 {dimension_numbers = #tpu.dot_dimension_numbers<[1], [0], [0], [1], [0, 0, 1, 1], [], []>} : vector<22x128xbf16>, vector<128x128xbf16>, vector<22x128xf32> -> vector<22x128xf32>
    %344 = arith.addf %240, %343 : vector<22x128xf32>
    %345 = vector.broadcast %255 : vector<1x128xf32> to vector<22x128xf32>
    %346 = arith.addf %344, %345 : vector<22x128xf32>
    %c2_101 = arith.constant 2 : index
    %c0_102 = arith.constant 0 : index
    %c0_103 = arith.constant 0 : index
    %347 = vector.load %arg5[%c2_101, %c0_102, %c0_103] : memref<6x128x128xbf16, #tpu.memory_space<vmem>>, vector<1x128x128xbf16>
    %348 = vector.shape_cast %347 : vector<1x128x128xbf16> to vector<128x128xbf16>
    %cst_104 = arith.constant dense<0.000000e+00> : vector<22x128xf32>
    %349 = tpu.matmul %340, %348, %cst_104 {dimension_numbers = #tpu.dot_dimension_numbers<[1], [0], [0], [1], [0, 0, 1, 1], [], []>} : vector<22x128xbf16>, vector<128x128xbf16>, vector<22x128xf32> -> vector<22x128xf32>
    %350 = arith.addf %246, %349 : vector<22x128xf32>
    %351 = vector.broadcast %256 : vector<1x128xf32> to vector<22x128xf32>
    %352 = arith.addf %350, %351 : vector<22x128xf32>
    %c3 = arith.constant 3 : index
    %c0_105 = arith.constant 0 : index
    %c0_106 = arith.constant 0 : index
    %353 = vector.load %arg6[%c3, %c0_105, %c0_106] : memref<6x10x128xf32, #tpu.memory_space<vmem>>, vector<1x10x128xf32>
    %354 = vector.shape_cast %353 : vector<1x10x128xf32> to vector<10x128xf32>
    %355 = vector.extract_strided_slice %354 {offsets = [0, 0], sizes = [1, 128], strides = [1, 1]} : vector<10x128xf32> to vector<1x128xf32>
    %356 = vector.extract_strided_slice %354 {offsets = [1, 0], sizes = [1, 128], strides = [1, 1]} : vector<10x128xf32> to vector<1x128xf32>
    %357 = vector.extract_strided_slice %354 {offsets = [2, 0], sizes = [1, 128], strides = [1, 1]} : vector<10x128xf32> to vector<1x128xf32>
    %358 = vector.extract_strided_slice %354 {offsets = [3, 0], sizes = [1, 128], strides = [1, 1]} : vector<10x128xf32> to vector<1x128xf32>
    %359 = vector.extract_strided_slice %354 {offsets = [4, 0], sizes = [1, 128], strides = [1, 1]} : vector<10x128xf32> to vector<1x128xf32>
    %360 = vector.extract_strided_slice %354 {offsets = [5, 0], sizes = [1, 128], strides = [1, 1]} : vector<10x128xf32> to vector<1x128xf32>
    %361 = vector.extract_strided_slice %354 {offsets = [6, 0], sizes = [1, 128], strides = [1, 1]} : vector<10x128xf32> to vector<1x128xf32>
    %362 = vector.extract_strided_slice %354 {offsets = [7, 0], sizes = [1, 128], strides = [1, 1]} : vector<10x128xf32> to vector<1x128xf32>
    %363 = vector.extract_strided_slice %354 {offsets = [8, 0], sizes = [1, 128], strides = [1, 1]} : vector<10x128xf32> to vector<1x128xf32>
    %364 = vector.extract_strided_slice %354 {offsets = [9, 0], sizes = [1, 128], strides = [1, 1]} : vector<10x128xf32> to vector<1x128xf32>
    %365 = arith.truncf %352 : vector<22x128xf32> to vector<22x128xbf16>
    %c3_107 = arith.constant 3 : index
    %c0_108 = arith.constant 0 : index
    %c0_109 = arith.constant 0 : index
    %366 = vector.load %arg2[%c3_107, %c0_108, %c0_109] : memref<6x128x128xbf16, #tpu.memory_space<vmem>>, vector<1x128x128xbf16>
    %367 = vector.shape_cast %366 : vector<1x128x128xbf16> to vector<128x128xbf16>
    %cst_110 = arith.constant dense<0.000000e+00> : vector<22x128xf32>
    %368 = tpu.matmul %365, %367, %cst_110 {dimension_numbers = #tpu.dot_dimension_numbers<[1], [0], [0], [1], [0, 0, 1, 1], [], []>} : vector<22x128xbf16>, vector<128x128xbf16>, vector<22x128xf32> -> vector<22x128xf32>
    %369 = vector.broadcast %355 : vector<1x128xf32> to vector<22x128xf32>
    %370 = arith.addf %368, %369 : vector<22x128xf32>
    %cst_111 = arith.constant 0.000000e+00 : f32
    %371 = vector.broadcast %cst_111 : f32 to vector<22x128xf32>
    %372 = arith.cmpf oge, %370, %371 : vector<22x128xf32>
    %373 = vector.broadcast %363 : vector<1x128xf32> to vector<22x128xf32>
    %374 = arith.mulf %373, %370 : vector<22x128xf32>
    %375 = arith.select %372, %370, %374 : vector<22x128xi1>, vector<22x128xf32>
    %376 = vector.shape_cast %375 : vector<22x128xf32> to vector<1x22x128xf32>
    %cst_112 = arith.constant dense<0.000000e+00> : vector<1xf32>
    %377 = vector.multi_reduction <add>, %376, %cst_112 [1, 2] : vector<1x22x128xf32> to vector<1xf32>
    %378 = vector.shape_cast %377 : vector<1xf32> to vector<1x1x1xf32>
    %379 = vector.extract %378[0, 0, 0] : f32 from vector<1x1x1xf32>
    %cst_113 = arith.constant 0.00142045459 : f32
    %380 = arith.mulf %379, %cst_113 : f32
    %381 = arith.mulf %375, %375 : vector<22x128xf32>
    %382 = vector.shape_cast %381 : vector<22x128xf32> to vector<1x22x128xf32>
    %cst_114 = arith.constant dense<0.000000e+00> : vector<1xf32>
    %383 = vector.multi_reduction <add>, %382, %cst_114 [1, 2] : vector<1x22x128xf32> to vector<1xf32>
    %384 = vector.shape_cast %383 : vector<1xf32> to vector<1x1x1xf32>
    %385 = vector.extract %384[0, 0, 0] : f32 from vector<1x1x1xf32>
    %cst_115 = arith.constant 0.00142045459 : f32
    %386 = arith.mulf %385, %cst_115 : f32
    %387 = arith.mulf %380, %380 : f32
    %388 = arith.subf %386, %387 : f32
    %cst_116 = arith.constant 0.000000e+00 : f32
    %389 = arith.maximumf %388, %cst_116 : f32
    %390 = vector.broadcast %380 : f32 to vector<22x128xf32>
    %391 = arith.subf %375, %390 : vector<22x128xf32>
    %cst_117 = arith.constant 1.000000e-10 : f32
    %392 = arith.addf %389, %cst_117 : f32
    %393 = math.rsqrt %392 : f32
    %394 = vector.broadcast %393 : f32 to vector<22x128xf32>
    %395 = arith.mulf %391, %394 : vector<22x128xf32>
    %396 = vector.broadcast %356 : vector<1x128xf32> to vector<22x128xf32>
    %397 = arith.mulf %395, %396 : vector<22x128xf32>
    %398 = vector.broadcast %357 : vector<1x128xf32> to vector<22x128xf32>
    %399 = arith.addf %397, %398 : vector<22x128xf32>
    %c3_118 = arith.constant 3 : index
    %c0_119 = arith.constant 0 : index
    %c0_120 = arith.constant 0 : index
    %400 = vector.load %arg3[%c3_118, %c0_119, %c0_120] : memref<6x3x128xf32, #tpu.memory_space<vmem>>, vector<1x3x128xf32>
    %401 = vector.shape_cast %400 : vector<1x3x128xf32> to vector<3x128xf32>
    %cst_121 = arith.constant dense<0.000000e+00> : vector<22x128xf32>
    %402 = tpu.matmul %6, %399, %cst_121 {dimension_numbers = #tpu.dot_dimension_numbers<[1], [0], [0], [1], [0, 0, 1, 1], [], []>} : vector<22x22xf32>, vector<22x128xf32>, vector<22x128xf32> -> vector<22x128xf32>
    %cst_122 = arith.constant dense<0.000000e+00> : vector<22x128xf32>
    %403 = tpu.matmul %11, %399, %cst_122 {dimension_numbers = #tpu.dot_dimension_numbers<[1], [0], [0], [1], [0, 0, 1, 1], [], []>} : vector<22x22xf32>, vector<22x128xf32>, vector<22x128xf32> -> vector<22x128xf32>
    %404 = vector.extract_strided_slice %401 {offsets = [0, 0], sizes = [1, 128], strides = [1, 1]} : vector<3x128xf32> to vector<1x128xf32>
    %405 = vector.broadcast %404 : vector<1x128xf32> to vector<22x128xf32>
    %406 = arith.mulf %402, %405 : vector<22x128xf32>
    %407 = vector.extract_strided_slice %401 {offsets = [1, 0], sizes = [1, 128], strides = [1, 1]} : vector<3x128xf32> to vector<1x128xf32>
    %408 = vector.broadcast %407 : vector<1x128xf32> to vector<22x128xf32>
    %409 = arith.mulf %399, %408 : vector<22x128xf32>
    %410 = arith.addf %406, %409 : vector<22x128xf32>
    %411 = vector.extract_strided_slice %401 {offsets = [2, 0], sizes = [1, 128], strides = [1, 1]} : vector<3x128xf32> to vector<1x128xf32>
    %412 = vector.broadcast %411 : vector<1x128xf32> to vector<22x128xf32>
    %413 = arith.mulf %403, %412 : vector<22x128xf32>
    %414 = arith.addf %410, %413 : vector<22x128xf32>
    %415 = vector.broadcast %358 : vector<1x128xf32> to vector<22x128xf32>
    %416 = arith.addf %414, %415 : vector<22x128xf32>
    %cst_123 = arith.constant 0.000000e+00 : f32
    %417 = vector.broadcast %cst_123 : f32 to vector<22x128xf32>
    %418 = arith.cmpf oge, %416, %417 : vector<22x128xf32>
    %419 = vector.broadcast %364 : vector<1x128xf32> to vector<22x128xf32>
    %420 = arith.mulf %419, %416 : vector<22x128xf32>
    %421 = arith.select %418, %416, %420 : vector<22x128xi1>, vector<22x128xf32>
    %422 = vector.shape_cast %421 : vector<22x128xf32> to vector<1x22x128xf32>
    %cst_124 = arith.constant dense<0.000000e+00> : vector<1xf32>
    %423 = vector.multi_reduction <add>, %422, %cst_124 [1, 2] : vector<1x22x128xf32> to vector<1xf32>
    %424 = vector.shape_cast %423 : vector<1xf32> to vector<1x1x1xf32>
    %425 = vector.extract %424[0, 0, 0] : f32 from vector<1x1x1xf32>
    %cst_125 = arith.constant 0.00142045459 : f32
    %426 = arith.mulf %425, %cst_125 : f32
    %427 = arith.mulf %421, %421 : vector<22x128xf32>
    %428 = vector.shape_cast %427 : vector<22x128xf32> to vector<1x22x128xf32>
    %cst_126 = arith.constant dense<0.000000e+00> : vector<1xf32>
    %429 = vector.multi_reduction <add>, %428, %cst_126 [1, 2] : vector<1x22x128xf32> to vector<1xf32>
    %430 = vector.shape_cast %429 : vector<1xf32> to vector<1x1x1xf32>
    %431 = vector.extract %430[0, 0, 0] : f32 from vector<1x1x1xf32>
    %cst_127 = arith.constant 0.00142045459 : f32
    %432 = arith.mulf %431, %cst_127 : f32
    %433 = arith.mulf %426, %426 : f32
    %434 = arith.subf %432, %433 : f32
    %cst_128 = arith.constant 0.000000e+00 : f32
    %435 = arith.maximumf %434, %cst_128 : f32
    %436 = vector.broadcast %426 : f32 to vector<22x128xf32>
    %437 = arith.subf %421, %436 : vector<22x128xf32>
    %cst_129 = arith.constant 1.000000e-10 : f32
    %438 = arith.addf %435, %cst_129 : f32
    %439 = math.rsqrt %438 : f32
    %440 = vector.broadcast %439 : f32 to vector<22x128xf32>
    %441 = arith.mulf %437, %440 : vector<22x128xf32>
    %442 = vector.broadcast %359 : vector<1x128xf32> to vector<22x128xf32>
    %443 = arith.mulf %441, %442 : vector<22x128xf32>
    %444 = vector.broadcast %360 : vector<1x128xf32> to vector<22x128xf32>
    %445 = arith.addf %443, %444 : vector<22x128xf32>
    %446 = arith.truncf %445 : vector<22x128xf32> to vector<22x128xbf16>
    %c3_130 = arith.constant 3 : index
    %c0_131 = arith.constant 0 : index
    %c0_132 = arith.constant 0 : index
    %447 = vector.load %arg4[%c3_130, %c0_131, %c0_132] : memref<6x128x128xbf16, #tpu.memory_space<vmem>>, vector<1x128x128xbf16>
    %448 = vector.shape_cast %447 : vector<1x128x128xbf16> to vector<128x128xbf16>
    %cst_133 = arith.constant dense<0.000000e+00> : vector<22x128xf32>
    %449 = tpu.matmul %446, %448, %cst_133 {dimension_numbers = #tpu.dot_dimension_numbers<[1], [0], [0], [1], [0, 0, 1, 1], [], []>} : vector<22x128xbf16>, vector<128x128xbf16>, vector<22x128xf32> -> vector<22x128xf32>
    %450 = arith.addf %346, %449 : vector<22x128xf32>
    %451 = vector.broadcast %361 : vector<1x128xf32> to vector<22x128xf32>
    %452 = arith.addf %450, %451 : vector<22x128xf32>
    %c3_134 = arith.constant 3 : index
    %c0_135 = arith.constant 0 : index
    %c0_136 = arith.constant 0 : index
    %453 = vector.load %arg5[%c3_134, %c0_135, %c0_136] : memref<6x128x128xbf16, #tpu.memory_space<vmem>>, vector<1x128x128xbf16>
    %454 = vector.shape_cast %453 : vector<1x128x128xbf16> to vector<128x128xbf16>
    %cst_137 = arith.constant dense<0.000000e+00> : vector<22x128xf32>
    %455 = tpu.matmul %446, %454, %cst_137 {dimension_numbers = #tpu.dot_dimension_numbers<[1], [0], [0], [1], [0, 0, 1, 1], [], []>} : vector<22x128xbf16>, vector<128x128xbf16>, vector<22x128xf32> -> vector<22x128xf32>
    %456 = arith.addf %352, %455 : vector<22x128xf32>
    %457 = vector.broadcast %362 : vector<1x128xf32> to vector<22x128xf32>
    %458 = arith.addf %456, %457 : vector<22x128xf32>
    %c4 = arith.constant 4 : index
    %c0_138 = arith.constant 0 : index
    %c0_139 = arith.constant 0 : index
    %459 = vector.load %arg6[%c4, %c0_138, %c0_139] : memref<6x10x128xf32, #tpu.memory_space<vmem>>, vector<1x10x128xf32>
    %460 = vector.shape_cast %459 : vector<1x10x128xf32> to vector<10x128xf32>
    %461 = vector.extract_strided_slice %460 {offsets = [0, 0], sizes = [1, 128], strides = [1, 1]} : vector<10x128xf32> to vector<1x128xf32>
    %462 = vector.extract_strided_slice %460 {offsets = [1, 0], sizes = [1, 128], strides = [1, 1]} : vector<10x128xf32> to vector<1x128xf32>
    %463 = vector.extract_strided_slice %460 {offsets = [2, 0], sizes = [1, 128], strides = [1, 1]} : vector<10x128xf32> to vector<1x128xf32>
    %464 = vector.extract_strided_slice %460 {offsets = [3, 0], sizes = [1, 128], strides = [1, 1]} : vector<10x128xf32> to vector<1x128xf32>
    %465 = vector.extract_strided_slice %460 {offsets = [4, 0], sizes = [1, 128], strides = [1, 1]} : vector<10x128xf32> to vector<1x128xf32>
    %466 = vector.extract_strided_slice %460 {offsets = [5, 0], sizes = [1, 128], strides = [1, 1]} : vector<10x128xf32> to vector<1x128xf32>
    %467 = vector.extract_strided_slice %460 {offsets = [6, 0], sizes = [1, 128], strides = [1, 1]} : vector<10x128xf32> to vector<1x128xf32>
    %468 = vector.extract_strided_slice %460 {offsets = [7, 0], sizes = [1, 128], strides = [1, 1]} : vector<10x128xf32> to vector<1x128xf32>
    %469 = vector.extract_strided_slice %460 {offsets = [8, 0], sizes = [1, 128], strides = [1, 1]} : vector<10x128xf32> to vector<1x128xf32>
    %470 = vector.extract_strided_slice %460 {offsets = [9, 0], sizes = [1, 128], strides = [1, 1]} : vector<10x128xf32> to vector<1x128xf32>
    %471 = arith.truncf %458 : vector<22x128xf32> to vector<22x128xbf16>
    %c4_140 = arith.constant 4 : index
    %c0_141 = arith.constant 0 : index
    %c0_142 = arith.constant 0 : index
    %472 = vector.load %arg2[%c4_140, %c0_141, %c0_142] : memref<6x128x128xbf16, #tpu.memory_space<vmem>>, vector<1x128x128xbf16>
    %473 = vector.shape_cast %472 : vector<1x128x128xbf16> to vector<128x128xbf16>
    %cst_143 = arith.constant dense<0.000000e+00> : vector<22x128xf32>
    %474 = tpu.matmul %471, %473, %cst_143 {dimension_numbers = #tpu.dot_dimension_numbers<[1], [0], [0], [1], [0, 0, 1, 1], [], []>} : vector<22x128xbf16>, vector<128x128xbf16>, vector<22x128xf32> -> vector<22x128xf32>
    %475 = vector.broadcast %461 : vector<1x128xf32> to vector<22x128xf32>
    %476 = arith.addf %474, %475 : vector<22x128xf32>
    %cst_144 = arith.constant 0.000000e+00 : f32
    %477 = vector.broadcast %cst_144 : f32 to vector<22x128xf32>
    %478 = arith.cmpf oge, %476, %477 : vector<22x128xf32>
    %479 = vector.broadcast %469 : vector<1x128xf32> to vector<22x128xf32>
    %480 = arith.mulf %479, %476 : vector<22x128xf32>
    %481 = arith.select %478, %476, %480 : vector<22x128xi1>, vector<22x128xf32>
    %482 = vector.shape_cast %481 : vector<22x128xf32> to vector<1x22x128xf32>
    %cst_145 = arith.constant dense<0.000000e+00> : vector<1xf32>
    %483 = vector.multi_reduction <add>, %482, %cst_145 [1, 2] : vector<1x22x128xf32> to vector<1xf32>
    %484 = vector.shape_cast %483 : vector<1xf32> to vector<1x1x1xf32>
    %485 = vector.extract %484[0, 0, 0] : f32 from vector<1x1x1xf32>
    %cst_146 = arith.constant 0.00142045459 : f32
    %486 = arith.mulf %485, %cst_146 : f32
    %487 = arith.mulf %481, %481 : vector<22x128xf32>
    %488 = vector.shape_cast %487 : vector<22x128xf32> to vector<1x22x128xf32>
    %cst_147 = arith.constant dense<0.000000e+00> : vector<1xf32>
    %489 = vector.multi_reduction <add>, %488, %cst_147 [1, 2] : vector<1x22x128xf32> to vector<1xf32>
    %490 = vector.shape_cast %489 : vector<1xf32> to vector<1x1x1xf32>
    %491 = vector.extract %490[0, 0, 0] : f32 from vector<1x1x1xf32>
    %cst_148 = arith.constant 0.00142045459 : f32
    %492 = arith.mulf %491, %cst_148 : f32
    %493 = arith.mulf %486, %486 : f32
    %494 = arith.subf %492, %493 : f32
    %cst_149 = arith.constant 0.000000e+00 : f32
    %495 = arith.maximumf %494, %cst_149 : f32
    %496 = vector.broadcast %486 : f32 to vector<22x128xf32>
    %497 = arith.subf %481, %496 : vector<22x128xf32>
    %cst_150 = arith.constant 1.000000e-10 : f32
    %498 = arith.addf %495, %cst_150 : f32
    %499 = math.rsqrt %498 : f32
    %500 = vector.broadcast %499 : f32 to vector<22x128xf32>
    %501 = arith.mulf %497, %500 : vector<22x128xf32>
    %502 = vector.broadcast %462 : vector<1x128xf32> to vector<22x128xf32>
    %503 = arith.mulf %501, %502 : vector<22x128xf32>
    %504 = vector.broadcast %463 : vector<1x128xf32> to vector<22x128xf32>
    %505 = arith.addf %503, %504 : vector<22x128xf32>
    %c4_151 = arith.constant 4 : index
    %c0_152 = arith.constant 0 : index
    %c0_153 = arith.constant 0 : index
    %506 = vector.load %arg3[%c4_151, %c0_152, %c0_153] : memref<6x3x128xf32, #tpu.memory_space<vmem>>, vector<1x3x128xf32>
    %507 = vector.shape_cast %506 : vector<1x3x128xf32> to vector<3x128xf32>
    %cst_154 = arith.constant dense<0.000000e+00> : vector<22x128xf32>
    %508 = tpu.matmul %16, %505, %cst_154 {dimension_numbers = #tpu.dot_dimension_numbers<[1], [0], [0], [1], [0, 0, 1, 1], [], []>} : vector<22x22xf32>, vector<22x128xf32>, vector<22x128xf32> -> vector<22x128xf32>
    %cst_155 = arith.constant dense<0.000000e+00> : vector<22x128xf32>
    %509 = tpu.matmul %21, %505, %cst_155 {dimension_numbers = #tpu.dot_dimension_numbers<[1], [0], [0], [1], [0, 0, 1, 1], [], []>} : vector<22x22xf32>, vector<22x128xf32>, vector<22x128xf32> -> vector<22x128xf32>
    %510 = vector.extract_strided_slice %507 {offsets = [0, 0], sizes = [1, 128], strides = [1, 1]} : vector<3x128xf32> to vector<1x128xf32>
    %511 = vector.broadcast %510 : vector<1x128xf32> to vector<22x128xf32>
    %512 = arith.mulf %508, %511 : vector<22x128xf32>
    %513 = vector.extract_strided_slice %507 {offsets = [1, 0], sizes = [1, 128], strides = [1, 1]} : vector<3x128xf32> to vector<1x128xf32>
    %514 = vector.broadcast %513 : vector<1x128xf32> to vector<22x128xf32>
    %515 = arith.mulf %505, %514 : vector<22x128xf32>
    %516 = arith.addf %512, %515 : vector<22x128xf32>
    %517 = vector.extract_strided_slice %507 {offsets = [2, 0], sizes = [1, 128], strides = [1, 1]} : vector<3x128xf32> to vector<1x128xf32>
    %518 = vector.broadcast %517 : vector<1x128xf32> to vector<22x128xf32>
    %519 = arith.mulf %509, %518 : vector<22x128xf32>
    %520 = arith.addf %516, %519 : vector<22x128xf32>
    %521 = vector.broadcast %464 : vector<1x128xf32> to vector<22x128xf32>
    %522 = arith.addf %520, %521 : vector<22x128xf32>
    %cst_156 = arith.constant 0.000000e+00 : f32
    %523 = vector.broadcast %cst_156 : f32 to vector<22x128xf32>
    %524 = arith.cmpf oge, %522, %523 : vector<22x128xf32>
    %525 = vector.broadcast %470 : vector<1x128xf32> to vector<22x128xf32>
    %526 = arith.mulf %525, %522 : vector<22x128xf32>
    %527 = arith.select %524, %522, %526 : vector<22x128xi1>, vector<22x128xf32>
    %528 = vector.shape_cast %527 : vector<22x128xf32> to vector<1x22x128xf32>
    %cst_157 = arith.constant dense<0.000000e+00> : vector<1xf32>
    %529 = vector.multi_reduction <add>, %528, %cst_157 [1, 2] : vector<1x22x128xf32> to vector<1xf32>
    %530 = vector.shape_cast %529 : vector<1xf32> to vector<1x1x1xf32>
    %531 = vector.extract %530[0, 0, 0] : f32 from vector<1x1x1xf32>
    %cst_158 = arith.constant 0.00142045459 : f32
    %532 = arith.mulf %531, %cst_158 : f32
    %533 = arith.mulf %527, %527 : vector<22x128xf32>
    %534 = vector.shape_cast %533 : vector<22x128xf32> to vector<1x22x128xf32>
    %cst_159 = arith.constant dense<0.000000e+00> : vector<1xf32>
    %535 = vector.multi_reduction <add>, %534, %cst_159 [1, 2] : vector<1x22x128xf32> to vector<1xf32>
    %536 = vector.shape_cast %535 : vector<1xf32> to vector<1x1x1xf32>
    %537 = vector.extract %536[0, 0, 0] : f32 from vector<1x1x1xf32>
    %cst_160 = arith.constant 0.00142045459 : f32
    %538 = arith.mulf %537, %cst_160 : f32
    %539 = arith.mulf %532, %532 : f32
    %540 = arith.subf %538, %539 : f32
    %cst_161 = arith.constant 0.000000e+00 : f32
    %541 = arith.maximumf %540, %cst_161 : f32
    %542 = vector.broadcast %532 : f32 to vector<22x128xf32>
    %543 = arith.subf %527, %542 : vector<22x128xf32>
    %cst_162 = arith.constant 1.000000e-10 : f32
    %544 = arith.addf %541, %cst_162 : f32
    %545 = math.rsqrt %544 : f32
    %546 = vector.broadcast %545 : f32 to vector<22x128xf32>
    %547 = arith.mulf %543, %546 : vector<22x128xf32>
    %548 = vector.broadcast %465 : vector<1x128xf32> to vector<22x128xf32>
    %549 = arith.mulf %547, %548 : vector<22x128xf32>
    %550 = vector.broadcast %466 : vector<1x128xf32> to vector<22x128xf32>
    %551 = arith.addf %549, %550 : vector<22x128xf32>
    %552 = arith.truncf %551 : vector<22x128xf32> to vector<22x128xbf16>
    %c4_163 = arith.constant 4 : index
    %c0_164 = arith.constant 0 : index
    %c0_165 = arith.constant 0 : index
    %553 = vector.load %arg4[%c4_163, %c0_164, %c0_165] : memref<6x128x128xbf16, #tpu.memory_space<vmem>>, vector<1x128x128xbf16>
    %554 = vector.shape_cast %553 : vector<1x128x128xbf16> to vector<128x128xbf16>
    %cst_166 = arith.constant dense<0.000000e+00> : vector<22x128xf32>
    %555 = tpu.matmul %552, %554, %cst_166 {dimension_numbers = #tpu.dot_dimension_numbers<[1], [0], [0], [1], [0, 0, 1, 1], [], []>} : vector<22x128xbf16>, vector<128x128xbf16>, vector<22x128xf32> -> vector<22x128xf32>
    %556 = arith.addf %452, %555 : vector<22x128xf32>
    %557 = vector.broadcast %467 : vector<1x128xf32> to vector<22x128xf32>
    %558 = arith.addf %556, %557 : vector<22x128xf32>
    %c4_167 = arith.constant 4 : index
    %c0_168 = arith.constant 0 : index
    %c0_169 = arith.constant 0 : index
    %559 = vector.load %arg5[%c4_167, %c0_168, %c0_169] : memref<6x128x128xbf16, #tpu.memory_space<vmem>>, vector<1x128x128xbf16>
    %560 = vector.shape_cast %559 : vector<1x128x128xbf16> to vector<128x128xbf16>
    %cst_170 = arith.constant dense<0.000000e+00> : vector<22x128xf32>
    %561 = tpu.matmul %552, %560, %cst_170 {dimension_numbers = #tpu.dot_dimension_numbers<[1], [0], [0], [1], [0, 0, 1, 1], [], []>} : vector<22x128xbf16>, vector<128x128xbf16>, vector<22x128xf32> -> vector<22x128xf32>
    %562 = arith.addf %458, %561 : vector<22x128xf32>
    %563 = vector.broadcast %468 : vector<1x128xf32> to vector<22x128xf32>
    %564 = arith.addf %562, %563 : vector<22x128xf32>
    %c5 = arith.constant 5 : index
    %c0_171 = arith.constant 0 : index
    %c0_172 = arith.constant 0 : index
    %565 = vector.load %arg6[%c5, %c0_171, %c0_172] : memref<6x10x128xf32, #tpu.memory_space<vmem>>, vector<1x10x128xf32>
    %566 = vector.shape_cast %565 : vector<1x10x128xf32> to vector<10x128xf32>
    %567 = vector.extract_strided_slice %566 {offsets = [0, 0], sizes = [1, 128], strides = [1, 1]} : vector<10x128xf32> to vector<1x128xf32>
    %568 = vector.extract_strided_slice %566 {offsets = [1, 0], sizes = [1, 128], strides = [1, 1]} : vector<10x128xf32> to vector<1x128xf32>
    %569 = vector.extract_strided_slice %566 {offsets = [2, 0], sizes = [1, 128], strides = [1, 1]} : vector<10x128xf32> to vector<1x128xf32>
    %570 = vector.extract_strided_slice %566 {offsets = [3, 0], sizes = [1, 128], strides = [1, 1]} : vector<10x128xf32> to vector<1x128xf32>
    %571 = vector.extract_strided_slice %566 {offsets = [4, 0], sizes = [1, 128], strides = [1, 1]} : vector<10x128xf32> to vector<1x128xf32>
    %572 = vector.extract_strided_slice %566 {offsets = [5, 0], sizes = [1, 128], strides = [1, 1]} : vector<10x128xf32> to vector<1x128xf32>
    %573 = vector.extract_strided_slice %566 {offsets = [6, 0], sizes = [1, 128], strides = [1, 1]} : vector<10x128xf32> to vector<1x128xf32>
    %574 = vector.extract_strided_slice %566 {offsets = [8, 0], sizes = [1, 128], strides = [1, 1]} : vector<10x128xf32> to vector<1x128xf32>
    %575 = vector.extract_strided_slice %566 {offsets = [9, 0], sizes = [1, 128], strides = [1, 1]} : vector<10x128xf32> to vector<1x128xf32>
    %576 = arith.truncf %564 : vector<22x128xf32> to vector<22x128xbf16>
    %c5_173 = arith.constant 5 : index
    %c0_174 = arith.constant 0 : index
    %c0_175 = arith.constant 0 : index
    %577 = vector.load %arg2[%c5_173, %c0_174, %c0_175] : memref<6x128x128xbf16, #tpu.memory_space<vmem>>, vector<1x128x128xbf16>
    %578 = vector.shape_cast %577 : vector<1x128x128xbf16> to vector<128x128xbf16>
    %cst_176 = arith.constant dense<0.000000e+00> : vector<22x128xf32>
    %579 = tpu.matmul %576, %578, %cst_176 {dimension_numbers = #tpu.dot_dimension_numbers<[1], [0], [0], [1], [0, 0, 1, 1], [], []>} : vector<22x128xbf16>, vector<128x128xbf16>, vector<22x128xf32> -> vector<22x128xf32>
    %580 = vector.broadcast %567 : vector<1x128xf32> to vector<22x128xf32>
    %581 = arith.addf %579, %580 : vector<22x128xf32>
    %cst_177 = arith.constant 0.000000e+00 : f32
    %582 = vector.broadcast %cst_177 : f32 to vector<22x128xf32>
    %583 = arith.cmpf oge, %581, %582 : vector<22x128xf32>
    %584 = vector.broadcast %574 : vector<1x128xf32> to vector<22x128xf32>
    %585 = arith.mulf %584, %581 : vector<22x128xf32>
    %586 = arith.select %583, %581, %585 : vector<22x128xi1>, vector<22x128xf32>
    %587 = vector.shape_cast %586 : vector<22x128xf32> to vector<1x22x128xf32>
    %cst_178 = arith.constant dense<0.000000e+00> : vector<1xf32>
    %588 = vector.multi_reduction <add>, %587, %cst_178 [1, 2] : vector<1x22x128xf32> to vector<1xf32>
    %589 = vector.shape_cast %588 : vector<1xf32> to vector<1x1x1xf32>
    %590 = vector.extract %589[0, 0, 0] : f32 from vector<1x1x1xf32>
    %cst_179 = arith.constant 0.00142045459 : f32
    %591 = arith.mulf %590, %cst_179 : f32
    %592 = arith.mulf %586, %586 : vector<22x128xf32>
    %593 = vector.shape_cast %592 : vector<22x128xf32> to vector<1x22x128xf32>
    %cst_180 = arith.constant dense<0.000000e+00> : vector<1xf32>
    %594 = vector.multi_reduction <add>, %593, %cst_180 [1, 2] : vector<1x22x128xf32> to vector<1xf32>
    %595 = vector.shape_cast %594 : vector<1xf32> to vector<1x1x1xf32>
    %596 = vector.extract %595[0, 0, 0] : f32 from vector<1x1x1xf32>
    %cst_181 = arith.constant 0.00142045459 : f32
    %597 = arith.mulf %596, %cst_181 : f32
    %598 = arith.mulf %591, %591 : f32
    %599 = arith.subf %597, %598 : f32
    %cst_182 = arith.constant 0.000000e+00 : f32
    %600 = arith.maximumf %599, %cst_182 : f32
    %601 = vector.broadcast %591 : f32 to vector<22x128xf32>
    %602 = arith.subf %586, %601 : vector<22x128xf32>
    %cst_183 = arith.constant 1.000000e-10 : f32
    %603 = arith.addf %600, %cst_183 : f32
    %604 = math.rsqrt %603 : f32
    %605 = vector.broadcast %604 : f32 to vector<22x128xf32>
    %606 = arith.mulf %602, %605 : vector<22x128xf32>
    %607 = vector.broadcast %568 : vector<1x128xf32> to vector<22x128xf32>
    %608 = arith.mulf %606, %607 : vector<22x128xf32>
    %609 = vector.broadcast %569 : vector<1x128xf32> to vector<22x128xf32>
    %610 = arith.addf %608, %609 : vector<22x128xf32>
    %c5_184 = arith.constant 5 : index
    %c0_185 = arith.constant 0 : index
    %c0_186 = arith.constant 0 : index
    %611 = vector.load %arg3[%c5_184, %c0_185, %c0_186] : memref<6x3x128xf32, #tpu.memory_space<vmem>>, vector<1x3x128xf32>
    %612 = vector.shape_cast %611 : vector<1x3x128xf32> to vector<3x128xf32>
    %cst_187 = arith.constant dense<0.000000e+00> : vector<22x128xf32>
    %613 = tpu.matmul %26, %610, %cst_187 {dimension_numbers = #tpu.dot_dimension_numbers<[1], [0], [0], [1], [0, 0, 1, 1], [], []>} : vector<22x22xf32>, vector<22x128xf32>, vector<22x128xf32> -> vector<22x128xf32>
    %cst_188 = arith.constant dense<0.000000e+00> : vector<22x128xf32>
    %614 = tpu.matmul %31, %610, %cst_188 {dimension_numbers = #tpu.dot_dimension_numbers<[1], [0], [0], [1], [0, 0, 1, 1], [], []>} : vector<22x22xf32>, vector<22x128xf32>, vector<22x128xf32> -> vector<22x128xf32>
    %615 = vector.extract_strided_slice %612 {offsets = [0, 0], sizes = [1, 128], strides = [1, 1]} : vector<3x128xf32> to vector<1x128xf32>
    %616 = vector.broadcast %615 : vector<1x128xf32> to vector<22x128xf32>
    %617 = arith.mulf %613, %616 : vector<22x128xf32>
    %618 = vector.extract_strided_slice %612 {offsets = [1, 0], sizes = [1, 128], strides = [1, 1]} : vector<3x128xf32> to vector<1x128xf32>
    %619 = vector.broadcast %618 : vector<1x128xf32> to vector<22x128xf32>
    %620 = arith.mulf %610, %619 : vector<22x128xf32>
    %621 = arith.addf %617, %620 : vector<22x128xf32>
    %622 = vector.extract_strided_slice %612 {offsets = [2, 0], sizes = [1, 128], strides = [1, 1]} : vector<3x128xf32> to vector<1x128xf32>
    %623 = vector.broadcast %622 : vector<1x128xf32> to vector<22x128xf32>
    %624 = arith.mulf %614, %623 : vector<22x128xf32>
    %625 = arith.addf %621, %624 : vector<22x128xf32>
    %626 = vector.broadcast %570 : vector<1x128xf32> to vector<22x128xf32>
    %627 = arith.addf %625, %626 : vector<22x128xf32>
    %cst_189 = arith.constant 0.000000e+00 : f32
    %628 = vector.broadcast %cst_189 : f32 to vector<22x128xf32>
    %629 = arith.cmpf oge, %627, %628 : vector<22x128xf32>
    %630 = vector.broadcast %575 : vector<1x128xf32> to vector<22x128xf32>
    %631 = arith.mulf %630, %627 : vector<22x128xf32>
    %632 = arith.select %629, %627, %631 : vector<22x128xi1>, vector<22x128xf32>
    %633 = vector.shape_cast %632 : vector<22x128xf32> to vector<1x22x128xf32>
    %cst_190 = arith.constant dense<0.000000e+00> : vector<1xf32>
    %634 = vector.multi_reduction <add>, %633, %cst_190 [1, 2] : vector<1x22x128xf32> to vector<1xf32>
    %635 = vector.shape_cast %634 : vector<1xf32> to vector<1x1x1xf32>
    %636 = vector.extract %635[0, 0, 0] : f32 from vector<1x1x1xf32>
    %cst_191 = arith.constant 0.00142045459 : f32
    %637 = arith.mulf %636, %cst_191 : f32
    %638 = arith.mulf %632, %632 : vector<22x128xf32>
    %639 = vector.shape_cast %638 : vector<22x128xf32> to vector<1x22x128xf32>
    %cst_192 = arith.constant dense<0.000000e+00> : vector<1xf32>
    %640 = vector.multi_reduction <add>, %639, %cst_192 [1, 2] : vector<1x22x128xf32> to vector<1xf32>
    %641 = vector.shape_cast %640 : vector<1xf32> to vector<1x1x1xf32>
    %642 = vector.extract %641[0, 0, 0] : f32 from vector<1x1x1xf32>
    %cst_193 = arith.constant 0.00142045459 : f32
    %643 = arith.mulf %642, %cst_193 : f32
    %644 = arith.mulf %637, %637 : f32
    %645 = arith.subf %643, %644 : f32
    %cst_194 = arith.constant 0.000000e+00 : f32
    %646 = arith.maximumf %645, %cst_194 : f32
    %647 = vector.broadcast %637 : f32 to vector<22x128xf32>
    %648 = arith.subf %632, %647 : vector<22x128xf32>
    %cst_195 = arith.constant 1.000000e-10 : f32
    %649 = arith.addf %646, %cst_195 : f32
    %650 = math.rsqrt %649 : f32
    %651 = vector.broadcast %650 : f32 to vector<22x128xf32>
    %652 = arith.mulf %648, %651 : vector<22x128xf32>
    %653 = vector.broadcast %571 : vector<1x128xf32> to vector<22x128xf32>
    %654 = arith.mulf %652, %653 : vector<22x128xf32>
    %655 = vector.broadcast %572 : vector<1x128xf32> to vector<22x128xf32>
    %656 = arith.addf %654, %655 : vector<22x128xf32>
    %657 = arith.truncf %656 : vector<22x128xf32> to vector<22x128xbf16>
    %c5_196 = arith.constant 5 : index
    %c0_197 = arith.constant 0 : index
    %c0_198 = arith.constant 0 : index
    %658 = vector.load %arg4[%c5_196, %c0_197, %c0_198] : memref<6x128x128xbf16, #tpu.memory_space<vmem>>, vector<1x128x128xbf16>
    %659 = vector.shape_cast %658 : vector<1x128x128xbf16> to vector<128x128xbf16>
    %cst_199 = arith.constant dense<0.000000e+00> : vector<22x128xf32>
    %660 = tpu.matmul %657, %659, %cst_199 {dimension_numbers = #tpu.dot_dimension_numbers<[1], [0], [0], [1], [0, 0, 1, 1], [], []>} : vector<22x128xbf16>, vector<128x128xbf16>, vector<22x128xf32> -> vector<22x128xf32>
    %661 = arith.addf %558, %660 : vector<22x128xf32>
    %662 = vector.broadcast %573 : vector<1x128xf32> to vector<22x128xf32>
    %663 = arith.addf %661, %662 : vector<22x128xf32>
    %c0_200 = arith.constant 0 : index
    %c0_201 = arith.constant 0 : index
    %c0_202 = arith.constant 0 : index
    %664 = vector.load %arg7[%c0_200, %c0_201, %c0_202] : memref<1x22x128xf32, #tpu.memory_space<vmem>>, vector<1x22x128xf32>
    %665 = vector.shape_cast %664 : vector<1x22x128xf32> to vector<22x128xf32>
    %666 = vector.shape_cast %663 : vector<22x128xf32> to vector<1x22x128xf32>
    tpu.vector_store %arg7[%c0_200, %c0_201, %c0_202], %666 {strides = array<i32>} : memref<1x22x128xf32, #tpu.memory_space<vmem>>, vector<1x22x128xf32>,
    return
  }
  func.func @transform_0(%arg0: i32) -> (i32, i32, i32) {
    %c0_i32 = arith.constant 0 : i32
    %c0_i32_0 = arith.constant 0 : i32
    %c0_i32_1 = arith.constant 0 : i32
    return %arg0, %c0_i32, %c0_i32_0 : i32, i32, i32
  }
  func.func @transform_1(%arg0: i32) -> (i32, i32, i32) {
    %c0_i32 = arith.constant 0 : i32
    %c0_i32_0 = arith.constant 0 : i32
    %c0_i32_1 = arith.constant 0 : i32
    %c0_i32_2 = arith.constant 0 : i32
    return %c0_i32, %c0_i32_0, %c0_i32_1 : i32, i32, i32
  }
  func.func @transform_2(%arg0: i32) -> (i32, i32, i32) {
    %c0_i32 = arith.constant 0 : i32
    %c0_i32_0 = arith.constant 0 : i32
    %c0_i32_1 = arith.constant 0 : i32
    %c0_i32_2 = arith.constant 0 : i32
    return %c0_i32, %c0_i32_0, %c0_i32_1 : i32, i32, i32
  }
  func.func @transform_3(%arg0: i32) -> (i32, i32, i32) {
    %c0_i32 = arith.constant 0 : i32
    %c0_i32_0 = arith.constant 0 : i32
    %c0_i32_1 = arith.constant 0 : i32
    %c0_i32_2 = arith.constant 0 : i32
    return %c0_i32, %c0_i32_0, %c0_i32_1 : i32, i32, i32
  }
  func.func @transform_4(%arg0: i32) -> (i32, i32, i32) {
    %c0_i32 = arith.constant 0 : i32
    %c0_i32_0 = arith.constant 0 : i32
    %c0_i32_1 = arith.constant 0 : i32
    %c0_i32_2 = arith.constant 0 : i32
    return %c0_i32, %c0_i32_0, %c0_i32_1 : i32, i32, i32
  }
  func.func @transform_5(%arg0: i32) -> (i32, i32, i32) {
    %c0_i32 = arith.constant 0 : i32
    %c0_i32_0 = arith.constant 0 : i32
    %c0_i32_1 = arith.constant 0 : i32
    %c0_i32_2 = arith.constant 0 : i32
    return %c0_i32, %c0_i32_0, %c0_i32_1 : i32, i32, i32
  }
  func.func @transform_6(%arg0: i32) -> (i32, i32, i32) {
    %c0_i32 = arith.constant 0 : i32
    %c0_i32_0 = arith.constant 0 : i32
    %c0_i32_1 = arith.constant 0 : i32
    return %arg0, %c0_i32, %c0_i32_0 : i32, i32, i32
  }
}

</mosaic_0001>

<bundles_post_ra>
// kernel: _lambda_.3
= control target key start
LH: loop header
LB: loop body
LE: loop exit
PB: predicated region body
PF: predicated region fallthrough
CT: control target
= control target key end

     0   :  { %s779_s24 = smov 0   ;;  %s863_s0 = inlined_call_operand.vmem [shape: f32[2,22,16], index: 0, kind: input, shape index: {}]   ;;  %s864_s1 = inlined_call_operand.vmem [shape: bf16[16,128], index: 1, kind: input, shape index: {}]   ;;  %s865_s2 = inlined_call_operand.vmem [shape: f32[1,128], index: 2, kind: input, shape index: {}]   ;;  %s866_s3 = inlined_call_operand.vmem [shape: f32[1,128], index: 3, kind: input, shape index: {}]   ;;  %s867_s4 = inlined_call_operand.vmem [shape: bf16[128,128], index: 4, kind: input, shape index: {}]   ;;  %s868_s5 = inlined_call_operand.vmem [shape: f32[1,128], index: 5, kind: input, shape index: {}]   ;;  %s869_s6 = inlined_call_operand.vmem [shape: f32[2,22,128], index: 6, kind: output, shape index: {0}]   ;;  %s870_s7 = inlined_call_operand.vmem [shape: f32[2,22,128], index: 7, kind: output, shape index: {1}]  }
   0x1 LB: > { %s644_s25 = sadd.s32 4294967295, %s737_s24   ;;  %p648_p0 = scmp.ge.s32.totalorder %s737_s24, 1  ;;  %s737_s24 = sphi %s779_s24, %s18_s24  }
   0x2   : > { %p240_p1 = scmp.lt.s32.totalorder %s737_s24, 3 }
   0x4   : > { %p241_p2 = pnand %p648_p0, %p240_p1 }
   0x5   : > { %p277_p3 = scmp.lt.s32.totalorder (!%p241_p2), %s644_s25, 1 }
   0x6   : > { %244 = sbr.rel (%p241_p2) target bundleno = 595 (0x253), region = 44 }
   0xb   : > { %v716_v0 = vld [vmem:[%s864_s1] sm:$0xff]   ;;  %s872_s25 = smov (!%p277_p3, %s644_s25), 1  ;;  %vm306_vm0 = vcmask 130048   ;;  %vm371_vm1 = vcmask 1045504   ;;  %v717_v18 = vld [vmem:[%s867_s4 + $0x38] sm:$0xff]   ;;  %v718_v19 = vld [vmem:[%s867_s4 + $0x30] sm:$0xff]  }
   0xc   : > { %681 = vmatprep.subr.bf16.mxu0 %v716_v0  ;;  %s790_s28 = smul.u32 24, %s872_s25  ;;  %687 = vmatprep.subr.bf16.mxu1 %v717_v18  ;;  %v719_v20 = vld [vmem:[%s867_s4 + $0x28] sm:$0xff]   ;;  %v720_v21 = vld [vmem:[%s867_s4 + $0x20] sm:$0xff]   ;;  %v721_v22 = vld [vmem:[%s867_s4 + $0x18] sm:$0xff]  }
   0xd   : > { %682 = vmatpush3.bf16.msra.mxu0 %v716_v0  ;;  %688 = vmatpush3.bf16.msra.mxu1 %v717_v18  ;;  %v722_v23 = vld [vmem:[%s867_s4 + $0x10] sm:$0xff]   ;;  %v723_v24 = vld [vmem:[%s867_s4 + $0x8] sm:$0xff]   ;;  %v724_v25 = vld [vmem:[%s867_s4] sm:$0xff]  }
   0xe   : > { %s281_s8 = scalar_lea.vmem %s863_s0, %s790_s28  ;;  %s286_s11 = scalar_lea.vmem %s869_s6, %s790_s28  ;;  %689 = vmatprep.subr.bf16.mxu1 %v718_v19  ;;  %v655_v54 = vld [vmem:[%s865_s2] ss:$0 sm:$0xff] }
   0xf   : > { %v293_v1 = vld [vmem:[%s281_s8] sm:$0xff]  ;;  %v294_v2 = vld [vmem:[%s281_s8 + $0x8] sm:$0xff]  ;;  %v295_v3 = vld [vmem:[%s281_s8 + $0x10] sm:$0x3f]  ;;  %s291_s15 = scalar_lea.vmem %s870_s7, %s790_s28 }
  0x10   : > { %v296_v4 = vpack.c.bf16 %v294_v2, %v293_v1  ;;  %v297_v5 = vpack.c.bf16 %v295_v3, %v295_v3  ;;  %v656_v61 = vld [vmem:[%s866_s3] ss:$0 sm:$0xff] }
  0x11   : > { %690 = vmatpush3.bf16.msra.mxu1 %v718_v19 }
  0x12   : > { %683 = vmatprep.mubr.msk.bf16.mxu0 %vm306_vm0, %v296_v4  ;;  %691 = vmatprep.subr.bf16.mxu1 %v719_v20 }
  0x13   : > { %684 = vmatmul.mubr.msk.bf16.vlgmr.msra.gmra.mxu0 %vm306_vm0, %v297_v5  ;;  %v657_v5 = vld [vmem:[%s868_s5] ss:$0 sm:$0xff] }
  0x15   : > { %692 = vmatpush3.bf16.msra.mxu1 %v719_v20 }
  0x16   : > { %693 = vmatprep.subr.bf16.mxu1 %v720_v21 }
  0x19   : > { %694 = vmatpush3.bf16.msra.mxu1 %v720_v21 }
  0x1a   : > { %695 = vmatprep.subr.bf16.mxu1 %v721_v22 }
  0x1d   : > { %696 = vmatpush3.bf16.msra.mxu1 %v721_v22 }
  0x1e   : > { %697 = vmatprep.subr.bf16.mxu1 %v722_v23 }
  0x21   : > { %698 = vmatpush3.bf16.msra.mxu1 %v722_v23 }
  0x22   : > { %699 = vmatprep.subr.bf16.mxu1 %v723_v24 }
  0x25   : > { %700 = vmatpush3.bf16.msra.mxu1 %v723_v24 }
  0x26   : > { %701 = vmatprep.subr.bf16.mxu1 %v724_v25 }
  0x29   : > { %702 = vmatpush3.bf16.msra.mxu1 %v724_v25 }
  0xd3   : > { %v685_v6 = vpop.f32.mrf.mxu0 }
  0xd4   : > { %v800_v7 = vmax.f32 %v685_v6, 0.0 }
  0xd5   : > { %v347_v8 = vpop.f32.mrf.mxu0 }
  0xd6   : > { %366 = vst [vmem:[%s286_s11 + $0x10] sm:$0x3f] %v800_v7  ;;  %v803_v9 = vmax.f32 %v347_v8, 0.0  ;;  %v372_v10 = vsel %vm371_vm1, %v800_v7, 0.0  ;;  %v380_v15 = vmul.f32 %v800_v7, %v800_v7 }
  0xd7   : > { %373 = vadd.xlane.f32.xlu1 %v372_v10  ;;  %v686_v11 = vpop.f32.mrf.mxu0 }
  0xd8   : > { %364 = vst [vmem:[%s286_s11] sm:$0xff] %v803_v9  ;;  %367 = vadd.xlane.f32.xlu0 %v803_v9  ;;  %v378_v12 = vmul.f32 %v803_v9, %v803_v9  ;;  %v385_v16 = vsel %vm371_vm1, %v380_v15, 0.0 }
  0xd9   : > { %v350_v13 = vpop.f32.mrf.mxu0 }
  0xda   : > { %v811_v14 = vmax.f32 %v350_v13, 0.0 }
  0xdb   : > { %381 = vadd.xlane.f32.xlu1 %v378_v12 }
  0xdc   : > { %365 = vst [vmem:[%s286_s11 + $0x8] sm:$0xff] %v811_v14  ;;  %369 = vadd.xlane.f32.xlu0 %v811_v14  ;;  %v379_v17 = vmul.f32 %v811_v14, %v811_v14 }
  0xdf   : > { %386 = vadd.xlane.f32.xlu1 %v385_v16 }
  0xe0   : > { %383 = vadd.xlane.f32.xlu0 %v379_v17 }
 0x160   : > { %v374_v26 = vpop.xlane.xlu1 %373 }
 0x161   : > { %v368_v27 = vpop.xlane.xlu0 %367  ;;  %v377_v31 = vmul.f32 0.0625, %v374_v26 }
 0x162   : > { %v375_v28 = vmul.f32 0.0625, %v368_v27 }
 0x163   : > { %v393_v37 = vmul.f32 %v377_v31, %v377_v31  ;;  %v402_v53 = vsub.f32 %v800_v7, %v377_v31 }
 0x164   : > { %v391_v29 = vmul.f32 %v375_v28, %v375_v28  ;;  %v382_v30 = vpop.xlane.xlu1 %381  ;;  %v400_v51 = vsub.f32 %v803_v9, %v375_v28 }
 0x165   : > { %v388_v32 = vmul.f32 0.0625, %v382_v30  ;;  %v370_v33 = vpop.xlane.xlu0 %369 }
 0x166   : > { %v376_v34 = vmul.f32 0.0625, %v370_v33 }
 0x167   : > { %v394_v35 = vsub.f32 %v388_v32, %v391_v29 }
 0x168   : > { %v387_v36 = vpop.xlane.xlu1 %386  ;;  %v392_v41 = vmul.f32 %v376_v34, %v376_v34  ;;  %v401_v56 = vsub.f32 %v811_v14, %v376_v34 }
 0x169   : > { %v397_v38 = vmax.f32 %v394_v35, 0.0  ;;  %v390_v39 = vmul.f32 0.0625, %v387_v36  ;;  %v384_v40 = vpop.xlane.xlu0 %383 }
 0x16a   : > { %v389_v42 = vmul.f32 0.0625, %v384_v40 }
 0x16b   : > { %v403_v43 = vadd.f32 1e-05, %v397_v38  ;;  %v396_v44 = vsub.f32 %v390_v39, %v393_v37 }
 0x16c   : > { %v395_v45 = vsub.f32 %v389_v42, %v392_v41 }
 0x16d   : > { %725 = vrsqrt.f32 %v403_v43  ;;  %v399_v46 = vmax.f32 %v396_v44, 0.0 }
 0x16e   : > { %v398_v47 = vmax.f32 %v395_v45, 0.0 }
 0x16f   : > { %v405_v48 = vadd.f32 1e-05, %v399_v46 }
 0x170   : > { %v404_v49 = vadd.f32 1e-05, %v398_v47 }
 0x171   : > { %727 = vrsqrt.f32 %v405_v48 }
 0x172   : > { %729 = vrsqrt.f32 %v404_v49 }
 0x17a   : > { %v726_v50 = vpop.eup %725 }
 0x17b   : > { %v409_v52 = vmul.f32 %v726_v50, %v400_v51 }
 0x17d   : > { %v419_v60 = vmul.f32 %v655_v54, %v409_v52 }
 0x17e   : > { %v728_v55 = vpop.eup %727 }
 0x17f   : > { %v730_v57 = vpop.eup %729  ;;  %v411_v58 = vmul.f32 %v728_v55, %v402_v53  ;;  %v429_v1 = vadd.f32 %v656_v61, %v419_v60 }
 0x180   : > { %v410_v59 = vmul.f32 %v730_v57, %v401_v56 }
 0x181   : > { %v421_v62 = vmul.f32 %v655_v54, %v411_v58 }
 0x182   : > { %v420_v63 = vmul.f32 %v655_v54, %v410_v59 }
 0x183   : > { %v431_v0 = vadd.f32 %v656_v61, %v421_v62 }
 0x184   : > { %v430_v2 = vadd.f32 %v656_v61, %v420_v63 }
 0x185   : > { %v433_v4 = vpack.c.bf16 %v431_v0, %v431_v0 }
 0x186   : > { %v432_v3 = vpack.c.bf16 %v430_v2, %v429_v1 }
 0x188   : > { %703 = vmatprep.mubr.bf16.mxu1 %v432_v3 }
 0x189   : > { %704 = vmatmul.mubr.bf16.vlgmr.msra.gmra.mxu1 %v433_v4 }
 0x249   : > { %v705_v6 = vpop.f32.mrf.mxu1 }
 0x24a   : > { %v548_v7 = vadd.f32 %v705_v6, %v657_v5 }
 0x24b   : > { %v539_v8 = vpop.f32.mrf.mxu1 }
 0x24c   : > { %555 = vst [vmem:[%s291_s15 + $0x10] sm:$0x3f] %v548_v7  ;;  %v540_v9 = vadd.f32 %v657_v5, %v539_v8 }
 0x24d   : > { %v706_v10 = vpop.f32.mrf.mxu1 }
 0x24e   : > { %553 = vst [vmem:[%s291_s15] sm:$0xff] %v540_v9 }
 0x24f   : > { %v542_v11 = vpop.f32.mrf.mxu1 }
 0x250   : > { %v543_v12 = vadd.f32 %v657_v5, %v542_v11 }
 0x252   : > { %554 = vst [vmem:[%s291_s15 + $0x8] sm:$0xff] %v543_v12 }
 0x253 PF: > { %s18_s24 = sadd.s32 1, %s737_s24  }
 0x254   : > { %p15_p4 = scmp.ge.s32.totalorder %s18_s24, 4  }
 0x256   :  { %17 = sbr.rel (!%p15_p4) target bundleno = 1 (0x1), region = 86 }

// kernel: _lambda_.5
= control target key start
LH: loop header
LB: loop body
LE: loop exit
PB: predicated region body
PF: predicated region fallthrough
CT: control target
= control target key end

     0   :  { %s1874_s24 = smov 0   ;;  %s2172_s0 = inlined_call_operand.vmem [shape: f32[2,22,128], index: 0, kind: input, shape index: {}]   ;;  %s2173_s1 = inlined_call_operand.vmem [shape: f32[2,22,128], index: 1, kind: input, shape index: {}]   ;;  %s2174_s2 = inlined_call_operand.vmem [shape: f32[1,128], index: 2, kind: input, shape index: {}]   ;;  %s2175_s3 = inlined_call_operand.vmem [shape: bf16[128,256], index: 3, kind: input, shape index: {}]   ;;  %s2176_s4 = inlined_call_operand.vmem [shape: f32[1,256], index: 4, kind: input, shape index: {}]   ;;  %s2177_s5 = inlined_call_operand.vmem [shape: bf16[128,8], index: 5, kind: input, shape index: {}]   ;;  %s2178_s6 = inlined_call_operand.vmem [shape: bf16[128,8], index: 6, kind: input, shape index: {}]   ;;  %s2179_s7 = inlined_call_operand.vmem [shape: f32[2,2,23,8], index: 7, kind: output, shape index: {}]  }
   0x1 LB: > { %s1430_s25 = sadd.s32 4294967295, %s1829_s24   ;;  %p1434_p0 = scmp.ge.s32.totalorder %s1829_s24, 1  ;;  %s1829_s24 = sphi %s1874_s24, %s17_s24  }
   0x2   : > { %p247_p1 = scmp.lt.s32.totalorder %s1829_s24, 3 }
   0x4   : > { %p248_p2 = pnand %p1434_p0, %p247_p1 }
   0x5   : > { %p284_p3 = scmp.lt.s32.totalorder (!%p248_p2), %s1430_s25, 1 }
   0x6   : > { %251 = sbr.rel (%p248_p2) target bundleno = 931 (0x3a3), region = 48 }
   0xb   : > { %v1743_v0 = vld [vmem:[%s2175_s3 + $0x74] ss:$8 sps:$4 sm:$0xff]   ;;  %v1745_v1 = vld [vmem:[%s2175_s3 + $0x70] ss:$8 sps:$4 sm:$0xff]   ;;  %v1831_v2 = vmov 0   ;;  %s2181_s25 = smov (!%p284_p3, %s1430_s25), 1  ;;  %v339_v46 = vlaneseq }
   0xc   : > { %461 = vmatprep.mubr.bf16.mxu0 %v1831_v2  ;;  %429 = vmatprep.subr.bf16.mxu0 %v1743_v0  ;;  %v1746_v3 = vld [vmem:[%s2175_s3 + $0x64] ss:$8 sps:$4 sm:$0xff]   ;;  %v1748_v4 = vld [vmem:[%s2175_s3 + $0x60] ss:$8 sps:$4 sm:$0xff]   ;;  %v1749_v5 = vld [vmem:[%s2175_s3 + $0x54] ss:$8 sps:$4 sm:$0xff]  }
   0xd   : > { %430 = vmatpush1.bf16.msra.mxu0 %v1745_v1  ;;  %s1730_s13 = smul.u32 24, %s2181_s25  ;;  %v1751_v6 = vld [vmem:[%s2175_s3 + $0x50] ss:$8 sps:$4 sm:$0xff]   ;;  %v1752_v7 = vld [vmem:[%s2175_s3 + $0x44] ss:$8 sps:$4 sm:$0xff]   ;;  %v1998_v47 = vshrl.u32 %v339_v46, 7 }
   0xe   : > { %431 = vmatprep.subr.bf16.mxu0 %v1746_v3  ;;  %v1754_v8 = vld [vmem:[%s2175_s3 + $0x40] ss:$8 sps:$4 sm:$0xff]   ;;  %v1755_v9 = vld [vmem:[%s2175_s3 + $0x34] ss:$8 sps:$4 sm:$0xff]   ;;  %v1757_v12 = vld [vmem:[%s2175_s3 + $0x30] ss:$8 sps:$4 sm:$0xff]  }
   0xf   : > { %s288_s20 = scalar_lea.vmem %s2172_s0, %s1730_s13  ;;  %v1758_v13 = vld [vmem:[%s2175_s3 + $0x24] ss:$8 sps:$4 sm:$0xff]   ;;  %v1760_v14 = vld [vmem:[%s2175_s3 + $0x20] ss:$8 sps:$4 sm:$0xff]   ;;  %v1761_v15 = vld [vmem:[%s2175_s3 + $0x14] ss:$8 sps:$4 sm:$0xff]   ;;  %s293_s19 = scalar_lea.vmem %s2173_s1, %s1730_s13 }
  0x10   : > { %v300_v10 = vld [vmem:[%s288_s20] sm:$0xff]  ;;  %v301_v11 = vld [vmem:[%s288_s20 + $0x8] sm:$0xff]  ;;  %v302_v17 = vld [vmem:[%s288_s20 + $0x10] sm:$0x3f]  ;;  %v341_v48 = vsub.s32 0, %v1998_v47  ;;  %v345_v50 = vsub.s32 1, %v1998_v47 }
  0x11   : > { %432 = vmatpush1.bf16.msra.mxu0 %v1748_v4  ;;  %vm303_vm0 = vcmp.ge.f32.partialorder %v300_v10, 0.0  ;;  %vm304_vm1 = vcmp.ge.f32.partialorder %v301_v11, 0.0  ;;  %v1438_v16 = vld [vmem:[%s2174_s2] ss:$0 sm:$0xff]  ;;  %v1763_v18 = vld [vmem:[%s2175_s3 + $0x10] ss:$8 sps:$4 sm:$0xff]  }
  0x12   : > { %433 = vmatprep.subr.bf16.mxu0 %v1749_v5  ;;  %v1764_v19 = vld [vmem:[%s2175_s3 + $0x4] ss:$8 sps:$4 sm:$0xff]   ;;  %v313_v20 = vmul.f32 %v1438_v16, %v300_v10  ;;  %v314_v21 = vmul.f32 %v1438_v16, %v301_v11  ;;  %vm305_vm2 = vcmp.ge.f32.partialorder %v302_v17, 0.0  ;;  %v1766_v22 = vld [vmem:[%s2175_s3] ss:$8 sps:$4 sm:$0xff]   ;;  %v315_v26 = vmul.f32 %v1438_v16, %v302_v17  ;;  %v1767_v29 = vld [vmem:[%s2178_s6 + $0x38] sm:$0xff]  }
  0x13   : > { %v1768_v30 = vld [vmem:[%s2177_s5 + $0x38] sm:$0xff]   ;;  %v1769_v31 = vld [vmem:[%s2178_s6 + $0x30] sm:$0xff]   ;;  %v1771_v33 = vld [vmem:[%s2178_s6 + $0x28] sm:$0xff]   ;;  %vm1833_vm3 = vmmov 0   ;;  %vm783_vm4 = vcmask 1045504   ;;  %vm773_vm6 = vcmask 179200  }
  0x14   : > { %v316_v23 = vsel %vm303_vm0, %v300_v10, %v313_v20  ;;  %v317_v24 = vsel %vm304_vm1, %v301_v11, %v314_v21  ;;  %v318_v27 = vsel %vm305_vm2, %v302_v17, %v315_v26  ;;  %1584 = vmatprep.subr.bf16.mxu1 %v1768_v30  ;;  %v1770_v32 = vld [vmem:[%s2177_s5 + $0x30] sm:$0xff]   ;;  %v1772_v34 = vld [vmem:[%s2177_s5 + $0x28] sm:$0xff]   ;;  %v1773_v35 = vld [vmem:[%s2178_s6 + $0x20] sm:$0xff]   ;;  %s1731_s30 = smul.u32 48, %s2181_s25  ;;  %vm959_vm12 = vcmask 64512  }
  0x15   : > { %434 = vmatpush1.bf16.msra.mxu0 %v1751_v6  ;;  %v319_v25 = vpack.c.bf16 %v317_v24, %v316_v23  ;;  %v320_v28 = vpack.c.bf16 %v318_v27, %v318_v27  ;;  %1585 = vmatpush3.bf16.msra.mxu1 %v1768_v30  ;;  %v1774_v36 = vld [vmem:[%s2177_s5 + $0x20] sm:$0xff]   ;;  %v1775_v37 = vld [vmem:[%s2178_s6 + $0x18] sm:$0xff]   ;;  %v1777_v39 = vld [vmem:[%s2178_s6 + $0x10] sm:$0xff]   ;;  %vm962_vm13 = vcmask 63488  }
  0x16   : > { %435 = vmatprep.subr.bf16.mxu0 %v1752_v7  ;;  %1586 = vmatprep.subr.bf16.mxu1 %v1770_v32  ;;  %v1776_v38 = vld [vmem:[%s2177_s5 + $0x18] sm:$0xff]   ;;  %v1778_v40 = vld [vmem:[%s2177_s5 + $0x10] sm:$0xff]   ;;  %v1779_v41 = vld [vmem:[%s2178_s6 + $0x8] sm:$0xff]   ;;  %s2141_s10 = scalar_lea.vmem %s2179_s7, %s1731_s30 }
  0x17   : > { %v1780_v42 = vld [vmem:[%s2177_s5 + $0x8] sm:$0xff]   ;;  %v1781_v43 = vld [vmem:[%s2178_s6] sm:$0xff]   ;;  %v1994_v45 = vld [vmem:[%s2178_s6 + $0x38] sm:$0xff]  }
  0x18   : > { %v1782_v44 = vld [vmem:[%s2177_s5] sm:$0xff]   ;;  %v517_v21 = vld [vmem:[%s293_s19 + $0x8] sm:$0xff]  ;;  %v518_v26 = vld [vmem:[%s293_s19 + $0x10] sm:$0x3f] }
  0x19   : > { %436 = vmatpush1.bf16.msra.mxu0 %v1754_v8  ;;  %1587 = vmatpush3.bf16.msra.mxu1 %v1770_v32  ;;  %v337_v49 = vld [vmem:[%s2176_s4] sm:$0x3] }
  0x1a   : > { %437 = vmatprep.subr.bf16.mxu0 %v1755_v9  ;;  %1588 = vmatprep.subr.bf16.mxu1 %v1772_v34  ;;  %v342_v51 = vrot.slane %v337_v49, %v341_v48  ;;  %v346_v52 = vrot.slane %v337_v49, %v345_v50  ;;  %v516_v20 = vld [vmem:[%s293_s19] sm:$0xff]  ;;  %v1832_v49 = vmov 0.0   ;;  %v524_v50 = vand.u32 127, %v339_v46 }
  0x1c   : > { %vm525_vm9 = vcmp.eq.s32.totalorder %v1998_v47, %v524_v50 }
  0x1d   : > { %438 = vmatpush1.bf16.msra.mxu0 %v1757_v12  ;;  %1589 = vmatpush3.bf16.msra.mxu1 %v1772_v34  ;;  %v1784_v34 = vld [vmem:[%s2178_s6 + $0x30] sm:$0xff]  }
  0x1e   : > { %439 = vmatprep.subr.bf16.mxu0 %v1758_v13  ;;  %1590 = vmatprep.subr.bf16.mxu1 %v1774_v36 }
  0x21   : > { %440 = vmatpush1.bf16.msra.mxu0 %v1760_v14  ;;  %1591 = vmatpush3.bf16.msra.mxu1 %v1774_v36  ;;  %v1785_v36 = vld [vmem:[%s2178_s6 + $0x28] sm:$0xff]  }
  0x22   : > { %441 = vmatprep.subr.bf16.mxu0 %v1761_v15  ;;  %1592 = vmatprep.subr.bf16.mxu1 %v1776_v38 }
  0x25   : > { %442 = vmatpush1.bf16.msra.mxu0 %v1763_v18  ;;  %1593 = vmatpush3.bf16.msra.mxu1 %v1776_v38 }
  0x26   : > { %443 = vmatprep.subr.bf16.mxu0 %v1764_v19  ;;  %1594 = vmatprep.subr.bf16.mxu1 %v1778_v40 }
  0x29   : > { %444 = vmatpush1.bf16.msra.mxu0 %v1766_v22  ;;  %1595 = vmatpush3.bf16.msra.mxu1 %v1778_v40  ;;  %v1787_v40 = vld [vmem:[%s2178_s6 + $0x18] sm:$0xff]  }
  0x2a   : > { %1604 = vmatprep.subr.bf16.mxu0 %v1767_v29  ;;  %1596 = vmatprep.subr.bf16.mxu1 %v1780_v42 }
  0x2c   : > { %462 = vmatmul.mubr.bf16.vlgmr.msra.gmra.mxu0 %v319_v25 }
  0x2d   : > { %471 = vmatprep.mubr.bf16.mxu0 %v1831_v2  ;;  %1605 = vmatpush3.bf16.msra.mxu0 %v1767_v29 }
  0x2e   : > { %1606 = vmatprep.subr.bf16.mxu0 %v1769_v31  ;;  %1597 = vmatpush3.bf16.msra.mxu1 %v1780_v42  ;;  %v1789_v42 = vld [vmem:[%s2178_s6 + $0x8] sm:$0xff]  }
  0x2f   : > { %1598 = vmatprep.subr.bf16.mxu1 %v1782_v44 }
  0x31   : > { %1607 = vmatpush3.bf16.msra.mxu0 %v1769_v31 }
  0x32   : > { %1608 = vmatprep.subr.bf16.mxu0 %v1771_v33  ;;  %1599 = vmatpush3.bf16.msra.mxu1 %v1782_v44 }
  0x33   : > { %1624 = vmatprep.subr.mxu1 %v1832_v49 }
  0x34   : > { %472 = vmatmul.mubr.bf16.gmra.mxu0 %v320_v28 }
  0x35   : > { %1609 = vmatpush3.bf16.msra.mxu0 %v1771_v33 }
  0x36   : > { %1610 = vmatprep.subr.bf16.mxu0 %v1773_v35 }
  0x39   : > { %1611 = vmatpush3.bf16.msra.mxu0 %v1773_v35 }
  0x3a   : > { %1612 = vmatprep.subr.bf16.mxu0 %v1775_v37 }
  0x3d   : > { %1613 = vmatpush3.bf16.msra.mxu0 %v1775_v37 }
  0x3e   : > { %1614 = vmatprep.subr.bf16.mxu0 %v1777_v39 }
  0x41   : > { %1615 = vmatpush3.bf16.msra.mxu0 %v1777_v39  ;;  %v1786_v39 = vld [vmem:[%s2178_s6 + $0x20] sm:$0xff]  }
  0x42   : > { %1616 = vmatprep.subr.bf16.mxu0 %v1779_v41 }
  0x45   : > { %1617 = vmatpush3.bf16.msra.mxu0 %v1779_v41  ;;  %v1788_v41 = vld [vmem:[%s2178_s6 + $0x10] sm:$0xff]  }
  0x46   : > { %1618 = vmatprep.subr.bf16.mxu0 %v1781_v43 }
  0x49   : > { %1619 = vmatpush3.bf16.msra.mxu0 %v1781_v43  ;;  %v1790_v43 = vld [vmem:[%s2178_s6] sm:$0xff]  }
  0x4a   : > { %1674 = vmatprep.subr.bf16.mxu0 %v1994_v45 }
  0xec   : > { %v463_v53 = vpop.f32.mrf.mxu0 }
  0xed   : > { %v464_v54 = vadd.f32 %v463_v53, %v342_v51  ;;  %v534_v53 = vadd.s32 1, %v524_v50 }
  0xee   : > { %v465_v55 = vpop.f32.mrf.mxu0 }
  0xef   : > { %v1455_v56 = vmul.f32 -1.442695, %v464_v54  ;;  %v466_v57 = vadd.f32 %v465_v55, %v346_v52  ;;  %vm535_vm5 = vcmp.eq.s32.totalorder %v1998_v47, %v534_v53 }
  0xf0   : > { %v467_v58 = vpop.f32.mrf.mxu0  ;;  %v2050_v46 = vsel %vm535_vm5, 1.0, %v1832_v49 }
  0xf1   : > { %1799 = vpow2.f32 %v1455_v56  ;;  %v1456_v59 = vmul.f32 -1.442695, %v466_v57  ;;  %v468_v60 = vadd.f32 %v467_v58, %v342_v51  ;;  %v521_v58 = vadd.s32 8, %v1998_v47 }
  0xf2   : > { %v469_v61 = vpop.f32.mrf.mxu0 }
  0xf3   : > { %v1457_v62 = vmul.f32 -1.442695, %v468_v60  ;;  %v470_v63 = vadd.f32 %v469_v61, %v346_v52  ;;  %1801 = vpow2.f32 %v1456_v59  ;;  %vm536_vm7 = vcmp.eq.s32.totalorder %v521_v58, %v534_v53 }
  0xf4   : > { %v473_v0 = vpop.f32.mrf.mxu0  ;;  %v522_v60 = vadd.s32 16, %v1998_v47  ;;  %v2061_v61 = vsel %vm536_vm7, 1.0, %v1832_v49  ;;  %vm526_vm10 = vcmp.eq.s32.totalorder %v521_v58, %v524_v50 }
  0xf5   : > { %1803 = vpow2.f32 %v1457_v62  ;;  %v1458_v1 = vmul.f32 -1.442695, %v470_v63  ;;  %v474_v2 = vadd.f32 %v473_v0, %v342_v51  ;;  %v1791_v63 = vld [vmem:[%s2177_s5 + $0x38] sm:$0xff]   ;;  %v2088_v47 = vsel %vm526_vm10, 1.0, %v1832_v49 }
  0xf6   : > { %v475_v3 = vpop.f32.mrf.mxu0  ;;  %vm537_vm8 = vcmp.eq.s32.totalorder %v522_v60, %v534_v53  ;;  %vm527_vm11 = vcmp.eq.s32.totalorder %v522_v60, %v524_v50 }
  0xf7   : > { %1805 = vpow2.f32 %v1458_v1  ;;  %v1459_v4 = vmul.f32 -1.442695, %v474_v2  ;;  %v476_v17 = vadd.f32 %v475_v3, %v346_v52  ;;  %v1466_v0 = vsel %vm537_vm8, 1.0, %v1832_v49  ;;  %v1792_v2 = vld [vmem:[%s2177_s5 + $0x30] sm:$0xff]   ;;  %v1793_v3 = vld [vmem:[%s2177_s5 + $0x28] sm:$0xff]  }
  0xf8   : > { %v477_v5 = vpop.f32.mrf.mxu0  ;;  %v2078_v1 = vsel %vm525_vm9, 1.0, %v1832_v49 }
  0xf9   : > { %1807 = vpow2.f32 %v1459_v4  ;;  %v1460_v18 = vmul.f32 -1.442695, %v476_v17  ;;  %v2098_v4 = vsel %vm527_vm11, 1.0, %v1832_v49  ;;  %v1794_v5 = vld [vmem:[%s2177_s5 + $0x20] sm:$0xff]  }
  0xfa   : > { %v478_v6 = vpop.f32.mrf.mxu0 }
  0xfe   : > { %v1800_v7 = vpop.eup %1799 }
  0xff   : > { %v498_v8 = vadd.f32 1.0, %v1800_v7  ;;  %v1795_v7 = vld [vmem:[%s2177_s5 + $0x18] sm:$0xff]  }
 0x100   : > { %v1802_v9 = vpop.eup %1801 }
 0x101   : > { %1809 = vrcp.f32 %v498_v8  ;;  %v499_v13 = vadd.f32 1.0, %v1802_v9 }
 0x102   : > { %v1804_v10 = vpop.eup %1803 }
 0x103   : > { %v500_v11 = vadd.f32 1.0, %v1804_v10  ;;  %v1796_v10 = vld [vmem:[%s2177_s5 + $0x10] sm:$0xff]  }
 0x104   : > { %v1806_v12 = vpop.eup %1805 }
 0x105   : > { %1811 = vrcp.f32 %v500_v11  ;;  %v501_v14 = vadd.f32 1.0, %v1806_v12  ;;  %v1797_v11 = vld [vmem:[%s2177_s5 + $0x8] sm:$0xff]   ;;  %v1798_v12 = vld [vmem:[%s2177_s5] sm:$0xff]  }
 0x106   : > { %v1808_v15 = vpop.eup %1807 }
 0x107   : > { %1813 = vrcp.f32 %v501_v14  ;;  %v502_v16 = vadd.f32 1.0, %v1808_v15 }
 0x108   : > { %1815 = vrcp.f32 %v499_v13 }
 0x109   : > { %1817 = vrcp.f32 %v502_v16 }
 0x10a   : > { %1819 = vpow2.f32 %v1460_v18 }
 0x10e   : > { %v1810_v19 = vpop.eup %1809 }
 0x10f   : > { %v544_v23 = vmul.f32 %v1810_v19, %v516_v20 }
 0x112   : > { %v1812_v22 = vpop.eup %1811 }
 0x113   : > { %v545_v24 = vmul.f32 %v1812_v22, %v517_v21 }
 0x114   : > { %v1814_v25 = vpop.eup %1813 }
 0x115   : > { %v1816_v27 = vpop.eup %1815  ;;  %v547_v28 = vpack.c.bf16 %v545_v24, %v544_v23  ;;  %v965_v30 = vmul.f32 %v1814_v25, %v517_v21 }
 0x116   : > { %v1818_v29 = vpop.eup %1817  ;;  %v964_v32 = vmul.f32 %v1816_v27, %v516_v20 }
 0x117   : > { %1600 = vmatprep.mubr.bf16.mxu1 %v547_v28  ;;  %1620 = vmatprep.mubr.bf16.mxu0 %v547_v28  ;;  %v546_v31 = vmul.f32 %v1818_v29, %v518_v26  ;;  %v1820_v37 = vpop.eup %1819 }
 0x118   : > { %v2013_v35 = vpack.c.bf16 %v965_v30, %v964_v32  ;;  %v503_v38 = vadd.f32 1.0, %v1820_v37 }
 0x119   : > { %v548_v33 = vpack.c.bf16 %v546_v31, %v546_v31 }
 0x11a   : > { %1821 = vrcp.f32 %v503_v38 }
 0x11b   : > { %1601 = vmatmul.mubr.bf16.vlgmr.msra.gmra.mxu1 %v548_v33  ;;  %1621 = vmatmul.mubr.bf16.vlgmr.msra.gmra.mxu0 %v548_v33 }
 0x11c   : > { %1675 = vmatpush3.bf16.msra.mxu0 %v1994_v45  ;;  %1690 = vmatprep.mubr.bf16.mxu0 %v2013_v35 }
 0x11d   : > { %1676 = vmatprep.subr.bf16.mxu0 %v1784_v34  ;;  %1630 = vmatprep.mubr.msk.f32.mxu1 %vm1833_vm3, %v1832_v49 }
 0x120   : > { %1677 = vmatpush3.bf16.msra.mxu0 %v1784_v34 }
 0x121   : > { %1678 = vmatprep.subr.bf16.mxu0 %v1785_v36 }
 0x124   : > { %1679 = vmatpush3.bf16.msra.mxu0 %v1785_v36 }
 0x125   : > { %1680 = vmatprep.subr.bf16.mxu0 %v1786_v39 }
 0x127   : > { %v1822_v44 = vpop.eup %1821 }
 0x128   : > { %1681 = vmatpush3.bf16.msra.mxu0 %v1786_v39  ;;  %v966_v45 = vmul.f32 %v1822_v44, %v518_v26 }
 0x129   : > { %1682 = vmatprep.subr.bf16.mxu0 %v1787_v40 }
 0x12a   : > { %v2035_v48 = vpack.c.bf16 %v966_v45, %v966_v45 }
 0x12c   : > { %1683 = vmatpush3.bf16.msra.mxu0 %v1787_v40 }
 0x12d   : > { %1684 = vmatprep.subr.bf16.mxu0 %v1788_v41 }
 0x130   : > { %1685 = vmatpush3.bf16.msra.mxu0 %v1788_v41 }
 0x131   : > { %1686 = vmatprep.subr.bf16.mxu0 %v1789_v42 }
 0x134   : > { %1687 = vmatpush3.bf16.msra.mxu0 %v1789_v42 }
 0x135   : > { %1688 = vmatprep.subr.bf16.mxu0 %v1790_v43 }
 0x138   : > { %1689 = vmatpush3.bf16.msra.mxu0 %v1790_v43 }
 0x139   : > { %1709 = vmatprep.subr.mxu0 %v1832_v49 }
 0x13b   : > { %1691 = vmatmul.mubr.bf16.vlgmr.msra.gmra.mxu0 %v2035_v48 }
 0x13c   : > { %1715 = vmatprep.mubr.msk.f32.mxu0 %vm1833_vm3, %v1832_v49 }
 0x1db   : > { %v1602_v51 = vpop.f32.mrf.mxu1  ;;  %v1622_v52 = vpop.f32.mrf.mxu0 }
 0x1dc   : > { %1625 = vmatpush3.msk.msra.mxu1 %vm783_vm4, %v1622_v52 }
 0x1dd   : > { %v647_v54 = vpop.f32.mrf.mxu1  ;;  %v759_v55 = vpop.f32.mrf.mxu0  ;;  %1626 = vmatprep.subr.mxu1 %v1832_v49 }
 0x1df   : > { %v1603_v56 = vpop.f32.mrf.mxu1  ;;  %v1623_v57 = vpop.f32.mrf.mxu0 }
 0x1e1   : > { %v762_v59 = vpop.f32.mrf.mxu0  ;;  %v650_v62 = vpop.f32.mrf.mxu1 }
 0x1e2   : > { %1627 = vmatpush3.msra.mxu1 %v762_v59 }
 0x1e3   : > { %1628 = vmatprep.subr.mxu1 %v1832_v49 }
 0x1e4   : > { %1629 = vmatpush3.msra.mxu1 %v759_v55 }
 0x1e5   : > { %1631 = vmatmul.mubr.msk.f32.vlgmr.msra.gmra.mxu1 %vm773_vm6, %v2050_v46  ;;  %1639 = vmatprep.subr.mxu1 %v1832_v49 }
 0x1e6   : > { %1640 = vmatpush3.msk.msra.mxu1 %vm783_vm4, %v1602_v51  ;;  %1633 = vmatprep.mubr.msk.f32.mxu1 %vm1833_vm3, %v1832_v49 }
 0x1e7   : > { %1641 = vmatprep.subr.mxu1 %v1832_v49 }
 0x1e8   : > { %1642 = vmatpush3.msra.mxu1 %v650_v62 }
 0x1e9   : > { %1634 = vmatmul.mubr.msk.f32.gmra.mxu1 %vm773_vm6, %v2061_v61  ;;  %1643 = vmatprep.subr.mxu1 %v1832_v49 }
 0x1ea   : > { %1644 = vmatpush3.msra.mxu1 %v647_v54  ;;  %1636 = vmatprep.mubr.msk.f32.mxu1 %vm1833_vm3, %v1832_v49 }
 0x1eb   : > { %1654 = vmatprep.subr.bf16.mxu1 %v1791_v63 }
 0x1ed   : > { %1637 = vmatmul.mubr.msk.f32.gmra.mxu1 %vm773_vm6, %v1466_v0 }
 0x1ee   : > { %1645 = vmatprep.mubr.msk.f32.mxu1 %vm1833_vm3, %v1832_v49 }
 0x1f1   : > { %1646 = vmatmul.mubr.msk.f32.vlgmr.msra.gmra.mxu1 %vm773_vm6, %v2078_v1 }
 0x1f2   : > { %1655 = vmatpush3.bf16.msra.mxu1 %v1791_v63  ;;  %1648 = vmatprep.mubr.msk.f32.mxu1 %vm1833_vm3, %v1832_v49 }
 0x1f3   : > { %1656 = vmatprep.subr.bf16.mxu1 %v1792_v2 }
 0x1f5   : > { %1649 = vmatmul.mubr.msk.f32.gmra.mxu1 %vm773_vm6, %v2088_v47 }
 0x1f6   : > { %1657 = vmatpush3.bf16.msra.mxu1 %v1792_v2  ;;  %1651 = vmatprep.mubr.msk.f32.mxu1 %vm1833_vm3, %v1832_v49 }
 0x1f7   : > { %1658 = vmatprep.subr.bf16.mxu1 %v1793_v3 }
 0x1f9   : > { %1652 = vmatmul.mubr.msk.f32.gmra.mxu1 %vm773_vm6, %v2098_v4 }
 0x1fa   : > { %1659 = vmatpush3.bf16.msra.mxu1 %v1793_v3  ;;  %1670 = vmatprep.mubr.bf16.mxu1 %v2013_v35 }
 0x1fb   : > { %v1692_v6 = vpop.f32.mrf.mxu0  ;;  %1660 = vmatprep.subr.bf16.mxu1 %v1794_v5 }
 0x1fd   : > { %v1179_v8 = vpop.f32.mrf.mxu0 }
 0x1fe   : > { %1661 = vmatpush3.bf16.msra.mxu1 %v1794_v5 }
 0x1ff   : > { %v1693_v9 = vpop.f32.mrf.mxu0  ;;  %1662 = vmatprep.subr.bf16.mxu1 %v1795_v7 }
 0x201   : > { %v1182_v13 = vpop.f32.mrf.mxu0 }
 0x202   : > { %1663 = vmatpush3.bf16.msra.mxu1 %v1795_v7 }
 0x203   : > { %1664 = vmatprep.subr.bf16.mxu1 %v1796_v10 }
 0x206   : > { %1665 = vmatpush3.bf16.msra.mxu1 %v1796_v10 }
 0x207   : > { %1666 = vmatprep.subr.bf16.mxu1 %v1797_v11 }
 0x20a   : > { %1667 = vmatpush3.bf16.msra.mxu1 %v1797_v11 }
 0x20b   : > { %1668 = vmatprep.subr.bf16.mxu1 %v1798_v12 }
 0x20e   : > { %1669 = vmatpush3.bf16.msra.mxu1 %v1798_v12 }
 0x20f   : > { %1694 = vmatprep.subr.mxu1 %v1832_v49 }
 0x211   : > { %1671 = vmatmul.mubr.bf16.vlgmr.msra.gmra.mxu1 %v2035_v48 }
 0x212   : > { %1695 = vmatpush3.msk.msra.mxu1 %vm783_vm4, %v1692_v6  ;;  %1700 = vmatprep.mubr.msk.f32.mxu1 %vm1833_vm3, %v1832_v49 }
 0x213   : > { %1696 = vmatprep.subr.mxu1 %v1832_v49 }
 0x214   : > { %1697 = vmatpush3.msra.mxu1 %v1182_v13 }
 0x215   : > { %1698 = vmatprep.subr.mxu1 %v1832_v49 }
 0x216   : > { %1699 = vmatpush3.msra.mxu1 %v1179_v8 }
 0x217   : > { %1724 = vmatprep.subr.mxu1 %v1832_v49 }
 0x219   : > { %1701 = vmatmul.mubr.msk.f32.vlgmr.msra.gmra.mxu1 %vm773_vm6, %v2050_v46 }
 0x21a   : > { %1703 = vmatprep.mubr.msk.f32.mxu1 %vm1833_vm3, %v1832_v49 }
 0x21d   : > { %1704 = vmatmul.mubr.msk.f32.gmra.mxu1 %vm773_vm6, %v2061_v61 }
 0x21e   : > { %1706 = vmatprep.mubr.msk.f32.mxu1 %vm1833_vm3, %v1832_v49 }
 0x221   : > { %1707 = vmatmul.mubr.msk.f32.gmra.mxu1 %vm773_vm6, %v1466_v0 }
 0x222   : > { %1718 = vmatprep.mubr.msk.f32.mxu1 %vm1833_vm3, %v1832_v49 }
 0x2a5   : > { %v853_v14 = vpop.f32.mrf.mxu1 }
 0x2a7   : > { %v1632_v15 = vpop.f32.mrf.mxu1 }
 0x2a9   : > { %v858_v16 = vpop.f32.mrf.mxu1 }
 0x2ab   : > { %v1635_v17 = vpop.f32.mrf.mxu1 }
 0x2ad   : > { %v863_v18 = vpop.f32.mrf.mxu1 }
 0x2af   : > { %v1638_v19 = vpop.f32.mrf.mxu1 }
 0x2b1   : > { %v945_v20 = vpop.f32.mrf.mxu1 }
 0x2b2   : > { %v946_v21 = vadd.f32 %v945_v20, %v853_v14 }
 0x2b3   : > { %v1647_v22 = vpop.f32.mrf.mxu1 }
 0x2b4   : > { %960 = vst.msk [vmem:[%s2141_s10] sm:$0xff] %vm959_vm12, %v946_v21 }
 0x2b5   : > { %v950_v23 = vpop.f32.mrf.mxu1 }
 0x2b6   : > { %v951_v24 = vadd.f32 %v950_v23, %v858_v16 }
 0x2b7   : > { %v1650_v25 = vpop.f32.mrf.mxu1 }
 0x2b8   : > { %961 = vst.msk [vmem:[%s2141_s10 + $0x8] sm:$0xff] %vm959_vm12, %v951_v24 }
 0x2b9   : > { %v955_v26 = vpop.f32.mrf.mxu1 }
 0x2ba   : > { %v956_v27 = vadd.f32 %v955_v26, %v863_v18 }
 0x2bb   : > { %v1653_v28 = vpop.f32.mrf.mxu1 }
 0x2bc   : > { %963 = vst.msk [vmem:[%s2141_s10 + $0x10] sm:$0x7f] %vm962_vm13, %v956_v27 }
 0x2d1   : > { %v1672_v29 = vpop.f32.mrf.mxu1 }
 0x2d2   : > { %1710 = vmatpush3.msk.msra.mxu0 %vm783_vm4, %v1672_v29  ;;  %1727 = vmatpush3.msk.msra.mxu1 %vm783_vm4, %v1672_v29 }
 0x2d3   : > { %v1067_v30 = vpop.f32.mrf.mxu1  ;;  %1711 = vmatprep.subr.mxu0 %v1832_v49  ;;  %1725 = vmatprep.subr.mxu1 %v1832_v49 }
 0x2d5   : > { %v1673_v31 = vpop.f32.mrf.mxu1 }
 0x2d7   : > { %v1070_v32 = vpop.f32.mrf.mxu1 }
 0x2d8   : > { %1712 = vmatpush3.msra.mxu0 %v1070_v32  ;;  %1728 = vmatpush3.msra.mxu1 %v1070_v32 }
 0x2d9   : > { %1713 = vmatprep.subr.mxu0 %v1832_v49  ;;  %1726 = vmatprep.subr.mxu1 %v1832_v49  ;;  %v1262_v33 = vpop.f32.mrf.mxu1 }
 0x2da   : > { %1714 = vmatpush3.msra.mxu0 %v1067_v30  ;;  %1729 = vmatpush3.msra.mxu1 %v1067_v30 }
 0x2db   : > { %1716 = vmatmul.mubr.msk.f32.vlgmr.msra.gmra.mxu0 %vm773_vm6, %v2078_v1  ;;  %1719 = vmatmul.mubr.msk.f32.vlgmr.msra.gmra.mxu1 %vm773_vm6, %v2088_v47  ;;  %v1702_v34 = vpop.f32.mrf.mxu1 }
 0x2dc   : > { %1721 = vmatprep.mubr.msk.f32.mxu1 %vm1833_vm3, %v1832_v49 }
 0x2dd   : > { %v1267_v35 = vpop.f32.mrf.mxu1 }
 0x2df   : > { %1722 = vmatmul.mubr.msk.f32.gmra.mxu1 %vm773_vm6, %v2098_v4  ;;  %v1705_v36 = vpop.f32.mrf.mxu1 }
 0x2e1   : > { %v1272_v37 = vpop.f32.mrf.mxu1 }
 0x2e3   : > { %v1708_v38 = vpop.f32.mrf.mxu1 }
 0x39b   : > { %v1345_v39 = vpop.f32.mrf.mxu0  ;;  %v1350_v40 = vpop.f32.mrf.mxu1 }
 0x39c   : > { %v1346_v41 = vadd.f32 %v1345_v39, %v1262_v33  ;;  %v1351_v42 = vadd.f32 %v1350_v40, %v1267_v35 }
 0x39d   : > { %v1720_v43 = vpop.f32.mrf.mxu1  ;;  %v1717_v44 = vpop.f32.mrf.mxu0 }
 0x39e   : > { %1515 = vst.msk [vmem:[%s2141_s10 + $0x18] sm:$0xff] %vm959_vm12, %v1346_v41  ;;  %1516 = vst.msk [vmem:[%s2141_s10 + $0x20] sm:$0xff] %vm959_vm12, %v1351_v42 }
 0x39f   : > { %v1355_v45 = vpop.f32.mrf.mxu1 }
 0x3a0   : > { %v1356_v48 = vadd.f32 %v1355_v45, %v1272_v37 }
 0x3a1   : > { %v1723_v49 = vpop.f32.mrf.mxu1 }
 0x3a2   : > { %1517 = vst.msk [vmem:[%s2141_s10 + $0x28] sm:$0x7f] %vm962_vm13, %v1356_v48 }
 0x3a3 PF: > { %s17_s24 = sadd.s32 1, %s1829_s24  }
 0x3a4   : > { %p14_p4 = scmp.ge.s32.totalorder %s17_s24, 4  }
 0x3a6   :  { %16 = sbr.rel (!%p14_p4) target bundleno = 1 (0x1), region = 82 }

// kernel: _lambda_.4
= control target key start
LH: loop header
LB: loop body
LE: loop exit
PB: predicated region body
PF: predicated region fallthrough
CT: control target
= control target key end

     0   :  { %11 = vsyncpa [#allocation3], 0  ;;  %s7153_s0 = inlined_call_operand.vmem [shape: f32[2,22,128], index: 0, kind: input, shape index: {}]   ;;  %s7154_s1 = inlined_call_operand.vmem [shape: bf16[6,128,128], index: 1, kind: input, shape index: {}]   ;;  %s7155_s2 = inlined_call_operand.vmem [shape: f32[6,3,128], index: 2, kind: input, shape index: {}]   ;;  %s7156_s3 = inlined_call_operand.hbm [shape: bf16[6,128,128], index: 3, kind: input, shape index: {}]   ;;  %s7157_s4 = inlined_call_operand.hbm [shape: bf16[6,128,128], index: 4, kind: input, shape index: {}]   ;;  %s7158_s5 = inlined_call_operand.vmem [shape: f32[6,10,128], index: 5, kind: input, shape index: {}]   ;;  %s7159_s6 = inlined_call_operand.vmem [shape: f32[2,22,128], index: 6, kind: output, shape index: {}]  }
   0x1   :  { %12 = vsyncpa [#allocation5], 0  ;;  %s6104_s21 = smov 0  }
   0x2 LB: > { %s6110_s22 = sadd.s32 4294967295, %s6060_s21   ;;  %p4634_p0 = scmp.ge.s32.totalorder %s6060_s21, 1  ;;  %s6060_s21 = sphi %s6104_s21, %s18_s21  }
   0x3   : > { %p180_p1 = scmp.lt.s32.totalorder %s6060_s21, 3  ;;  %s6062_s23 = smov [#allocation2]  }
   0x4   : > { %s198_s24 = sshll.u32 %s6062_s23, 4  ;;  %p5807_p3 = scmp.eq.s32.totalorder %s6110_s22, 0  ;;  %s199_s24 = int_to_ptr.vmem [resolvable:$true] %s198_s24 }
   0x5   : > { %p6114_p2 = pnand %p4634_p0, %p180_p1  ;;  %s6063_s26 = smov [#allocation4]  }
   0x6   : > { %s211_s27 = sshll.u32 %s6063_s26, 4  ;;  %s6005_s29 = scalar_lea.vmem %s199_s24, 6144  ;;  %s212_s27 = int_to_ptr.vmem [resolvable:$true] %s211_s27 }
   0x7   : > { %p5800_p4 = pneg %p6114_p2  ;;  %p6006_p7 = scmp.ne.s32.totalorder %s199_s24, %s6005_s29 }
   0x8   : > { %p6013_p10 = scmp.lt.s32.totalorder %s199_s24, %s199_s24  ;;  %p6014_p11 = scmp.lt.s32.totalorder %s6005_s29, %s6005_s29 }
   0x9   : > { %p6123_p5 = pnand %p5807_p3, %p5800_p4 }
   0xa   : > { %p6015_p12 = por %p6014_p11, %p6013_p10 }
   0xb   : > { %p5996_p6 = pneg %p6123_p5 }
   0xd   : > { %p6008_p8 = pnand %p6006_p7, %p5996_p6 }
   0xf   : > { %p6009_p9 = pneg %p6008_p8 }
  0x11   : > { %p6016_p13 = pnand %p6015_p12, %p6009_p9 }
  0x13   : > { %6019 = shalt.err (!%p6016_p13)
}
  0x14   : > { %s6064_s30 = smov 64   ;;  %s6065_s7 = smov 4  }
  0x15   : > { %5803 = dma.hbm_to_vmem [thread:$0]  (!%p6123_p5), %s7156_s3, 6144, %s199_s24, [#allocation3], %s6064_s30, %s6064_s30, %s6065_s7  }
  0x16   : > { %s6031_s10 = scalar_lea.vmem %s212_s27, 6144  ;;  %p6039_p7 = scmp.lt.s32.totalorder %s212_s27, %s212_s27 }
  0x17   : > { %p6032_p0 = scmp.ne.s32.totalorder %s212_s27, %s6031_s10  ;;  %p6040_p8 = scmp.lt.s32.totalorder %s6031_s10, %s6031_s10 }
  0x19   : > { %p6034_p1 = pnand %p6032_p0, %p5996_p6  ;;  %p6041_p10 = por %p6040_p8, %p6039_p7 }
  0x1b   : > { %p6035_p4 = pneg %p6034_p1 }
  0x1d   : > { %p6042_p9 = pnand %p6041_p10, %p6035_p4 }
  0x1f   : > { %6045 = shalt.err (!%p6042_p9)
}
  0x20   : > { %5806 = dma.hbm_to_vmem [thread:$0]  (!%p6123_p5), %s7157_s4, 6144, %s212_s27, [#allocation5], %s6064_s30, %s6064_s30, %s6065_s7  }
  0x21   : > { %238 = sbr.rel (%p6114_p2) target bundleno = 7327 (0x1c9f), region = 44 }
  0x26   : > { %6051 = dma.done.wait (%p5807_p3), [#allocation3], 6144  }
  0x27   : > { %6053 = vsyncadd (%p5807_p3), [#allocation3], 4294961152 }
  0x28   : > { %6055 = dma.done.wait (%p5807_p3), [#allocation5], 6144  }
  0x29   : > { %6057 = vsyncadd (%p5807_p3), [#allocation5], 4294961152  ;;  %p272_p6 = scmp.lt.s32.totalorder %s6110_s22, 1  ;;  %v5826_v0 = vld [vmem:[%s7154_s1 + $0x38] sm:$0xff]   ;;  %v5827_v1 = vld [vmem:[%s7154_s1 + $0x30] sm:$0xff]   ;;  %v283_v13 = vlaneseq  ;;  %vm498_vm3 = vcmask 1045504  }
  0x2a   : > { %5193 = vmatprep.subr.bf16.mxu0 %v5826_v0  ;;  %v5828_v2 = vld [vmem:[%s7154_s1 + $0x28] sm:$0xff]   ;;  %v5829_v3 = vld [vmem:[%s7154_s1 + $0x20] sm:$0xff]   ;;  %v5830_v7 = vld [vmem:[%s7154_s1 + $0x18] sm:$0xff]   ;;  %v6066_v56 = vmov 0.0   ;;  %vm6067_vm4 = vmmov 0   ;;  %s6068_s25 = smov 0.0  }
  0x2b   : > { %s7163_s22 = smov (!%p272_p6, %s6110_s22), 1  ;;  %5194 = vmatpush3.bf16.msra.mxu0 %v5826_v0  ;;  %v5831_v8 = vld [vmem:[%s7154_s1 + $0x10] sm:$0xff]   ;;  %v5832_v9 = vld [vmem:[%s7154_s1 + $0x8] sm:$0xff]   ;;  %v5833_v10 = vld [vmem:[%s7154_s1] sm:$0xff]   ;;  %v6195_v14 = vshrl.u32 %v283_v13, 7  ;;  %5228 = vmatprep.subr.mxu1 %v6066_v56  ;;  %vm557_vm7 = vcmask 179200  }
  0x2c   : > { %s5719_s17 = smul.u32 24, %s7163_s22  ;;  %5195 = vmatprep.subr.bf16.mxu0 %v5827_v1  ;;  %v6203_v16 = vld [vmem:[%s7158_s5] sm:$0xff]  ;;  %v6210_v18 = vld [vmem:[%s7158_s5 + $0x8] sm:$0x3]  ;;  %5234 = vmatprep.mubr.msk.f32.mxu1 %vm6067_vm4, %v6066_v56 }
  0x2d   : > { %v6198_v15 = vsub.s32 0, %v6195_v14  ;;  %v6229_v59 = vsub.s32 1, %v6195_v14  ;;  %v6232_v61 = vsub.s32 2, %v6195_v14 }
  0x2e   : > { %s6174_s24 = scalar_lea.vmem %s7153_s0, %s5719_s17 }
  0x2f   : > { %5196 = vmatpush3.bf16.msra.mxu0 %v5827_v1  ;;  %v361_v4 = vld [vmem:[%s6174_s24] sm:$0xff]  ;;  %v362_v5 = vld [vmem:[%s6174_s24 + $0x8] sm:$0xff]  ;;  %v363_v11 = vld [vmem:[%s6174_s24 + $0x10] sm:$0x3f]  ;;  %v387_v17 = vrot.slane %v6203_v16, %v6198_v15  ;;  %v490_v21 = vrot.slane %v6210_v18, %v6198_v15  ;;  %v545_v1 = vrot.slane %v6203_v16, %v6229_v59 }
  0x30   : > { %5197 = vmatprep.subr.bf16.mxu0 %v5828_v2  ;;  %v366_v6 = vpack.c.bf16 %v362_v5, %v361_v4  ;;  %v367_v12 = vpack.c.bf16 %v363_v11, %v363_v11  ;;  %v6240_v4 = vand.u32 127, %v283_v13 }
  0x32   : > { %5209 = vmatprep.mubr.bf16.mxu0 %v366_v6 }
  0x33   : > { %5198 = vmatpush3.bf16.msra.mxu0 %v5828_v2 }
  0x34   : > { %5199 = vmatprep.subr.bf16.mxu0 %v5829_v3 }
  0x37   : > { %5200 = vmatpush3.bf16.msra.mxu0 %v5829_v3  ;;  %v552_v3 = vrot.slane %v6203_v16, %v6232_v61 }
  0x38   : > { %5201 = vmatprep.subr.bf16.mxu0 %v5830_v7 }
  0x3b   : > { %5202 = vmatpush3.bf16.msra.mxu0 %v5830_v7 }
  0x3c   : > { %5203 = vmatprep.subr.bf16.mxu0 %v5831_v8 }
  0x3f   : > { %5204 = vmatpush3.bf16.msra.mxu0 %v5831_v8  ;;  %v4643_v8 = vadd.s32 4294967295, %v6195_v14 }
  0x40   : > { %5205 = vmatprep.subr.bf16.mxu0 %v5832_v9 }
  0x41   : > { %vm292_vm5 = vcmp.eq.s32.totalorder %v6240_v4, %v4643_v8 }
  0x43   : > { %5206 = vmatpush3.bf16.msra.mxu0 %v5832_v9  ;;  %v301_v9 = vadd.s32 1, %v6195_v14 }
  0x44   : > { %5207 = vmatprep.subr.bf16.mxu0 %v5833_v10 }
  0x45   : > { %vm304_vm6 = vcmp.eq.s32.totalorder %v6240_v4, %v301_v9 }
  0x47   : > { %5208 = vmatpush3.bf16.msra.mxu0 %v5833_v10  ;;  %v6245_v10 = vadd.s32 8, %v6195_v14 }
  0x48   : > { %5213 = vmatprep.subr.mxu0 %v6066_v56 }
  0x49   : > { %v4644_v13 = vadd.s32 4294967295, %v6245_v10 }
  0x4a   : > { %5210 = vmatmul.mubr.bf16.vlgmr.msra.gmra.mxu0 %v367_v12 }
  0x4b   : > { %5219 = vmatprep.mubr.msk.f32.mxu0 %vm6067_vm4, %v6066_v56  ;;  %vm293_vm8 = vcmp.eq.s32.totalorder %v6240_v4, %v4644_v13 }
 0x10a   : > { %v5211_v19 = vpop.f32.mrf.mxu0 }
 0x10b   : > { %v479_v20 = vadd.f32 %v5211_v19, %v387_v17 }
 0x10c   : > { %v470_v22 = vpop.f32.mrf.mxu0 }
 0x10d   : > { %v471_v23 = vadd.f32 %v470_v22, %v387_v17  ;;  %v493_v26 = vmul.f32 %v490_v21, %v479_v20  ;;  %vm486_vm1 = vcmp.ge.f32.partialorder %v479_v20, 0.0 }
 0x10e   : > { %v5212_v24 = vpop.f32.mrf.mxu0 }
 0x10f   : > { %v491_v25 = vmul.f32 %v490_v21, %v471_v23  ;;  %vm484_vm0 = vcmp.ge.f32.partialorder %v471_v23, 0.0  ;;  %v6214_v31 = vsel %vm486_vm1, %v479_v20, %v493_v26  ;;  %v302_v20 = vadd.s32 1, %v6245_v10 }
 0x110   : > { %v473_v27 = vpop.f32.mrf.mxu0  ;;  %v499_v36 = vsel %vm498_vm3, %v6214_v31, 0.0  ;;  %v513_v37 = vmul.f32 %v6214_v31, %v6214_v31  ;;  %v6263_v24 = vsel %vm292_vm5, 1.0, %v6066_v56 }
 0x111   : > { %v474_v28 = vadd.f32 %v473_v27, %v387_v17  ;;  %v494_v30 = vsel %vm484_vm0, %v471_v23, %v491_v25  ;;  %v6266_v25 = vsel %vm304_vm6, 1.0, %v6066_v56  ;;  %vm305_vm9 = vcmp.eq.s32.totalorder %v6240_v4, %v302_v20 }
 0x112   : > { %v511_v34 = vmul.f32 %v494_v30, %v494_v30  ;;  %v515_v40 = vsel %vm498_vm3, %v513_v37, 0.0 }
 0x113   : > { %vm485_vm2 = vcmp.ge.f32.partialorder %v474_v28, 0.0  ;;  %v492_v29 = vmul.f32 %v490_v21, %v474_v28  ;;  %v6254_v21 = vadd.s32 16, %v6195_v14 }
 0x115   : > { %v495_v32 = vsel %vm485_vm2, %v474_v28, %v492_v29  ;;  %v4645_v26 = vadd.s32 4294967295, %v6254_v21  ;;  %v303_v27 = vadd.s32 1, %v6254_v21  ;;  %v6283_v28 = vsel %vm293_vm8, 1.0, %v6066_v56 }
 0x116   : > { %v497_v33 = vadd.f32 %v495_v32, %v494_v30  ;;  %v512_v35 = vmul.f32 %v495_v32, %v495_v32  ;;  %v6286_v29 = vsel %vm305_vm9, 1.0, %v6066_v56 }
 0x117   : > { %vm294_vm10 = vcmp.eq.s32.totalorder %v6240_v4, %v4645_v26  ;;  %vm306_vm11 = vcmp.eq.s32.totalorder %v6240_v4, %v303_v27 }
 0x118   : > { %v500_v38 = vadd.f32 %v499_v36, %v497_v33  ;;  %v514_v39 = vadd.f32 %v512_v35, %v511_v34  ;;  %v6315_v36 = vsub.s32 3, %v6195_v14 }
 0x11a   : > { %501 = vadd.xlane.f32.xlu0 %v500_v38  ;;  %v516_v41 = vadd.f32 %v515_v40, %v514_v39 }
 0x11e   : > { %517 = vadd.xlane.f32.xlu0 %v516_v41 }
 0x1a3   : > { %v502_v42 = vpop.xlane.xlu0 %501 }
 0x1a4   : > { %v503_v43 = vrot.slane %v502_v42, 4 }
 0x1a6   : > { %v504_v44 = vadd.f32 %v503_v43, %v502_v42 }
 0x1a7   : > { %v518_v45 = vpop.xlane.xlu0 %517 }
 0x1a8   : > { %v505_v46 = vrot.slane %v504_v44, 2  ;;  %v519_v47 = vrot.slane %v518_v45, 4 }
 0x1aa   : > { %v520_v48 = vadd.f32 %v519_v47, %v518_v45  ;;  %v506_v49 = vadd.f32 %v505_v46, %v504_v44  ;;  %v769_v45 = vrot.slane %v6203_v16, %v6315_v36 }
 0x1ac   : > { %v521_v50 = vrot.slane %v520_v48, 2  ;;  %v507_v51 = vrot.slane %v506_v49, 1 }
 0x1ae   : > { %v508_v52 = vadd.f32 %v507_v51, %v506_v49  ;;  %v522_v53 = vadd.f32 %v521_v50, %v520_v48 }
 0x1b0   : > { %5720 = vpush %v508_v52  ;;  %v523_v54 = vrot.slane %v522_v53, 1  ;;  %v779_v52 = vrot.slane %v6210_v18, %v6229_v59 }
 0x1b2   : > { %v524_v55 = vadd.f32 %v523_v54, %v522_v53 }
 0x1b4   : > { %5722 = vpush %v524_v55 }
 0x1e1   : > { %s5721_s15 = spop %5720 }
 0x1e2   : > { %s510_s16 = smul.f32 0.0014204546, %s5721_s15 }
 0x1e4   : > { %s527_s18 = smul.f32 %s510_s16, %s510_s16  ;;  %v530_v60 = vstv %s510_s16 }
 0x1e5   : > { %s5723_s19 = spop %5722  ;;  %v531_v62 = vsub.f32 %v494_v30, %v530_v60  ;;  %v532_v63 = vsub.f32 %v495_v32, %v530_v60  ;;  %v533_v0 = vsub.f32 %v6214_v31, %v530_v60  ;;  %v6299_v30 = vsel %vm294_vm10, 1.0, %v6066_v56  ;;  %v556_v32 = vld [vmem:[%s7155_s2] sm:$0x7] }
 0x1e6   : > { %s526_s20 = smul.f32 0.0014204546, %s5723_s19  ;;  %v6302_v31 = vsel %vm306_vm11, 1.0, %v6066_v56  ;;  %v742_v33 = vrot.slane %v556_v32, %v6198_v15  ;;  %v749_v34 = vrot.slane %v556_v32, %v6229_v59  ;;  %v759_v35 = vrot.slane %v556_v32, %v6232_v61 }
 0x1e8   : > { %s528_s23 = ssub.f32 %s526_s20, %s527_s18 }
 0x1ea   : > { %s529_s26 = smax.f32 %s6068_s25, %s528_s23 }
 0x1eb   : > { %s534_s27 = sadd.f32 1e-10, %s529_s26 }
 0x1ed   : > { %v535_v57 = vstv %s534_s27 }
 0x1ee   : > { %5962 = vrsqrt.f32 %v535_v57 }
 0x1fb   : > { %v5963_v58 = vpop.eup %5962 }
 0x1fc   : > { %5724 = vpush %v5963_v58 }
 0x22d   : > { %s5725_s28 = spop %5724 }
 0x22e   : > { %v538_v2 = vstv %s5725_s28 }
 0x22f   : > { %v539_v5 = vmul.f32 %v538_v2, %v531_v62  ;;  %v540_v6 = vmul.f32 %v538_v2, %v532_v63  ;;  %v541_v7 = vmul.f32 %v538_v2, %v533_v0 }
 0x231   : > { %v547_v11 = vmul.f32 %v545_v1, %v540_v6  ;;  %v548_v12 = vmul.f32 %v545_v1, %v541_v7  ;;  %v546_v17 = vmul.f32 %v545_v1, %v539_v5 }
 0x233   : > { %v6247_v19 = vadd.f32 %v552_v3, %v548_v12  ;;  %v554_v22 = vadd.f32 %v552_v3, %v547_v11  ;;  %v553_v23 = vadd.f32 %v552_v3, %v546_v17 }
 0x235   : > { %5214 = vmatpush3.msk.msra.mxu0 %vm498_vm3, %v6247_v19  ;;  %5229 = vmatpush3.msk.msra.mxu1 %vm498_vm3, %v6247_v19  ;;  %v750_v40 = vmul.f32 %v749_v34, %v553_v23  ;;  %v751_v50 = vmul.f32 %v749_v34, %v554_v22  ;;  %v752_v60 = vmul.f32 %v749_v34, %v6247_v19 }
 0x236   : > { %5215 = vmatprep.subr.mxu0 %v6066_v56  ;;  %5230 = vmatprep.subr.mxu1 %v6066_v56 }
 0x237   : > { %5216 = vmatpush3.msra.mxu0 %v554_v22  ;;  %5231 = vmatpush3.msra.mxu1 %v554_v22 }
 0x238   : > { %5217 = vmatprep.subr.mxu0 %v6066_v56  ;;  %5232 = vmatprep.subr.mxu1 %v6066_v56 }
 0x239   : > { %5218 = vmatpush3.msra.mxu0 %v553_v23  ;;  %5233 = vmatpush3.msra.mxu1 %v553_v23 }
 0x23a   : > { %5220 = vmatmul.mubr.msk.f32.vlgmr.msra.gmra.mxu0 %vm557_vm7, %v6263_v24  ;;  %5235 = vmatmul.mubr.msk.f32.vlgmr.msra.gmra.mxu1 %vm557_vm7, %v6266_v25 }
 0x23b   : > { %5222 = vmatprep.mubr.msk.f32.mxu0 %vm6067_vm4, %v6066_v56  ;;  %5237 = vmatprep.mubr.msk.f32.mxu1 %vm6067_vm4, %v6066_v56 }
 0x23e   : > { %5223 = vmatmul.mubr.msk.f32.gmra.mxu0 %vm557_vm7, %v6283_v28  ;;  %5238 = vmatmul.mubr.msk.f32.gmra.mxu1 %vm557_vm7, %v6286_v29 }
 0x23f   : > { %5225 = vmatprep.mubr.msk.f32.mxu0 %vm6067_vm4, %v6066_v56  ;;  %5240 = vmatprep.mubr.msk.f32.mxu1 %vm6067_vm4, %v6066_v56 }
 0x242   : > { %5226 = vmatmul.mubr.msk.f32.gmra.mxu0 %vm557_vm7, %v6299_v30  ;;  %5241 = vmatmul.mubr.msk.f32.gmra.mxu1 %vm557_vm7, %v6302_v31 }
 0x2fa   : > { %v636_v37 = vpop.f32.mrf.mxu0  ;;  %v725_v38 = vpop.f32.mrf.mxu1 }
 0x2fb   : > { %v743_v39 = vmul.f32 %v742_v33, %v636_v37  ;;  %v760_v41 = vmul.f32 %v759_v35, %v725_v38  ;;  %v5835_v37 = vld [vmem:[#allocation4 + $0x38] sm:$0xff]   ;;  %v5836_v38 = vld [vmem:[#allocation2 + $0x30] sm:$0xff]  }
 0x2fc   : > { %v5221_v42 = vpop.f32.mrf.mxu0  ;;  %v5236_v43 = vpop.f32.mrf.mxu1  ;;  %5263 = vmatprep.subr.bf16.mxu0 %v5835_v37 }
 0x2fd   : > { %v753_v44 = vadd.f32 %v750_v40, %v743_v39  ;;  %v5837_v39 = vld [vmem:[#allocation4 + $0x30] sm:$0xff]   ;;  %5264 = vmatpush3.bf16.msra.mxu0 %v5835_v37  ;;  %v5838_v40 = vld [vmem:[#allocation2 + $0x28] sm:$0xff]   ;;  %v5840_v42 = vld [vmem:[#allocation2 + $0x20] sm:$0xff]  }
 0x2fe   : > { %v641_v46 = vpop.f32.mrf.mxu0  ;;  %v730_v47 = vpop.f32.mrf.mxu1  ;;  %5265 = vmatprep.subr.bf16.mxu0 %v5837_v39  ;;  %v5841_v43 = vld [vmem:[#allocation4 + $0x20] sm:$0xff]  }
 0x2ff   : > { %v763_v48 = vadd.f32 %v760_v41, %v753_v44  ;;  %v744_v49 = vmul.f32 %v742_v33, %v641_v46  ;;  %v761_v51 = vmul.f32 %v759_v35, %v730_v47  ;;  %v5839_v41 = vld [vmem:[#allocation4 + $0x28] sm:$0xff]   ;;  %v5842_v44 = vld [vmem:[#allocation2 + $0x18] sm:$0xff]   ;;  %v5844_v46 = vld [vmem:[#allocation2 + $0x10] sm:$0xff]  }
 0x300   : > { %v5224_v53 = vpop.f32.mrf.mxu0  ;;  %v5239_v54 = vpop.f32.mrf.mxu1  ;;  %v5845_v47 = vld [vmem:[#allocation4 + $0x10] sm:$0xff]  }
 0x301   : > { %v770_v55 = vadd.f32 %v769_v45, %v763_v48  ;;  %v754_v57 = vadd.f32 %v751_v50, %v744_v49  ;;  %5266 = vmatpush3.bf16.msra.mxu0 %v5837_v39 }
 0x302   : > { %v646_v58 = vpop.f32.mrf.mxu0  ;;  %v735_v62 = vpop.f32.mrf.mxu1  ;;  %5267 = vmatprep.subr.bf16.mxu0 %v5839_v41 }
 0x303   : > { %v764_v63 = vadd.f32 %v761_v51, %v754_v57  ;;  %v745_v0 = vmul.f32 %v742_v33, %v646_v58  ;;  %v762_v1 = vmul.f32 %v759_v35, %v735_v62  ;;  %vm773_vm12 = vcmp.ge.f32.partialorder %v770_v55, 0.0  ;;  %v5834_v35 = vld [vmem:[#allocation2 + $0x38] sm:$0xff]  }
 0x304   : > { %v5227_v2 = vpop.f32.mrf.mxu0  ;;  %v5242_v3 = vpop.f32.mrf.mxu1  ;;  %v780_v5 = vmul.f32 %v779_v52, %v770_v55  ;;  %5243 = vmatprep.subr.bf16.mxu1 %v5834_v35 }
 0x305   : > { %v771_v6 = vadd.f32 %v769_v45, %v764_v63  ;;  %v755_v7 = vadd.f32 %v752_v60, %v745_v0  ;;  %5244 = vmatpush3.bf16.msra.mxu1 %v5834_v35  ;;  %5268 = vmatpush3.bf16.msra.mxu0 %v5839_v41  ;;  %v5846_v63 = vld [vmem:[#allocation2 + $0x8] sm:$0xff]   ;;  %v5848_v3 = vld [vmem:[#allocation2] sm:$0xff]  }
 0x306   : > { %v6322_v8 = vsel %vm773_vm12, %v770_v55, %v780_v5  ;;  %5245 = vmatprep.subr.bf16.mxu1 %v5836_v38  ;;  %5269 = vmatprep.subr.bf16.mxu0 %v5841_v43  ;;  %v5847_v0 = vld [vmem:[#allocation4 + $0x8] sm:$0xff]   ;;  %v5849_v5 = vld [vmem:[#allocation4] sm:$0xff]  }
 0x307   : > { %v765_v18 = vadd.f32 %v762_v1, %v755_v7  ;;  %vm774_vm13 = vcmp.ge.f32.partialorder %v771_v6, 0.0  ;;  %v781_v9 = vmul.f32 %v779_v52, %v771_v6  ;;  %v799_v27 = vmul.f32 %v6322_v8, %v6322_v8 }
 0x309   : > { %v772_v11 = vadd.f32 %v769_v45, %v765_v18  ;;  %v6324_v12 = vsel %vm774_vm13, %v771_v6, %v781_v9  ;;  %5246 = vmatpush3.bf16.msra.mxu1 %v5836_v38  ;;  %v5843_v45 = vld [vmem:[#allocation4 + $0x18] sm:$0xff]   ;;  %5270 = vmatpush3.bf16.msra.mxu0 %v5841_v43  ;;  %v6345_v9 = vsub.s32 4, %v6195_v14  ;;  %v5853_v43 = vld [vmem:[%s7154_s1 + $0x60] sm:$0xff]  }
 0x30a   : > { %v786_v13 = vadd.f32 %v6324_v12, %v6322_v8  ;;  %v800_v20 = vmul.f32 %v6324_v12, %v6324_v12  ;;  %5247 = vmatprep.subr.bf16.mxu1 %v5838_v40  ;;  %5271 = vmatprep.subr.bf16.mxu0 %v5843_v45  ;;  %v5850_v6 = vld [vmem:[%s7154_s1 + $0x78] sm:$0xff]  }
 0x30b   : > { %vm775_vm14 = vcmp.ge.f32.partialorder %v772_v11, 0.0  ;;  %v782_v17 = vmul.f32 %v779_v52, %v772_v11 }
 0x30c   : > { %v802_v33 = vadd.f32 %v800_v20, %v799_v27 }
 0x30d   : > { %v6326_v19 = vsel %vm775_vm14, %v772_v11, %v782_v17  ;;  %5248 = vmatpush3.bf16.msra.mxu1 %v5838_v40  ;;  %5272 = vmatpush3.bf16.msra.mxu0 %v5843_v45  ;;  %v6348_v17 = vsub.s32 5, %v6195_v14  ;;  %v5855_v45 = vld [vmem:[%s7154_s1 + $0x50] sm:$0xff]  }
 0x30e   : > { %v787_v22 = vsel %vm498_vm3, %v6326_v19, 0.0  ;;  %v801_v23 = vmul.f32 %v6326_v19, %v6326_v19  ;;  %5249 = vmatprep.subr.bf16.mxu1 %v5840_v42  ;;  %5273 = vmatprep.subr.bf16.mxu0 %v5845_v47 }
 0x30f   : > { %v788_v26 = vadd.f32 %v787_v22, %v786_v13 }
 0x310   : > { %v803_v32 = vsel %vm498_vm3, %v801_v23, 0.0  ;;  %v833_v23 = vrot.slane %v6203_v16, %v6345_v9 }
 0x311   : > { %789 = vadd.xlane.f32.xlu1 %v788_v26  ;;  %v804_v34 = vadd.f32 %v803_v32, %v802_v33  ;;  %5250 = vmatpush3.bf16.msra.mxu1 %v5840_v42  ;;  %v5852_v42 = vld [vmem:[%s7154_s1 + $0x68] sm:$0xff]  }
 0x312   : > { %5251 = vmatprep.subr.bf16.mxu1 %v5842_v44  ;;  %5274 = vmatpush3.bf16.msra.mxu0 %v5845_v47  ;;  %v5857_v47 = vld [vmem:[%s7154_s1 + $0x40] sm:$0xff]  }
 0x313   : > { %5275 = vmatprep.subr.bf16.mxu0 %v5847_v0 }
 0x315   : > { %805 = vadd.xlane.f32.xlu1 %v804_v34  ;;  %5252 = vmatpush3.bf16.msra.mxu1 %v5842_v44  ;;  %v840_v34 = vrot.slane %v6203_v16, %v6348_v17  ;;  %v5854_v44 = vld [vmem:[%s7154_s1 + $0x58] sm:$0xff]  }
 0x316   : > { %5253 = vmatprep.subr.bf16.mxu1 %v5844_v46  ;;  %5276 = vmatpush3.bf16.msra.mxu0 %v5847_v0  ;;  %v5988_v0 = vld [vmem:[%s6174_s24 + $0x8] sm:$0xff] }
 0x317   : > { %5277 = vmatprep.subr.bf16.mxu0 %v5849_v5 }
 0x319   : > { %5254 = vmatpush3.bf16.msra.mxu1 %v5844_v46  ;;  %v5856_v46 = vld [vmem:[%s7154_s1 + $0x48] sm:$0xff]  }
 0x31a   : > { %5255 = vmatprep.subr.bf16.mxu1 %v5846_v63  ;;  %5278 = vmatpush3.bf16.msra.mxu0 %v5849_v5 }
 0x31b   : > { %5303 = vmatprep.subr.mxu0 %v6066_v56 }
 0x31d   : > { %5256 = vmatpush3.bf16.msra.mxu1 %v5846_v63 }
 0x31e   : > { %5257 = vmatprep.subr.bf16.mxu1 %v5848_v3 }
 0x321   : > { %5258 = vmatpush3.bf16.msra.mxu1 %v5848_v3 }
 0x322   : > { %5283 = vmatprep.subr.bf16.mxu1 %v5850_v6 }
 0x39a   : > { %v790_v48 = vpop.xlane.xlu1 %789 }
 0x39b   : > { %v791_v49 = vrot.slane %v790_v48, 4 }
 0x39d   : > { %v792_v50 = vadd.f32 %v791_v49, %v790_v48 }
 0x39e   : > { %v806_v51 = vpop.xlane.xlu1 %805 }
 0x39f   : > { %v793_v52 = vrot.slane %v792_v50, 2  ;;  %v807_v53 = vrot.slane %v806_v51, 4 }
 0x3a1   : > { %v808_v54 = vadd.f32 %v807_v53, %v806_v51  ;;  %v794_v55 = vadd.f32 %v793_v52, %v792_v50  ;;  %v6383_v50 = vsub.s32 7, %v6195_v14  ;;  %v5986_v53 = vld [vmem:[%s6174_s24 + $0x10] sm:$0x3f] }
 0x3a3   : > { %v809_v57 = vrot.slane %v808_v54, 2  ;;  %v795_v58 = vrot.slane %v794_v55, 1 }
 0x3a5   : > { %v796_v60 = vadd.f32 %v795_v58, %v794_v55  ;;  %v810_v62 = vadd.f32 %v809_v57, %v808_v54  ;;  %v1080_v55 = vrot.slane %v6203_v16, %v6383_v50  ;;  %v6405_v16 = vld [vmem:[%s7158_s5 + $0x10] sm:$0xff] }
 0x3a7   : > { %5726 = vpush %v796_v60  ;;  %v811_v1 = vrot.slane %v810_v62, 1  ;;  %v5987_v60 = vld [vmem:[%s6174_s24] sm:$0xff] }
 0x3a9   : > { %v812_v2 = vadd.f32 %v811_v1, %v810_v62 }
 0x3ab   : > { %5728 = vpush %v812_v2 }
 0x3d8   : > { %s5727_s9 = spop %5726 }
 0x3d9   : > { %s798_s10 = smul.f32 0.0014204546, %s5727_s9 }
 0x3db   : > { %s815_s11 = smul.f32 %s798_s10, %s798_s10  ;;  %v818_v11 = vstv %s798_s10 }
 0x3dc   : > { %s5729_s12 = spop %5728  ;;  %v819_v13 = vsub.f32 %v6322_v8, %v818_v11  ;;  %v820_v20 = vsub.f32 %v6324_v12, %v818_v11  ;;  %v821_v22 = vsub.f32 %v6326_v19, %v818_v11  ;;  %v5851_v19 = vld [vmem:[%s7154_s1 + $0x70] sm:$0xff]   ;;  %v1109_v11 = vrot.slane %v6405_v16, %v6198_v15 }
 0x3dd   : > { %s814_s13 = smul.f32 0.0014204546, %s5729_s12 }
 0x3df   : > { %s816_s14 = ssub.f32 %s814_s13, %s815_s11 }
 0x3e1   : > { %s817_s15 = smax.f32 %s6068_s25, %s816_s14 }
 0x3e2   : > { %s822_s16 = sadd.f32 1e-10, %s817_s15 }
 0x3e4   : > { %v823_v7 = vstv %s822_s16 }
 0x3e5   : > { %5964 = vrsqrt.f32 %v823_v7 }
 0x3f2   : > { %v5965_v18 = vpop.eup %5964 }
 0x3f3   : > { %5730 = vpush %v5965_v18  ;;  %v6410_v18 = vld [vmem:[%s7158_s5 + $0x18] sm:$0x3] }
 0x424   : > { %s5731_s18 = spop %5730 }
 0x425   : > { %v826_v26 = vstv %s5731_s18 }
 0x426   : > { %v827_v27 = vmul.f32 %v826_v26, %v819_v13  ;;  %v828_v32 = vmul.f32 %v826_v26, %v820_v20  ;;  %v829_v33 = vmul.f32 %v826_v26, %v821_v22  ;;  %v1212_v22 = vrot.slane %v6410_v18, %v6198_v15 }
 0x428   : > { %v834_v35 = vmul.f32 %v833_v23, %v827_v27  ;;  %v835_v37 = vmul.f32 %v833_v23, %v828_v32  ;;  %v836_v38 = vmul.f32 %v833_v23, %v829_v33 }
 0x42a   : > { %v843_v39 = vadd.f32 %v840_v34, %v836_v38  ;;  %v841_v8 = vadd.f32 %v840_v34, %v834_v35  ;;  %v842_v40 = vadd.f32 %v840_v34, %v835_v37 }
 0x42c   : > { %v845_v12 = vpack.c.bf16 %v843_v39, %v843_v39  ;;  %v844_v41 = vpack.c.bf16 %v842_v40, %v841_v8 }
 0x42e   : > { %5259 = vmatprep.mubr.bf16.mxu1 %v844_v41  ;;  %5279 = vmatprep.mubr.bf16.mxu0 %v844_v41 }
 0x42f   : > { %5260 = vmatmul.mubr.bf16.vlgmr.msra.gmra.mxu1 %v845_v12  ;;  %5280 = vmatmul.mubr.bf16.vlgmr.msra.gmra.mxu0 %v845_v12 }
 0x430   : > { %5284 = vmatpush3.bf16.msra.mxu1 %v5850_v6  ;;  %5309 = vmatprep.mubr.msk.f32.mxu0 %vm6067_vm4, %v6066_v56 }
 0x431   : > { %5285 = vmatprep.subr.bf16.mxu1 %v5851_v19 }
 0x434   : > { %5286 = vmatpush3.bf16.msra.mxu1 %v5851_v19 }
 0x435   : > { %5287 = vmatprep.subr.bf16.mxu1 %v5852_v42 }
 0x438   : > { %5288 = vmatpush3.bf16.msra.mxu1 %v5852_v42 }
 0x439   : > { %5289 = vmatprep.subr.bf16.mxu1 %v5853_v43 }
 0x43c   : > { %5290 = vmatpush3.bf16.msra.mxu1 %v5853_v43 }
 0x43d   : > { %5291 = vmatprep.subr.bf16.mxu1 %v5854_v44 }
 0x440   : > { %5292 = vmatpush3.bf16.msra.mxu1 %v5854_v44 }
 0x441   : > { %5293 = vmatprep.subr.bf16.mxu1 %v5855_v45 }
 0x444   : > { %5294 = vmatpush3.bf16.msra.mxu1 %v5855_v45 }
 0x445   : > { %5295 = vmatprep.subr.bf16.mxu1 %v5856_v46 }
 0x448   : > { %5296 = vmatpush3.bf16.msra.mxu1 %v5856_v46 }
 0x449   : > { %5297 = vmatprep.subr.bf16.mxu1 %v5857_v47 }
 0x44c   : > { %5298 = vmatpush3.bf16.msra.mxu1 %v5857_v47 }
 0x4ef   : > { %v6380_v48 = vpop.f32.mrf.mxu1  ;;  %v5281_v49 = vpop.f32.mrf.mxu0 }
 0x4f0   : > { %v1076_v54 = vadd.f32 %v5986_v53, %v5281_v49 }
 0x4f1   : > { %v6385_v51 = vpop.f32.mrf.mxu1  ;;  %v1060_v52 = vpop.f32.mrf.mxu0 }
 0x4f2   : > { %v1074_v62 = vadd.f32 %v5987_v60, %v1060_v52  ;;  %v6392_v2 = vadd.f32 %v1080_v55, %v1076_v54 }
 0x4f3   : > { %v5262_v57 = vpop.f32.mrf.mxu1  ;;  %v5282_v58 = vpop.f32.mrf.mxu0 }
 0x4f4   : > { %v6394_v3 = vadd.f32 %v1080_v55, %v1074_v62  ;;  %v1088_v7 = vpack.c.bf16 %v6392_v2, %v6392_v2 }
 0x4f5   : > { %v1063_v63 = vpop.f32.mrf.mxu0  ;;  %v6414_v13 = vpop.f32.mrf.mxu1 }
 0x4f6   : > { %v1075_v1 = vadd.f32 %v5988_v0, %v1063_v63 }
 0x4f8   : > { %v6396_v5 = vadd.f32 %v1080_v55, %v1075_v1 }
 0x4fa   : > { %v1087_v6 = vpack.c.bf16 %v6396_v5, %v6394_v3 }
 0x4fc   : > { %5299 = vmatprep.mubr.bf16.mxu1 %v1087_v6 }
 0x4fd   : > { %5300 = vmatmul.mubr.bf16.vlgmr.msra.gmra.mxu1 %v1088_v7 }
 0x5bd   : > { %v5301_v20 = vpop.f32.mrf.mxu1 }
 0x5be   : > { %v1201_v23 = vadd.f32 %v5301_v20, %v1109_v11 }
 0x5bf   : > { %v1192_v26 = vpop.f32.mrf.mxu1 }
 0x5c0   : > { %v1193_v27 = vadd.f32 %v1192_v26, %v1109_v11  ;;  %v1215_v32 = vmul.f32 %v1212_v22, %v1201_v23  ;;  %vm1208_vm15 = vcmp.ge.f32.partialorder %v1201_v23, 0.0 }
 0x5c1   : > { %v5302_v33 = vpop.f32.mrf.mxu1 }
 0x5c2   : > { %v1213_v34 = vmul.f32 %v1212_v22, %v1193_v27  ;;  %vm1206_vm0 = vcmp.ge.f32.partialorder %v1193_v27, 0.0  ;;  %v1218_v38 = vsel %vm1208_vm15, %v1201_v23, %v1215_v32  ;;  %v1266_v32 = vrot.slane %v6405_v16, %v6229_v59 }
 0x5c3   : > { %v1195_v35 = vpop.f32.mrf.mxu1  ;;  %v1234_v12 = vmul.f32 %v1218_v38, %v1218_v38  ;;  %v1220_v43 = vsel %vm498_vm3, %v1218_v38, 0.0 }
 0x5c4   : > { %v1196_v37 = vadd.f32 %v1195_v35, %v1109_v11  ;;  %v1216_v39 = vsel %vm1206_vm0, %v1193_v27, %v1213_v34 }
 0x5c5   : > { %v1232_v19 = vmul.f32 %v1216_v39, %v1216_v39  ;;  %v1236_v46 = vsel %vm498_vm3, %v1234_v12, 0.0  ;;  %v4652_v12 = vadd.s32 4294967294, %v6195_v14 }
 0x5c6   : > { %vm1207_vm1 = vcmp.ge.f32.partialorder %v1196_v37, 0.0  ;;  %v1214_v8 = vmul.f32 %v1212_v22, %v1196_v37 }
 0x5c7   : > { %vm316_vm2 = vcmp.eq.s32.totalorder %v6240_v4, %v4652_v12 }
 0x5c8   : > { %v1217_v40 = vsel %vm1207_vm1, %v1196_v37, %v1214_v8  ;;  %v1273_v8 = vrot.slane %v6405_v16, %v6232_v61 }
 0x5c9   : > { %v1219_v41 = vadd.f32 %v1217_v40, %v1216_v39  ;;  %v1233_v42 = vmul.f32 %v1217_v40, %v1217_v40 }
 0x5cb   : > { %v1221_v44 = vadd.f32 %v1220_v43, %v1219_v41  ;;  %v1235_v45 = vadd.f32 %v1233_v42, %v1232_v19 }
 0x5cd   : > { %1222 = vadd.xlane.f32.xlu0 %v1221_v44  ;;  %v1237_v47 = vadd.f32 %v1236_v46, %v1235_v45  ;;  %v6434_v44 = vsel %vm316_vm2, 1.0, %v6066_v56  ;;  %v4654_v45 = vadd.s32 4294967294, %v6254_v21 }
 0x5cf   : > { %1238 = vadd.xlane.f32.xlu1 %v1237_v47  ;;  %vm318_vm6 = vcmp.eq.s32.totalorder %v6240_v4, %v4654_v45  ;;  %v325_v47 = vadd.s32 2, %v6195_v14 }
 0x5d1   : > { %vm328_vm8 = vcmp.eq.s32.totalorder %v6240_v4, %v325_v47 }
 0x656   : > { %v1223_v49 = vpop.xlane.xlu0 %1222 }
 0x657   : > { %v1224_v52 = vrot.slane %v1223_v49, 4 }
 0x658   : > { %v1239_v53 = vpop.xlane.xlu1 %1238 }
 0x659   : > { %v1225_v54 = vadd.f32 %v1224_v52, %v1223_v49  ;;  %v1240_v55 = vrot.slane %v1239_v53, 4  ;;  %v6458_v49 = vsel %vm318_vm6, 1.0, %v6066_v56  ;;  %v326_v52 = vadd.s32 2, %v6245_v10 }
 0x65b   : > { %v1226_v57 = vrot.slane %v1225_v54, 2  ;;  %v1241_v58 = vadd.f32 %v1240_v55, %v1239_v53  ;;  %v6467_v53 = vsel %vm328_vm8, 1.0, %v6066_v56  ;;  %vm329_vm9 = vcmp.eq.s32.totalorder %v6240_v4, %v326_v52 }
 0x65c   : > { %v6476_v55 = vsel %vm329_vm9, 1.0, %v6066_v56 }
 0x65d   : > { %v1242_v60 = vrot.slane %v1241_v58, 2  ;;  %v1227_v62 = vadd.f32 %v1226_v57, %v1225_v54  ;;  %v327_v54 = vadd.s32 2, %v6254_v21 }
 0x65f   : > { %v1228_v63 = vrot.slane %v1227_v62, 1  ;;  %v1243_v0 = vadd.f32 %v1242_v60, %v1241_v58  ;;  %vm330_vm10 = vcmp.eq.s32.totalorder %v6240_v4, %v327_v54 }
 0x660   : > { %v6484_v57 = vsel %vm330_vm10, 1.0, %v6066_v56 }
 0x661   : > { %v1229_v1 = vadd.f32 %v1228_v63, %v1227_v62  ;;  %v1244_v6 = vrot.slane %v1243_v0, 1  ;;  %v4728_v62 = vld [vmem:[%s7155_s2 + $0x4] sm:$0x7] }
 0x663   : > { %5732 = vpush %v1229_v1  ;;  %v1245_v7 = vadd.f32 %v1244_v6, %v1243_v0  ;;  %v1463_v0 = vrot.slane %v4728_v62, %v6198_v15  ;;  %v1470_v6 = vrot.slane %v4728_v62, %v6229_v59 }
 0x665   : > { %5734 = vpush %v1245_v7 }
 0x694   : > { %s5733_s16 = spop %5732 }
 0x695   : > { %s1231_s18 = smul.f32 0.0014204546, %s5733_s16 }
 0x696   : > { %s5735_s19 = spop %5734 }
 0x697   : > { %s1248_s20 = smul.f32 %s1231_s18, %s1231_s18  ;;  %v1251_v22 = vstv %s1231_s18 }
 0x698   : > { %s1247_s23 = smul.f32 0.0014204546, %s5735_s19  ;;  %v1252_v23 = vsub.f32 %v1216_v39, %v1251_v22  ;;  %v1253_v26 = vsub.f32 %v1217_v40, %v1251_v22  ;;  %v1254_v27 = vsub.f32 %v1218_v38, %v1251_v22  ;;  %v4653_v38 = vadd.s32 4294967294, %v6245_v10 }
 0x69a   : > { %s1249_s26 = ssub.f32 %s1247_s23, %s1248_s20  ;;  %vm317_vm5 = vcmp.eq.s32.totalorder %v6240_v4, %v4653_v38 }
 0x69b   : > { %v6447_v46 = vsel %vm317_vm5, 1.0, %v6066_v56 }
 0x69c   : > { %s1250_s27 = smax.f32 %s6068_s25, %s1249_s26 }
 0x69d   : > { %s1255_s28 = sadd.f32 1e-10, %s1250_s27 }
 0x69f   : > { %v1256_v11 = vstv %s1255_s28 }
 0x6a0   : > { %5966 = vrsqrt.f32 %v1256_v11 }
 0x6ad   : > { %v5967_v20 = vpop.eup %5966 }
 0x6ae   : > { %5736 = vpush %v5967_v20  ;;  %v1480_v20 = vrot.slane %v4728_v62, %v6232_v61 }
 0x6df   : > { %s5737_s29 = spop %5736 }
 0x6e0   : > { %v1259_v33 = vstv %s5737_s29 }
 0x6e1   : > { %v1260_v34 = vmul.f32 %v1259_v33, %v1252_v23  ;;  %v1261_v35 = vmul.f32 %v1259_v33, %v1253_v26  ;;  %v1262_v37 = vmul.f32 %v1259_v33, %v1254_v27 }
 0x6e3   : > { %v1268_v41 = vmul.f32 %v1266_v32, %v1261_v35  ;;  %v1269_v19 = vmul.f32 %v1266_v32, %v1262_v37  ;;  %v1267_v42 = vmul.f32 %v1266_v32, %v1260_v34  ;;  %v1490_v34 = vrot.slane %v6405_v16, %v6315_v36 }
 0x6e4   : > { %v1500_v37 = vrot.slane %v6410_v18, %v6229_v59 }
 0x6e5   : > { %v6426_v43 = vadd.f32 %v1273_v8, %v1269_v19  ;;  %v1275_v39 = vadd.f32 %v1273_v8, %v1268_v41  ;;  %v1274_v40 = vadd.f32 %v1273_v8, %v1267_v42 }
 0x6e7   : > { %5304 = vmatpush3.msk.msra.mxu0 %vm498_vm3, %v6426_v43  ;;  %v1471_v23 = vmul.f32 %v1470_v6, %v1274_v40  ;;  %v1472_v8 = vmul.f32 %v1470_v6, %v1275_v39 }
 0x6e8   : > { %5305 = vmatprep.subr.mxu0 %v6066_v56 }
 0x6e9   : > { %5306 = vmatpush3.msra.mxu0 %v1275_v39 }
 0x6ea   : > { %5307 = vmatprep.subr.mxu0 %v6066_v56 }
 0x6eb   : > { %5308 = vmatpush3.msra.mxu0 %v1274_v40 }
 0x6ec   : > { %5310 = vmatmul.mubr.msk.f32.vlgmr.msra.gmra.mxu0 %vm557_vm7, %v6434_v44  ;;  %5318 = vmatprep.subr.mxu0 %v6066_v56 }
 0x6ed   : > { %5319 = vmatpush3.msk.msra.mxu0 %vm498_vm3, %v6426_v43  ;;  %5312 = vmatprep.mubr.msk.f32.mxu0 %vm6067_vm4, %v6066_v56 }
 0x6ee   : > { %5320 = vmatprep.subr.mxu0 %v6066_v56 }
 0x6ef   : > { %5321 = vmatpush3.msra.mxu0 %v1275_v39 }
 0x6f0   : > { %5313 = vmatmul.mubr.msk.f32.gmra.mxu0 %vm557_vm7, %v6447_v46  ;;  %5322 = vmatprep.subr.mxu0 %v6066_v56 }
 0x6f1   : > { %5323 = vmatpush3.msra.mxu0 %v1274_v40  ;;  %5315 = vmatprep.mubr.msk.f32.mxu0 %vm6067_vm4, %v6066_v56  ;;  %v1473_v40 = vmul.f32 %v1470_v6, %v6426_v43 }
 0x6f4   : > { %5316 = vmatmul.mubr.msk.f32.gmra.mxu0 %vm557_vm7, %v6458_v49 }
 0x6f5   : > { %5324 = vmatprep.mubr.msk.f32.mxu0 %vm6067_vm4, %v6066_v56 }
 0x6f8   : > { %5325 = vmatmul.mubr.msk.f32.vlgmr.msra.gmra.mxu0 %vm557_vm7, %v6467_v53 }
 0x6f9   : > { %5327 = vmatprep.mubr.msk.f32.mxu0 %vm6067_vm4, %v6066_v56 }
 0x6fc   : > { %5328 = vmatmul.mubr.msk.f32.gmra.mxu0 %vm557_vm7, %v6476_v55 }
 0x6fd   : > { %5330 = vmatprep.mubr.msk.f32.mxu0 %vm6067_vm4, %v6066_v56 }
 0x700   : > { %5331 = vmatmul.mubr.msk.f32.gmra.mxu0 %vm557_vm7, %v6484_v57 }
 0x7ac   : > { %v1357_v58 = vpop.f32.mrf.mxu0 }
 0x7ad   : > { %v1464_v11 = vmul.f32 %v1463_v0, %v1357_v58 }
 0x7ae   : > { %v5311_v60 = vpop.f32.mrf.mxu0 }
 0x7af   : > { %v1474_v27 = vadd.f32 %v1471_v23, %v1464_v11 }
 0x7b0   : > { %v1362_v63 = vpop.f32.mrf.mxu0 }
 0x7b1   : > { %v1465_v32 = vmul.f32 %v1463_v0, %v1362_v63 }
 0x7b2   : > { %v5314_v1 = vpop.f32.mrf.mxu0 }
 0x7b3   : > { %v1475_v19 = vadd.f32 %v1472_v8, %v1465_v32  ;;  %v5859_v8 = vld [vmem:[#allocation4 + $0x78] sm:$0xff]  }
 0x7b4   : > { %v1367_v7 = vpop.f32.mrf.mxu0  ;;  %5353 = vmatprep.subr.bf16.mxu0 %v5859_v8 }
 0x7b5   : > { %v1466_v42 = vmul.f32 %v1463_v0, %v1367_v7  ;;  %5354 = vmatpush3.bf16.msra.mxu0 %v5859_v8 }
 0x7b6   : > { %v5317_v22 = vpop.f32.mrf.mxu0 }
 0x7b7   : > { %v1476_v60 = vadd.f32 %v1473_v40, %v1466_v42  ;;  %v5863_v42 = vld [vmem:[#allocation4 + $0x68] sm:$0xff]   ;;  %v5867_v40 = vld [vmem:[#allocation4 + $0x58] sm:$0xff]  }
 0x7b8   : > { %v1446_v26 = vpop.f32.mrf.mxu0 }
 0x7b9   : > { %v1481_v33 = vmul.f32 %v1480_v20, %v1446_v26 }
 0x7ba   : > { %v5326_v35 = vpop.f32.mrf.mxu0 }
 0x7bb   : > { %v1484_v12 = vadd.f32 %v1481_v33, %v1474_v27 }
 0x7bc   : > { %v1451_v41 = vpop.f32.mrf.mxu0 }
 0x7bd   : > { %v1491_v38 = vadd.f32 %v1490_v34, %v1484_v12  ;;  %v1482_v45 = vmul.f32 %v1480_v20, %v1451_v41  ;;  %v5860_v12 = vld [vmem:[#allocation2 + $0x70] sm:$0xff]  }
 0x7be   : > { %v5329_v47 = vpop.f32.mrf.mxu0  ;;  %v5861_v41 = vld [vmem:[#allocation4 + $0x70] sm:$0xff]  }
 0x7bf   : > { %v1501_v52 = vmul.f32 %v1500_v37, %v1491_v38  ;;  %v1485_v54 = vadd.f32 %v1482_v45, %v1475_v19  ;;  %vm1494_vm11 = vcmp.ge.f32.partialorder %v1491_v38, 0.0  ;;  %5355 = vmatprep.subr.bf16.mxu0 %v5861_v41  ;;  %v5862_v19 = vld [vmem:[#allocation2 + $0x68] sm:$0xff]   ;;  %v5865_v45 = vld [vmem:[#allocation4 + $0x60] sm:$0xff]   ;;  %v5866_v47 = vld [vmem:[#allocation2 + $0x58] sm:$0xff]  }
 0x7c0   : > { %v1456_v58 = vpop.f32.mrf.mxu0  ;;  %5356 = vmatpush3.bf16.msra.mxu0 %v5861_v41 }
 0x7c1   : > { %v1492_v62 = vadd.f32 %v1490_v34, %v1485_v54  ;;  %v1483_v63 = vmul.f32 %v1480_v20, %v1456_v58  ;;  %v6499_v1 = vsel %vm1494_vm11, %v1491_v38, %v1501_v52  ;;  %5357 = vmatprep.subr.bf16.mxu0 %v5863_v42  ;;  %v5864_v38 = vld [vmem:[#allocation2 + $0x60] sm:$0xff]   ;;  %v5868_v52 = vld [vmem:[#allocation2 + $0x50] sm:$0xff]  }
 0x7c2   : > { %v5332_v18 = vpop.f32.mrf.mxu0  ;;  %v1520_v20 = vmul.f32 %v6499_v1, %v6499_v1  ;;  %v5869_v54 = vld [vmem:[#allocation4 + $0x50] sm:$0xff]  }
 0x7c3   : > { %v1502_v39 = vmul.f32 %v1500_v37, %v1492_v62  ;;  %v1486_v11 = vadd.f32 %v1483_v63, %v1476_v60  ;;  %vm1495_vm12 = vcmp.ge.f32.partialorder %v1492_v62, 0.0 }
 0x7c4   : > { %5358 = vmatpush3.bf16.msra.mxu0 %v5863_v42 }
 0x7c5   : > { %v1493_v22 = vadd.f32 %v1490_v34, %v1486_v11  ;;  %v6501_v0 = vsel %vm1495_vm12, %v1492_v62, %v1502_v39  ;;  %5359 = vmatprep.subr.bf16.mxu0 %v5865_v45 }
 0x7c6   : > { %v1521_v43 = vmul.f32 %v6501_v0, %v6501_v0  ;;  %v1507_v23 = vadd.f32 %v6501_v0, %v6499_v1 }
 0x7c7   : > { %v1503_v7 = vmul.f32 %v1500_v37, %v1493_v22  ;;  %vm1496_vm13 = vcmp.ge.f32.partialorder %v1493_v22, 0.0  ;;  %v5858_v37 = vld [vmem:[#allocation2 + $0x78] sm:$0xff]  }
 0x7c8   : > { %v1523_v33 = vadd.f32 %v1521_v43, %v1520_v20  ;;  %5333 = vmatprep.subr.bf16.mxu1 %v5858_v37  ;;  %5360 = vmatpush3.bf16.msra.mxu0 %v5865_v45  ;;  %v5870_v20 = vld [vmem:[#allocation2 + $0x48] sm:$0xff]   ;;  %v1554_v45 = vrot.slane %v6405_v16, %v6345_v9 }
 0x7c9   : > { %v6505_v6 = vsel %vm1496_vm13, %v1493_v22, %v1503_v7  ;;  %5334 = vmatpush3.bf16.msra.mxu1 %v5858_v37  ;;  %5361 = vmatprep.subr.bf16.mxu0 %v5867_v40  ;;  %v5874_v37 = vld [vmem:[%s7154_s1 + $0xb8] sm:$0xff]  }
 0x7ca   : > { %v1508_v26 = vsel %vm498_vm3, %v6505_v6, 0.0  ;;  %v1522_v27 = vmul.f32 %v6505_v6, %v6505_v6  ;;  %5335 = vmatprep.subr.bf16.mxu1 %v5860_v12 }
 0x7cb   : > { %v1509_v32 = vadd.f32 %v1508_v26, %v1507_v23  ;;  %v5871_v26 = vld [vmem:[#allocation4 + $0x48] sm:$0xff]  }
 0x7cc   : > { %v1524_v34 = vsel %vm498_vm3, %v1522_v27, 0.0  ;;  %5362 = vmatpush3.bf16.msra.mxu0 %v5867_v40 }
 0x7cd   : > { %1510 = vadd.xlane.f32.xlu0 %v1509_v32  ;;  %v1525_v35 = vadd.f32 %v1524_v34, %v1523_v33  ;;  %5336 = vmatpush3.bf16.msra.mxu1 %v5860_v12  ;;  %v5872_v34 = vld [vmem:[#allocation2 + $0x40] sm:$0xff]  }
 0x7ce   : > { %5337 = vmatprep.subr.bf16.mxu1 %v5862_v19  ;;  %5363 = vmatprep.subr.bf16.mxu0 %v5869_v54 }
 0x7cf   : > { %1526 = vadd.xlane.f32.xlu1 %v1525_v35  ;;  %v5873_v35 = vld [vmem:[#allocation4 + $0x40] sm:$0xff]  }
 0x7d0   : > { %5364 = vmatpush3.bf16.msra.mxu0 %v5869_v54 }
 0x7d1   : > { %5338 = vmatpush3.bf16.msra.mxu1 %v5862_v19  ;;  %5365 = vmatprep.subr.bf16.mxu0 %v5871_v26 }
 0x7d2   : > { %5339 = vmatprep.subr.bf16.mxu1 %v5864_v38 }
 0x7d4   : > { %5366 = vmatpush3.bf16.msra.mxu0 %v5871_v26  ;;  %v5881_v26 = vld [vmem:[%s7154_s1 + $0x80] sm:$0xff]  }
 0x7d5   : > { %5340 = vmatpush3.bf16.msra.mxu1 %v5864_v38  ;;  %5367 = vmatprep.subr.bf16.mxu0 %v5873_v35 }
 0x7d6   : > { %5341 = vmatprep.subr.bf16.mxu1 %v5866_v47 }
 0x7d8   : > { %5368 = vmatpush3.bf16.msra.mxu0 %v5873_v35 }
 0x7d9   : > { %5342 = vmatpush3.bf16.msra.mxu1 %v5866_v47  ;;  %5393 = vmatprep.subr.mxu0 %v6066_v56 }
 0x7da   : > { %5343 = vmatprep.subr.bf16.mxu1 %v5868_v52 }
 0x7dd   : > { %5344 = vmatpush3.bf16.msra.mxu1 %v5868_v52 }
 0x7de   : > { %5345 = vmatprep.subr.bf16.mxu1 %v5870_v20 }
 0x7e1   : > { %5346 = vmatpush3.bf16.msra.mxu1 %v5870_v20  ;;  %v5880_v20 = vld [vmem:[%s7154_s1 + $0x88] sm:$0xff]  }
 0x7e2   : > { %5347 = vmatprep.subr.bf16.mxu1 %v5872_v34 }
 0x7e5   : > { %5348 = vmatpush3.bf16.msra.mxu1 %v5872_v34 }
 0x7e6   : > { %5373 = vmatprep.subr.bf16.mxu1 %v5874_v37 }
 0x856   : > { %v1511_v58 = vpop.xlane.xlu0 %1510 }
 0x857   : > { %v1512_v60 = vrot.slane %v1511_v58, 4 }
 0x858   : > { %v1527_v62 = vpop.xlane.xlu1 %1526 }
 0x859   : > { %v1513_v63 = vadd.f32 %v1512_v60, %v1511_v58  ;;  %v1528_v18 = vrot.slane %v1527_v62, 4  ;;  %v1561_v58 = vrot.slane %v6405_v16, %v6348_v17 }
 0x85b   : > { %v1514_v39 = vrot.slane %v1513_v63, 2  ;;  %v1529_v11 = vadd.f32 %v1528_v18, %v1527_v62 }
 0x85d   : > { %v1530_v22 = vrot.slane %v1529_v11, 2  ;;  %v1515_v7 = vadd.f32 %v1514_v39, %v1513_v63 }
 0x85f   : > { %v1516_v43 = vrot.slane %v1515_v7, 1  ;;  %v1531_v23 = vadd.f32 %v1530_v22, %v1529_v11  ;;  %v5876_v22 = vld [vmem:[%s7154_s1 + $0xa8] sm:$0xff]  }
 0x861   : > { %v1517_v27 = vadd.f32 %v1516_v43, %v1515_v7  ;;  %v1532_v32 = vrot.slane %v1531_v23, 1  ;;  %v5877_v7 = vld [vmem:[%s7154_s1 + $0xa0] sm:$0xff]   ;;  %v5878_v43 = vld [vmem:[%s7154_s1 + $0x98] sm:$0xff]  }
 0x863   : > { %5738 = vpush %v1517_v27  ;;  %v1533_v33 = vadd.f32 %v1532_v32, %v1531_v23  ;;  %v5879_v23 = vld [vmem:[%s7154_s1 + $0x90] sm:$0xff]   ;;  %v6552_v27 = vsub.s32 6, %v6195_v14  ;;  %v5989_v32 = vld [vmem:[%s7158_s5] sm:$0xff] }
 0x865   : > { %5740 = vpush %v1533_v33  ;;  %v6558_v33 = vrot.slane %v5989_v32, %v6552_v27 }
 0x867   : > { %v957_v34 = vadd.f32 %v6380_v48, %v6558_v33 }
 0x894   : > { %s5739_s10 = spop %5738 }
 0x895   : > { %s1519_s11 = smul.f32 0.0014204546, %s5739_s10 }
 0x896   : > { %s5741_s12 = spop %5740 }
 0x897   : > { %s1536_s13 = smul.f32 %s1519_s11, %s1519_s11  ;;  %v1539_v41 = vstv %s1519_s11 }
 0x898   : > { %s1535_s14 = smul.f32 0.0014204546, %s5741_s12  ;;  %v1540_v19 = vsub.f32 %v6499_v1, %v1539_v41  ;;  %v1541_v42 = vsub.f32 %v6501_v0, %v1539_v41  ;;  %v1542_v38 = vsub.f32 %v6505_v6, %v1539_v41  ;;  %v5875_v6 = vld [vmem:[%s7154_s1 + $0xb0] sm:$0xff]  }
 0x89a   : > { %s1537_s24 = ssub.f32 %s1535_s14, %s1536_s13 }
 0x89c   : > { %s1538_s15 = smax.f32 %s6068_s25, %s1537_s24 }
 0x89d   : > { %s1543_s16 = sadd.f32 1e-10, %s1538_s15 }
 0x89f   : > { %v1544_v8 = vstv %s1543_s16 }
 0x8a0   : > { %5968 = vrsqrt.f32 %v1544_v8  ;;  %v949_v8 = vadd.f32 %v6385_v51, %v6558_v33 }
 0x8ad   : > { %v5969_v12 = vpop.eup %5968 }
 0x8ae   : > { %5742 = vpush %v5969_v12 }
 0x8df   : > { %s5743_s18 = spop %5742 }
 0x8e0   : > { %v1547_v47 = vstv %s5743_s18 }
 0x8e1   : > { %v1548_v40 = vmul.f32 %v1547_v47, %v1540_v19  ;;  %v1549_v52 = vmul.f32 %v1547_v47, %v1541_v42  ;;  %v1550_v54 = vmul.f32 %v1547_v47, %v1542_v38 }
 0x8e3   : > { %v1555_v60 = vmul.f32 %v1554_v45, %v1548_v40  ;;  %v1556_v62 = vmul.f32 %v1554_v45, %v1549_v52  ;;  %v1557_v63 = vmul.f32 %v1554_v45, %v1550_v54  ;;  %v1809_v45 = vrot.slane %v6405_v16, %v6383_v50 }
 0x8e5   : > { %v1564_v18 = vadd.f32 %v1561_v58, %v1557_v63  ;;  %v1562_v1 = vadd.f32 %v1561_v58, %v1555_v60  ;;  %v1563_v39 = vadd.f32 %v1561_v58, %v1556_v62 }
 0x8e7   : > { %v1566_v0 = vpack.c.bf16 %v1564_v18, %v1564_v18  ;;  %v1565_v11 = vpack.c.bf16 %v1563_v39, %v1562_v1 }
 0x8e9   : > { %5349 = vmatprep.mubr.bf16.mxu1 %v1565_v11  ;;  %5369 = vmatprep.mubr.bf16.mxu0 %v1565_v11 }
 0x8ea   : > { %5350 = vmatmul.mubr.bf16.vlgmr.msra.gmra.mxu1 %v1566_v0  ;;  %5370 = vmatmul.mubr.bf16.vlgmr.msra.gmra.mxu0 %v1566_v0 }
 0x8eb   : > { %5374 = vmatpush3.bf16.msra.mxu1 %v5874_v37  ;;  %5399 = vmatprep.mubr.msk.f32.mxu0 %vm6067_vm4, %v6066_v56 }
 0x8ec   : > { %5375 = vmatprep.subr.bf16.mxu1 %v5875_v6 }
 0x8ef   : > { %5376 = vmatpush3.bf16.msra.mxu1 %v5875_v6 }
 0x8f0   : > { %5377 = vmatprep.subr.bf16.mxu1 %v5876_v22 }
 0x8f3   : > { %5378 = vmatpush3.bf16.msra.mxu1 %v5876_v22 }
 0x8f4   : > { %5379 = vmatprep.subr.bf16.mxu1 %v5877_v7 }
 0x8f7   : > { %5380 = vmatpush3.bf16.msra.mxu1 %v5877_v7 }
 0x8f8   : > { %5381 = vmatprep.subr.bf16.mxu1 %v5878_v43 }
 0x8fb   : > { %5382 = vmatpush3.bf16.msra.mxu1 %v5878_v43 }
 0x8fc   : > { %5383 = vmatprep.subr.bf16.mxu1 %v5879_v23 }
 0x8ff   : > { %5384 = vmatpush3.bf16.msra.mxu1 %v5879_v23 }
 0x900   : > { %5385 = vmatprep.subr.bf16.mxu1 %v5880_v20 }
 0x903   : > { %5386 = vmatpush3.bf16.msra.mxu1 %v5880_v20 }
 0x904   : > { %5387 = vmatprep.subr.bf16.mxu1 %v5881_v26 }
 0x907   : > { %5388 = vmatpush3.bf16.msra.mxu1 %v5881_v26 }
 0x9aa   : > { %v5351_v35 = vpop.f32.mrf.mxu1  ;;  %v5371_v37 = vpop.f32.mrf.mxu0 }
 0x9ab   : > { %v6564_v12 = vadd.f32 %v5351_v35, %v957_v34  ;;  %v1805_v38 = vadd.f32 %v5371_v37, %v6392_v2 }
 0x9ac   : > { %v1666_v41 = vpop.f32.mrf.mxu1  ;;  %v1789_v19 = vpop.f32.mrf.mxu0 }
 0x9ad   : > { %v6566_v42 = vadd.f32 %v1666_v41, %v949_v8  ;;  %v1803_v48 = vadd.f32 %v1789_v19, %v6394_v3  ;;  %v6573_v58 = vadd.f32 %v1809_v45, %v1805_v38  ;;  %v6586_v3 = vld [vmem:[%s7158_s5 + $0x20] sm:$0xff] }
 0x9ae   : > { %v5352_v47 = vpop.f32.mrf.mxu1  ;;  %v5372_v40 = vpop.f32.mrf.mxu0  ;;  %v1838_v16 = vrot.slane %v6586_v3, %v6198_v15 }
 0x9af   : > { %v6575_v51 = vadd.f32 %v1809_v45, %v1803_v48  ;;  %v1817_v2 = vpack.c.bf16 %v6573_v58, %v6573_v58 }
 0x9b0   : > { %v1792_v52 = vpop.f32.mrf.mxu0  ;;  %v6595_v63 = vpop.f32.mrf.mxu1 }
 0x9b1   : > { %v1804_v54 = vadd.f32 %v1792_v52, %v6396_v5  ;;  %v6591_v5 = vld [vmem:[%s7158_s5 + $0x28] sm:$0x3] }
 0x9b2   : > { %v1941_v1 = vrot.slane %v6591_v5, %v6198_v15 }
 0x9b3   : > { %v6577_v60 = vadd.f32 %v1809_v45, %v1804_v54 }
 0x9b5   : > { %v1816_v62 = vpack.c.bf16 %v6577_v60, %v6575_v51 }
 0x9b7   : > { %5389 = vmatprep.mubr.bf16.mxu1 %v1816_v62 }
 0x9b8   : > { %5390 = vmatmul.mubr.bf16.vlgmr.msra.gmra.mxu1 %v1817_v2 }
 0xa78   : > { %v5391_v18 = vpop.f32.mrf.mxu1 }
 0xa79   : > { %v1930_v39 = vadd.f32 %v5391_v18, %v1838_v16 }
 0xa7a   : > { %v1921_v0 = vpop.f32.mrf.mxu1 }
 0xa7b   : > { %v1922_v11 = vadd.f32 %v1921_v0, %v1838_v16  ;;  %v1944_v6 = vmul.f32 %v1941_v1, %v1930_v39  ;;  %vm1937_vm14 = vcmp.ge.f32.partialorder %v1930_v39, 0.0 }
 0xa7c   : > { %v5392_v22 = vpop.f32.mrf.mxu1 }
 0xa7d   : > { %v1942_v7 = vmul.f32 %v1941_v1, %v1922_v11  ;;  %vm1935_vm15 = vcmp.ge.f32.partialorder %v1922_v11, 0.0  ;;  %v1947_v20 = vsel %vm1937_vm14, %v1930_v39, %v1944_v6 }
 0xa7e   : > { %v1924_v43 = vpop.f32.mrf.mxu1  ;;  %v1963_v35 = vmul.f32 %v1947_v20, %v1947_v20  ;;  %v1949_v19 = vsel %vm498_vm3, %v1947_v20, 0.0 }
 0xa7f   : > { %v1925_v23 = vadd.f32 %v1924_v43, %v1838_v16  ;;  %v1945_v26 = vsel %vm1935_vm15, %v1922_v11, %v1942_v7 }
 0xa80   : > { %v1961_v8 = vmul.f32 %v1945_v26, %v1945_v26  ;;  %v1965_v47 = vsel %vm498_vm3, %v1963_v35, 0.0 }
 0xa81   : > { %vm1936_vm0 = vcmp.ge.f32.partialorder %v1925_v23, 0.0  ;;  %v1943_v32 = vmul.f32 %v1941_v1, %v1925_v23 }
 0xa83   : > { %v1946_v34 = vsel %vm1936_vm0, %v1925_v23, %v1943_v32 }
 0xa84   : > { %v1948_v37 = vadd.f32 %v1946_v34, %v1945_v26  ;;  %v1962_v41 = vmul.f32 %v1946_v34, %v1946_v34 }
 0xa86   : > { %v1950_v38 = vadd.f32 %v1949_v19, %v1948_v37  ;;  %v1964_v45 = vadd.f32 %v1962_v41, %v1961_v8  ;;  %v1995_v41 = vrot.slane %v6586_v3, %v6229_v59 }
 0xa88   : > { %1951 = vadd.xlane.f32.xlu0 %v1950_v38  ;;  %v1966_v40 = vadd.f32 %v1965_v47, %v1964_v45 }
 0xa8a   : > { %1967 = vadd.xlane.f32.xlu1 %v1966_v40  ;;  %v2002_v40 = vrot.slane %v6586_v3, %v6232_v61 }
 0xb11   : > { %v1952_v48 = vpop.xlane.xlu0 %1951 }
 0xb12   : > { %v1953_v52 = vrot.slane %v1952_v48, 4 }
 0xb13   : > { %v1968_v54 = vpop.xlane.xlu1 %1967 }
 0xb14   : > { %v1954_v62 = vadd.f32 %v1953_v52, %v1952_v48  ;;  %v1969_v2 = vrot.slane %v1968_v54, 4  ;;  %v4661_v48 = vadd.s32 4294967292, %v6195_v14 }
 0xb16   : > { %v1955_v16 = vrot.slane %v1954_v62, 2  ;;  %v1970_v18 = vadd.f32 %v1969_v2, %v1968_v54  ;;  %vm340_vm1 = vcmp.eq.s32.totalorder %v6240_v4, %v4661_v48 }
 0xb18   : > { %v1971_v1 = vrot.slane %v1970_v18, 2  ;;  %v1956_v39 = vadd.f32 %v1955_v16, %v1954_v62  ;;  %v6615_v16 = vsel %vm340_vm1, 1.0, %v6066_v56 }
 0xb1a   : > { %v1957_v0 = vrot.slane %v1956_v39, 1  ;;  %v1972_v11 = vadd.f32 %v1971_v1, %v1970_v18  ;;  %v4663_v18 = vadd.s32 4294967292, %v6254_v21 }
 0xb1c   : > { %v1958_v6 = vadd.f32 %v1957_v0, %v1956_v39  ;;  %v1973_v22 = vrot.slane %v1972_v11, 1  ;;  %vm342_vm5 = vcmp.eq.s32.totalorder %v6240_v4, %v4663_v18  ;;  %v349_v39 = vadd.s32 4, %v6195_v14 }
 0xb1d   : > { %v6639_v0 = vsel %vm342_vm5, 1.0, %v6066_v56 }
 0xb1e   : > { %5744 = vpush %v1958_v6  ;;  %v1974_v7 = vadd.f32 %v1973_v22, %v1972_v11  ;;  %vm352_vm6 = vcmp.eq.s32.totalorder %v6240_v4, %v349_v39  ;;  %v350_v11 = vadd.s32 4, %v6245_v10  ;;  %v351_v6 = vadd.s32 4, %v6254_v21 }
 0xb1f   : > { %v6648_v14 = vsel %vm352_vm6, 1.0, %v6066_v56 }
 0xb20   : > { %5746 = vpush %v1974_v7  ;;  %vm353_vm8 = vcmp.eq.s32.totalorder %v6240_v4, %v350_v11  ;;  %vm354_vm9 = vcmp.eq.s32.totalorder %v6240_v4, %v351_v6 }
 0xb21   : > { %v6665_v22 = vsel %vm354_vm9, 1.0, %v6066_v56 }
 0xb4f   : > { %s5745_s19 = spop %5744 }
 0xb50   : > { %s1960_s20 = smul.f32 0.0014204546, %s5745_s19 }
 0xb51   : > { %s5747_s23 = spop %5746 }
 0xb52   : > { %s1977_s26 = smul.f32 %s1960_s20, %s1960_s20  ;;  %v1980_v32 = vstv %s1960_s20 }
 0xb53   : > { %s1976_s27 = smul.f32 0.0014204546, %s5747_s23  ;;  %v1981_v35 = vsub.f32 %v1945_v26, %v1980_v32  ;;  %v1982_v37 = vsub.f32 %v1946_v34, %v1980_v32  ;;  %v1983_v8 = vsub.f32 %v1947_v20, %v1980_v32  ;;  %v4662_v20 = vadd.s32 4294967292, %v6245_v10 }
 0xb54   : > { %v6657_v10 = vsel %vm353_vm8, 1.0, %v6066_v56 }
 0xb55   : > { %s1978_s28 = ssub.f32 %s1976_s27, %s1977_s26  ;;  %vm341_vm2 = vcmp.eq.s32.totalorder %v6240_v4, %v4662_v20 }
 0xb56   : > { %v6628_v1 = vsel %vm341_vm2, 1.0, %v6066_v56 }
 0xb57   : > { %s1979_s29 = smax.f32 %s6068_s25, %s1978_s28 }
 0xb58   : > { %s1984_s30 = sadd.f32 1e-10, %s1979_s29 }
 0xb5a   : > { %v1985_v43 = vstv %s1984_s30 }
 0xb5b   : > { %5970 = vrsqrt.f32 %v1985_v43  ;;  %v4779_v43 = vld [vmem:[%s7155_s2 + $0x8] sm:$0x7] }
 0xb5c   : > { %v2192_v4 = vrot.slane %v4779_v43, %v6198_v15 }
 0xb68   : > { %v5971_v23 = vpop.eup %5970 }
 0xb69   : > { %5748 = vpush %v5971_v23 }
 0xb9a   : > { %s5749_s7 = spop %5748 }
 0xb9b   : > { %v1988_v19 = vstv %s5749_s7 }
 0xb9c   : > { %v1989_v38 = vmul.f32 %v1988_v19, %v1981_v35  ;;  %v1990_v45 = vmul.f32 %v1988_v19, %v1982_v37  ;;  %v1991_v47 = vmul.f32 %v1988_v19, %v1983_v8  ;;  %v2199_v35 = vrot.slane %v4779_v43, %v6229_v59 }
 0xb9e   : > { %v1997_v52 = vmul.f32 %v1995_v41, %v1990_v45  ;;  %v1998_v54 = vmul.f32 %v1995_v41, %v1991_v47  ;;  %v1996_v62 = vmul.f32 %v1995_v41, %v1989_v38  ;;  %v2209_v41 = vrot.slane %v4779_v43, %v6232_v61 }
 0xba0   : > { %v6607_v2 = vadd.f32 %v2002_v40, %v1998_v54  ;;  %v2004_v26 = vadd.f32 %v2002_v40, %v1997_v52  ;;  %v2003_v34 = vadd.f32 %v2002_v40, %v1996_v62  ;;  %v2219_v52 = vrot.slane %v6586_v3, %v6315_v36 }
 0xba1   : > { %v2229_v62 = vrot.slane %v6591_v5, %v6229_v59 }
 0xba2   : > { %5394 = vmatpush3.msk.msra.mxu0 %vm498_vm3, %v6607_v2  ;;  %v2200_v38 = vmul.f32 %v2199_v35, %v2003_v34  ;;  %v2201_v20 = vmul.f32 %v2199_v35, %v2004_v26 }
 0xba3   : > { %5395 = vmatprep.subr.mxu0 %v6066_v56 }
 0xba4   : > { %5396 = vmatpush3.msra.mxu0 %v2004_v26 }
 0xba5   : > { %5397 = vmatprep.subr.mxu0 %v6066_v56 }
 0xba6   : > { %5398 = vmatpush3.msra.mxu0 %v2003_v34 }
 0xba7   : > { %5400 = vmatmul.mubr.msk.f32.vlgmr.msra.gmra.mxu0 %vm557_vm7, %v6615_v16  ;;  %5408 = vmatprep.subr.mxu0 %v6066_v56 }
 0xba8   : > { %5409 = vmatpush3.msk.msra.mxu0 %vm498_vm3, %v6607_v2  ;;  %5402 = vmatprep.mubr.msk.f32.mxu0 %vm6067_vm4, %v6066_v56 }
 0xba9   : > { %5410 = vmatprep.subr.mxu0 %v6066_v56 }
 0xbaa   : > { %5411 = vmatpush3.msra.mxu0 %v2004_v26 }
 0xbab   : > { %5403 = vmatmul.mubr.msk.f32.gmra.mxu0 %vm557_vm7, %v6628_v1  ;;  %5412 = vmatprep.subr.mxu0 %v6066_v56 }
 0xbac   : > { %5413 = vmatpush3.msra.mxu0 %v2003_v34  ;;  %5405 = vmatprep.mubr.msk.f32.mxu0 %vm6067_vm4, %v6066_v56  ;;  %v2202_v34 = vmul.f32 %v2199_v35, %v6607_v2 }
 0xbaf   : > { %5406 = vmatmul.mubr.msk.f32.gmra.mxu0 %vm557_vm7, %v6639_v0 }
 0xbb0   : > { %5414 = vmatprep.mubr.msk.f32.mxu0 %vm6067_vm4, %v6066_v56 }
 0xbb3   : > { %5415 = vmatmul.mubr.msk.f32.vlgmr.msra.gmra.mxu0 %vm557_vm7, %v6648_v14 }
 0xbb4   : > { %5417 = vmatprep.mubr.msk.f32.mxu0 %vm6067_vm4, %v6066_v56 }
 0xbb7   : > { %5418 = vmatmul.mubr.msk.f32.gmra.mxu0 %vm557_vm7, %v6657_v10 }
 0xbb8   : > { %5420 = vmatprep.mubr.msk.f32.mxu0 %vm6067_vm4, %v6066_v56 }
 0xbbb   : > { %5421 = vmatmul.mubr.msk.f32.gmra.mxu0 %vm557_vm7, %v6665_v22 }
 0xc67   : > { %v2086_v21 = vpop.f32.mrf.mxu0 }
 0xc68   : > { %v2193_v8 = vmul.f32 %v2192_v4, %v2086_v21 }
 0xc69   : > { %v5401_v7 = vpop.f32.mrf.mxu0 }
 0xc6a   : > { %v2203_v47 = vadd.f32 %v2200_v38, %v2193_v8 }
 0xc6b   : > { %v2091_v23 = vpop.f32.mrf.mxu0 }
 0xc6c   : > { %v2194_v40 = vmul.f32 %v2192_v4, %v2091_v23 }
 0xc6d   : > { %v5404_v32 = vpop.f32.mrf.mxu0 }
 0xc6e   : > { %v2204_v11 = vadd.f32 %v2201_v20, %v2194_v40 }
 0xc6f   : > { %v2096_v37 = vpop.f32.mrf.mxu0 }
 0xc70   : > { %v2195_v6 = vmul.f32 %v2192_v4, %v2096_v37 }
 0xc71   : > { %v5407_v19 = vpop.f32.mrf.mxu0 }
 0xc72   : > { %v2205_v19 = vadd.f32 %v2202_v34, %v2195_v6  ;;  %v5882_v6 = vld [vmem:[#allocation2 + $0xb8] sm:$0xff]   ;;  %v5886_v34 = vld [vmem:[#allocation2 + $0xa8] sm:$0xff]  }
 0xc73   : > { %v2175_v45 = vpop.f32.mrf.mxu0  ;;  %5423 = vmatprep.subr.bf16.mxu0 %v5882_v6 }
 0xc74   : > { %v2210_v48 = vmul.f32 %v2209_v41, %v2175_v45  ;;  %5424 = vmatpush3.bf16.msra.mxu0 %v5882_v6 }
 0xc75   : > { %v5416_v54 = vpop.f32.mrf.mxu0 }
 0xc76   : > { %v2213_v18 = vadd.f32 %v2210_v48, %v2203_v47 }
 0xc77   : > { %v2180_v39 = vpop.f32.mrf.mxu0 }
 0xc78   : > { %v2220_v21 = vadd.f32 %v2219_v52, %v2213_v18  ;;  %v2211_v7 = vmul.f32 %v2209_v41, %v2180_v39 }
 0xc79   : > { %v5419_v43 = vpop.f32.mrf.mxu0 }
 0xc7a   : > { %v2230_v32 = vmul.f32 %v2229_v62, %v2220_v21  ;;  %v2214_v23 = vadd.f32 %v2211_v7, %v2204_v11  ;;  %vm2223_vm10 = vcmp.ge.f32.partialorder %v2220_v21, 0.0  ;;  %v5884_v7 = vld [vmem:[#allocation2 + $0xb0] sm:$0xff]  }
 0xc7b   : > { %v2185_v8 = vpop.f32.mrf.mxu0  ;;  %v5885_v43 = vld [vmem:[#allocation4 + $0xb0] sm:$0xff]   ;;  %5425 = vmatprep.subr.bf16.mxu0 %v5884_v7 }
 0xc7c   : > { %v2221_v38 = vadd.f32 %v2219_v52, %v2214_v23  ;;  %v2212_v45 = vmul.f32 %v2209_v41, %v2185_v8  ;;  %v6680_v54 = vsel %vm2223_vm10, %v2220_v21, %v2230_v32  ;;  %v5883_v21 = vld [vmem:[#allocation4 + $0xb8] sm:$0xff]   ;;  %v5887_v32 = vld [vmem:[#allocation4 + $0xa8] sm:$0xff]   ;;  %5426 = vmatpush3.bf16.msra.mxu0 %v5884_v7  ;;  %v5888_v23 = vld [vmem:[#allocation2 + $0xa0] sm:$0xff]  }
 0xc7d   : > { %v5422_v5 = vpop.f32.mrf.mxu0  ;;  %v2249_v41 = vmul.f32 %v6680_v54, %v6680_v54  ;;  %5443 = vmatprep.subr.bf16.mxu1 %v5883_v21  ;;  %5427 = vmatprep.subr.bf16.mxu0 %v5886_v34  ;;  %v5889_v8 = vld [vmem:[#allocation4 + $0xa0] sm:$0xff]  }
 0xc7e   : > { %v2231_v26 = vmul.f32 %v2229_v62, %v2221_v38  ;;  %v2215_v47 = vadd.f32 %v2212_v45, %v2205_v19  ;;  %vm2224_vm11 = vcmp.ge.f32.partialorder %v2221_v38, 0.0  ;;  %5444 = vmatpush3.bf16.msra.mxu1 %v5883_v21  ;;  %v5890_v19 = vld [vmem:[#allocation2 + $0x98] sm:$0xff]   ;;  %v5892_v45 = vld [vmem:[#allocation2 + $0x90] sm:$0xff]  }
 0xc7f   : > { %5445 = vmatprep.subr.bf16.mxu1 %v5885_v43  ;;  %v5893_v5 = vld [vmem:[#allocation4 + $0x90] sm:$0xff]  }
 0xc80   : > { %v2222_v40 = vadd.f32 %v2219_v52, %v2215_v47  ;;  %v6682_v4 = vsel %vm2224_vm11, %v2221_v38, %v2231_v26  ;;  %5428 = vmatpush3.bf16.msra.mxu0 %v5886_v34  ;;  %v5891_v38 = vld [vmem:[#allocation4 + $0x98] sm:$0xff]   ;;  %v5897_v34 = vld [vmem:[#allocation4 + $0x80] sm:$0xff]  }
 0xc81   : > { %v2250_v2 = vmul.f32 %v6682_v4, %v6682_v4  ;;  %v2236_v48 = vadd.f32 %v6682_v4, %v6680_v54  ;;  %5429 = vmatprep.subr.bf16.mxu0 %v5888_v23 }
 0xc82   : > { %v2232_v37 = vmul.f32 %v2229_v62, %v2222_v40  ;;  %vm2225_vm12 = vcmp.ge.f32.partialorder %v2222_v40, 0.0  ;;  %5446 = vmatpush3.bf16.msra.mxu1 %v5885_v43  ;;  %v5896_v43 = vld [vmem:[#allocation2 + $0x80] sm:$0xff]  }
 0xc83   : > { %v2252_v62 = vadd.f32 %v2250_v2, %v2249_v41  ;;  %5447 = vmatprep.subr.bf16.mxu1 %v5887_v32 }
 0xc84   : > { %v6686_v35 = vsel %vm2225_vm12, %v2222_v40, %v2232_v37  ;;  %5430 = vmatpush3.bf16.msra.mxu0 %v5888_v23 }
 0xc85   : > { %v2237_v20 = vsel %vm498_vm3, %v6686_v35, 0.0  ;;  %v2251_v52 = vmul.f32 %v6686_v35, %v6686_v35  ;;  %5431 = vmatprep.subr.bf16.mxu0 %v5890_v19 }
 0xc86   : > { %v2238_v18 = vadd.f32 %v2237_v20, %v2236_v48  ;;  %5448 = vmatpush3.bf16.msra.mxu1 %v5887_v32  ;;  %v5898_v32 = vld [vmem:[%s7154_s1 + $0xf8] sm:$0xff]  }
 0xc87   : > { %v2253_v39 = vsel %vm498_vm3, %v2251_v52, 0.0  ;;  %5449 = vmatprep.subr.bf16.mxu1 %v5889_v8 }
 0xc88   : > { %2239 = vadd.xlane.f32.xlu0 %v2238_v18  ;;  %v2254_v11 = vadd.f32 %v2253_v39, %v2252_v62  ;;  %5432 = vmatpush3.bf16.msra.mxu0 %v5890_v19  ;;  %v5894_v39 = vld [vmem:[#allocation2 + $0x88] sm:$0xff]  }
 0xc89   : > { %5433 = vmatprep.subr.bf16.mxu0 %v5892_v45 }
 0xc8a   : > { %2255 = vadd.xlane.f32.xlu1 %v2254_v11  ;;  %5450 = vmatpush3.bf16.msra.mxu1 %v5889_v8  ;;  %v5895_v11 = vld [vmem:[#allocation4 + $0x88] sm:$0xff]  }
 0xc8b   : > { %5451 = vmatprep.subr.bf16.mxu1 %v5891_v38 }
 0xc8c   : > { %5434 = vmatpush3.bf16.msra.mxu0 %v5892_v45 }
 0xc8d   : > { %5435 = vmatprep.subr.bf16.mxu0 %v5894_v39 }
 0xc8e   : > { %5452 = vmatpush3.bf16.msra.mxu1 %v5891_v38 }
 0xc8f   : > { %5453 = vmatprep.subr.bf16.mxu1 %v5893_v5 }
 0xc90   : > { %5436 = vmatpush3.bf16.msra.mxu0 %v5894_v39 }
 0xc91   : > { %5437 = vmatprep.subr.bf16.mxu0 %v5896_v43 }
 0xc92   : > { %5454 = vmatpush3.bf16.msra.mxu1 %v5893_v5 }
 0xc93   : > { %5455 = vmatprep.subr.bf16.mxu1 %v5895_v11 }
 0xc94   : > { %5438 = vmatpush3.bf16.msra.mxu0 %v5896_v43  ;;  %v5904_v43 = vld [vmem:[%s7154_s1 + $0xc8] sm:$0xff]  }
 0xc95   : > { %5463 = vmatprep.subr.bf16.mxu0 %v5898_v32 }
 0xc96   : > { %5456 = vmatpush3.bf16.msra.mxu1 %v5895_v11  ;;  %v5900_v11 = vld [vmem:[%s7154_s1 + $0xe8] sm:$0xff]  }
 0xc97   : > { %5457 = vmatprep.subr.bf16.mxu1 %v5897_v34 }
 0xc9a   : > { %5458 = vmatpush3.bf16.msra.mxu1 %v5897_v34  ;;  %v5905_v34 = vld [vmem:[%s7154_s1 + $0xc0] sm:$0xff]  }
 0xc9b   : > { %5483 = vmatprep.subr.mxu1 %v6066_v56 }
 0xd11   : > { %v2240_v26 = vpop.xlane.xlu0 %2239 }
 0xd12   : > { %v2241_v47 = vrot.slane %v2240_v26, 4 }
 0xd13   : > { %v2256_v40 = vpop.xlane.xlu1 %2255 }
 0xd14   : > { %v2242_v37 = vadd.f32 %v2241_v47, %v2240_v26  ;;  %v2257_v2 = vrot.slane %v2256_v40, 4  ;;  %v2283_v26 = vrot.slane %v6586_v3, %v6345_v9 }
 0xd16   : > { %v2243_v48 = vrot.slane %v2242_v37, 2  ;;  %v2258_v41 = vadd.f32 %v2257_v2, %v2256_v40 }
 0xd18   : > { %v2259_v20 = vrot.slane %v2258_v41, 2  ;;  %v2244_v52 = vadd.f32 %v2243_v48, %v2242_v37  ;;  %v2290_v48 = vrot.slane %v6586_v3, %v6348_v17 }
 0xd1a   : > { %v2245_v18 = vrot.slane %v2244_v52, 1  ;;  %v2260_v62 = vadd.f32 %v2259_v20, %v2258_v41 }
 0xd1c   : > { %v2246_v6 = vadd.f32 %v2245_v18, %v2244_v52  ;;  %v2261_v21 = vrot.slane %v2260_v62, 1 }
 0xd1e   : > { %5750 = vpush %v2246_v6  ;;  %v2262_v7 = vadd.f32 %v2261_v21, %v2260_v62  ;;  %v5901_v6 = vld [vmem:[%s7154_s1 + $0xe0] sm:$0xff]   ;;  %v5902_v21 = vld [vmem:[%s7154_s1 + $0xd8] sm:$0xff]  }
 0xd20   : > { %5752 = vpush %v2262_v7  ;;  %v5903_v7 = vld [vmem:[%s7154_s1 + $0xd0] sm:$0xff]  }
 0xd4f   : > { %s5751_s12 = spop %5750 }
 0xd50   : > { %s2248_s13 = smul.f32 0.0014204546, %s5751_s12 }
 0xd51   : > { %s5753_s14 = spop %5752 }
 0xd52   : > { %s2265_s24 = smul.f32 %s2248_s13, %s2248_s13  ;;  %v2268_v19 = vstv %s2248_s13 }
 0xd53   : > { %s2264_s15 = smul.f32 0.0014204546, %s5753_s14  ;;  %v2269_v38 = vsub.f32 %v6680_v54, %v2268_v19  ;;  %v2270_v45 = vsub.f32 %v6682_v4, %v2268_v19  ;;  %v2271_v5 = vsub.f32 %v6686_v35, %v2268_v19  ;;  %v5899_v35 = vld [vmem:[%s7154_s1 + $0xf0] sm:$0xff]  }
 0xd55   : > { %s2266_s16 = ssub.f32 %s2264_s15, %s2265_s24 }
 0xd57   : > { %s2267_s18 = smax.f32 %s6068_s25, %s2266_s16 }
 0xd58   : > { %s2272_s19 = sadd.f32 1e-10, %s2267_s18 }
 0xd5a   : > { %v2273_v23 = vstv %s2272_s19 }
 0xd5b   : > { %5972 = vrsqrt.f32 %v2273_v23 }
 0xd68   : > { %v5973_v8 = vpop.eup %5972 }
 0xd69   : > { %5754 = vpush %v5973_v8 }
 0xd9a   : > { %s5755_s20 = spop %5754 }
 0xd9b   : > { %v2276_v47 = vstv %s5755_s20 }
 0xd9c   : > { %v2277_v40 = vmul.f32 %v2276_v47, %v2269_v38  ;;  %v2278_v37 = vmul.f32 %v2276_v47, %v2270_v45  ;;  %v2279_v2 = vmul.f32 %v2276_v47, %v2271_v5 }
 0xd9e   : > { %v2284_v41 = vmul.f32 %v2283_v26, %v2277_v40  ;;  %v2285_v20 = vmul.f32 %v2283_v26, %v2278_v37  ;;  %v2286_v52 = vmul.f32 %v2283_v26, %v2279_v2  ;;  %v2538_v2 = vrot.slane %v6586_v3, %v6383_v50 }
 0xda0   : > { %v2293_v18 = vadd.f32 %v2290_v48, %v2286_v52  ;;  %v2291_v54 = vadd.f32 %v2290_v48, %v2284_v41  ;;  %v2292_v62 = vadd.f32 %v2290_v48, %v2285_v20 }
 0xda2   : > { %v2295_v4 = vpack.c.bf16 %v2293_v18, %v2293_v18  ;;  %v2294_v39 = vpack.c.bf16 %v2292_v62, %v2291_v54 }
 0xda4   : > { %5439 = vmatprep.mubr.bf16.mxu0 %v2294_v39  ;;  %5459 = vmatprep.mubr.bf16.mxu1 %v2294_v39 }
 0xda5   : > { %5440 = vmatmul.mubr.bf16.vlgmr.msra.gmra.mxu0 %v2295_v4  ;;  %5460 = vmatmul.mubr.bf16.vlgmr.msra.gmra.mxu1 %v2295_v4 }
 0xda6   : > { %5464 = vmatpush3.bf16.msra.mxu0 %v5898_v32  ;;  %5489 = vmatprep.mubr.msk.f32.mxu1 %vm6067_vm4, %v6066_v56  ;;  %v5990_v32 = vld [vmem:[%s7158_s5 + $0x10] sm:$0xff] }
 0xda7   : > { %5465 = vmatprep.subr.bf16.mxu0 %v5899_v35  ;;  %v6736_v23 = vrot.slane %v5990_v32, %v6552_v27 }
 0xda9   : > { %v1689_v8 = vadd.f32 %v6736_v23, %v6564_v12  ;;  %v1687_v5 = vadd.f32 %v6736_v23, %v6566_v42 }
 0xdaa   : > { %5466 = vmatpush3.bf16.msra.mxu0 %v5899_v35 }
 0xdab   : > { %5467 = vmatprep.subr.bf16.mxu0 %v5900_v11 }
 0xdae   : > { %5468 = vmatpush3.bf16.msra.mxu0 %v5900_v11 }
 0xdaf   : > { %5469 = vmatprep.subr.bf16.mxu0 %v5901_v6 }
 0xdb2   : > { %5470 = vmatpush3.bf16.msra.mxu0 %v5901_v6 }
 0xdb3   : > { %5471 = vmatprep.subr.bf16.mxu0 %v5902_v21 }
 0xdb6   : > { %5472 = vmatpush3.bf16.msra.mxu0 %v5902_v21 }
 0xdb7   : > { %5473 = vmatprep.subr.bf16.mxu0 %v5903_v7 }
 0xdba   : > { %5474 = vmatpush3.bf16.msra.mxu0 %v5903_v7 }
 0xdbb   : > { %5475 = vmatprep.subr.bf16.mxu0 %v5904_v43 }
 0xdbe   : > { %5476 = vmatpush3.bf16.msra.mxu0 %v5904_v43 }
 0xdbf   : > { %5477 = vmatprep.subr.bf16.mxu0 %v5905_v34 }
 0xdc2   : > { %5478 = vmatpush3.bf16.msra.mxu0 %v5905_v34 }
 0xe65   : > { %v5441_v19 = vpop.f32.mrf.mxu0  ;;  %v5461_v38 = vpop.f32.mrf.mxu1 }
 0xe66   : > { %v6740_v45 = vadd.f32 %v5441_v19, %v1689_v8  ;;  %v2534_v37 = vadd.f32 %v5461_v38, %v6573_v58 }
 0xe67   : > { %v2395_v26 = vpop.f32.mrf.mxu0  ;;  %v2518_v47 = vpop.f32.mrf.mxu1 }
 0xe68   : > { %v6744_v40 = vadd.f32 %v2395_v26, %v1687_v5  ;;  %v2532_v12 = vadd.f32 %v2518_v47, %v6575_v51  ;;  %v6751_v18 = vadd.f32 %v2538_v2, %v2534_v37  ;;  %v6764_v51 = vld [vmem:[%s7158_s5 + $0x30] sm:$0xff] }
 0xe69   : > { %v5442_v48 = vpop.f32.mrf.mxu0  ;;  %v5462_v41 = vpop.f32.mrf.mxu1  ;;  %v2567_v3 = vrot.slane %v6764_v51, %v6198_v15 }
 0xe6a   : > { %v6753_v54 = vadd.f32 %v2538_v2, %v2532_v12  ;;  %v2546_v58 = vpack.c.bf16 %v6751_v18, %v6751_v18 }
 0xe6b   : > { %v2521_v20 = vpop.f32.mrf.mxu1  ;;  %v6773_v4 = vpop.f32.mrf.mxu0 }
 0xe6c   : > { %v2533_v52 = vadd.f32 %v2521_v20, %v6577_v60  ;;  %v6769_v60 = vld [vmem:[%s7158_s5 + $0x38] sm:$0x3] }
 0xe6d   : > { %v2670_v35 = vrot.slane %v6769_v60, %v6198_v15 }
 0xe6e   : > { %v6755_v42 = vadd.f32 %v2538_v2, %v2533_v52 }
 0xe70   : > { %v2545_v62 = vpack.c.bf16 %v6755_v42, %v6753_v54 }
 0xe72   : > { %5479 = vmatprep.mubr.bf16.mxu0 %v2545_v62 }
 0xe73   : > { %5480 = vmatmul.mubr.bf16.vlgmr.msra.gmra.mxu0 %v2546_v58 }
 0xf33   : > { %v5481_v39 = vpop.f32.mrf.mxu0 }
 0xf34   : > { %v2659_v11 = vadd.f32 %v5481_v39, %v2567_v3 }
 0xf35   : > { %v2650_v6 = vpop.f32.mrf.mxu0 }
 0xf36   : > { %v2651_v21 = vadd.f32 %v2650_v6, %v2567_v3  ;;  %v2673_v7 = vmul.f32 %v2670_v35, %v2659_v11  ;;  %vm2666_vm13 = vcmp.ge.f32.partialorder %v2659_v11, 0.0 }
 0xf37   : > { %v5482_v43 = vpop.f32.mrf.mxu0 }
 0xf38   : > { %v2671_v34 = vmul.f32 %v2670_v35, %v2651_v21  ;;  %vm2664_vm14 = vcmp.ge.f32.partialorder %v2651_v21, 0.0  ;;  %v2676_v19 = vsel %vm2666_vm13, %v2659_v11, %v2673_v7 }
 0xf39   : > { %v2653_v32 = vpop.f32.mrf.mxu0  ;;  %v2692_v47 = vmul.f32 %v2676_v19, %v2676_v19  ;;  %v2678_v41 = vsel %vm498_vm3, %v2676_v19, 0.0 }
 0xf3a   : > { %v2654_v8 = vadd.f32 %v2653_v32, %v2567_v3  ;;  %v2674_v38 = vsel %vm2664_vm14, %v2651_v21, %v2671_v34 }
 0xf3b   : > { %v2690_v2 = vmul.f32 %v2674_v38, %v2674_v38  ;;  %v2694_v52 = vsel %vm498_vm3, %v2692_v47, 0.0 }
 0xf3c   : > { %vm2665_vm15 = vcmp.ge.f32.partialorder %v2654_v8, 0.0  ;;  %v2672_v5 = vmul.f32 %v2670_v35, %v2654_v8 }
 0xf3e   : > { %v2675_v26 = vsel %vm2665_vm15, %v2654_v8, %v2672_v5 }
 0xf3f   : > { %v2677_v37 = vadd.f32 %v2675_v26, %v2674_v38  ;;  %v2691_v48 = vmul.f32 %v2675_v26, %v2675_v26 }
 0xf41   : > { %v2679_v12 = vadd.f32 %v2678_v41, %v2677_v37  ;;  %v2693_v20 = vadd.f32 %v2691_v48, %v2690_v2 }
 0xf43   : > { %2680 = vadd.xlane.f32.xlu0 %v2679_v12  ;;  %v2695_v62 = vadd.f32 %v2694_v52, %v2693_v20  ;;  %v2724_v52 = vrot.slane %v6764_v51, %v6229_v59 }
 0xf45   : > { %2696 = vadd.xlane.f32.xlu1 %v2695_v62 }
 0xfcc   : > { %v2681_v58 = vpop.xlane.xlu0 %2680 }
 0xfcd   : > { %v2682_v3 = vrot.slane %v2681_v58, 4 }
 0xfce   : > { %v2697_v39 = vpop.xlane.xlu1 %2696 }
 0xfcf   : > { %v2683_v11 = vadd.f32 %v2682_v3, %v2681_v58  ;;  %v2698_v6 = vrot.slane %v2697_v39, 4 }
 0xfd1   : > { %v2684_v35 = vrot.slane %v2683_v11, 2  ;;  %v2699_v21 = vadd.f32 %v2698_v6, %v2697_v39 }
 0xfd3   : > { %v2700_v7 = vrot.slane %v2699_v21, 2  ;;  %v2685_v43 = vadd.f32 %v2684_v35, %v2683_v11  ;;  %v2731_v11 = vrot.slane %v6764_v51, %v6232_v61 }
 0xfd5   : > { %v2686_v34 = vrot.slane %v2685_v43, 1  ;;  %v2701_v32 = vadd.f32 %v2700_v7, %v2699_v21 }
 0xfd7   : > { %v2687_v8 = vadd.f32 %v2686_v34, %v2685_v43  ;;  %v2702_v5 = vrot.slane %v2701_v32, 1 }
 0xfd9   : > { %5756 = vpush %v2687_v8  ;;  %v2703_v37 = vadd.f32 %v2702_v5, %v2701_v32 }
 0xfdb   : > { %5758 = vpush %v2703_v37 }
0x100a   : > { %s5757_s23 = spop %5756 }
0x100b   : > { %s2689_s26 = smul.f32 0.0014204546, %s5757_s23 }
0x100c   : > { %s5759_s27 = spop %5758 }
0x100d   : > { %s2706_s28 = smul.f32 %s2689_s26, %s2689_s26  ;;  %v2709_v48 = vstv %s2689_s26 }
0x100e   : > { %s2705_s29 = smul.f32 0.0014204546, %s5759_s27  ;;  %v2710_v41 = vsub.f32 %v2674_v38, %v2709_v48  ;;  %v2711_v12 = vsub.f32 %v2675_v26, %v2709_v48  ;;  %v2712_v20 = vsub.f32 %v2676_v19, %v2709_v48 }
0x1010   : > { %s2707_s30 = ssub.f32 %s2705_s29, %s2706_s28 }
0x1012   : > { %s2708_s7 = smax.f32 %s6068_s25, %s2707_s30 }
0x1013   : > { %s2713_s8 = sadd.f32 1e-10, %s2708_s7 }
0x1015   : > { %v2714_v47 = vstv %s2713_s8 }
0x1016   : > { %5974 = vrsqrt.f32 %v2714_v47 }
0x1023   : > { %v5975_v2 = vpop.eup %5974 }
0x1024   : > { %5760 = vpush %v5975_v2 }
0x1055   : > { %s5761_s9 = spop %5760 }
0x1056   : > { %v2717_v62 = vstv %s5761_s9 }
0x1057   : > { %v2718_v58 = vmul.f32 %v2717_v62, %v2710_v41  ;;  %v2719_v3 = vmul.f32 %v2717_v62, %v2711_v12  ;;  %v2720_v39 = vmul.f32 %v2717_v62, %v2712_v20  ;;  %v2930_v41 = vrot.slane %v6764_v51, %v6315_v36 }
0x1058   : > { %v2940_v20 = vrot.slane %v6769_v60, %v6229_v59 }
0x1059   : > { %v2726_v6 = vmul.f32 %v2724_v52, %v2719_v3  ;;  %v2727_v35 = vmul.f32 %v2724_v52, %v2720_v39  ;;  %v2725_v21 = vmul.f32 %v2724_v52, %v2718_v58 }
0x105b   : > { %v2734_v7 = vadd.f32 %v2731_v11, %v2727_v35  ;;  %v2733_v43 = vadd.f32 %v2731_v11, %v2726_v6  ;;  %v2732_v19 = vadd.f32 %v2731_v11, %v2725_v21 }
0x105d   : > { %5484 = vmatpush3.msk.msra.mxu1 %vm498_vm3, %v2734_v7 }
0x105e   : > { %5485 = vmatprep.subr.mxu1 %v6066_v56 }
0x105f   : > { %5486 = vmatpush3.msra.mxu1 %v2733_v43 }
0x1060   : > { %5487 = vmatprep.subr.mxu1 %v6066_v56 }
0x1061   : > { %5488 = vmatpush3.msra.mxu1 %v2732_v19 }
0x1062   : > { %5490 = vmatmul.mubr.msk.f32.vlgmr.msra.gmra.mxu1 %vm557_vm7, %v6263_v24  ;;  %5498 = vmatprep.subr.mxu1 %v6066_v56 }
0x1063   : > { %5499 = vmatpush3.msk.msra.mxu1 %vm498_vm3, %v2734_v7  ;;  %5492 = vmatprep.mubr.msk.f32.mxu1 %vm6067_vm4, %v6066_v56 }
0x1064   : > { %5500 = vmatprep.subr.mxu1 %v6066_v56 }
0x1065   : > { %5501 = vmatpush3.msra.mxu1 %v2733_v43 }
0x1066   : > { %5493 = vmatmul.mubr.msk.f32.gmra.mxu1 %vm557_vm7, %v6283_v28  ;;  %5502 = vmatprep.subr.mxu1 %v6066_v56 }
0x1067   : > { %5503 = vmatpush3.msra.mxu1 %v2732_v19  ;;  %5495 = vmatprep.mubr.msk.f32.mxu1 %vm6067_vm4, %v6066_v56 }
0x106a   : > { %5496 = vmatmul.mubr.msk.f32.gmra.mxu1 %vm557_vm7, %v6299_v30  ;;  %v4830_v30 = vld [vmem:[%s7155_s2 + $0xc] sm:$0x7] }
0x106b   : > { %5504 = vmatprep.mubr.msk.f32.mxu1 %vm6067_vm4, %v6066_v56  ;;  %v2910_v34 = vrot.slane %v4830_v30, %v6229_v59  ;;  %v2920_v8 = vrot.slane %v4830_v30, %v6232_v61 }
0x106d   : > { %v2911_v37 = vmul.f32 %v2910_v34, %v2732_v19  ;;  %v2912_v52 = vmul.f32 %v2910_v34, %v2733_v43  ;;  %v2913_v21 = vmul.f32 %v2910_v34, %v2734_v7 }
0x106e   : > { %5505 = vmatmul.mubr.msk.f32.vlgmr.msra.gmra.mxu1 %vm557_vm7, %v6266_v25  ;;  %v2903_v25 = vrot.slane %v4830_v30, %v6198_v15 }
0x106f   : > { %5507 = vmatprep.mubr.msk.f32.mxu1 %vm6067_vm4, %v6066_v56 }
0x1072   : > { %5508 = vmatmul.mubr.msk.f32.gmra.mxu1 %vm557_vm7, %v6286_v29 }
0x1073   : > { %5510 = vmatprep.mubr.msk.f32.mxu1 %vm6067_vm4, %v6066_v56 }
0x1076   : > { %5511 = vmatmul.mubr.msk.f32.gmra.mxu1 %vm557_vm7, %v6302_v31 }
0x1122   : > { %v2806_v24 = vpop.f32.mrf.mxu1 }
0x1123   : > { %v2904_v29 = vmul.f32 %v2903_v25, %v2806_v24 }
0x1124   : > { %v5491_v28 = vpop.f32.mrf.mxu1 }
0x1125   : > { %v2914_v31 = vadd.f32 %v2911_v37, %v2904_v29 }
0x1126   : > { %v2811_v38 = vpop.f32.mrf.mxu1 }
0x1127   : > { %v2905_v2 = vmul.f32 %v2903_v25, %v2811_v38 }
0x1128   : > { %v5494_v26 = vpop.f32.mrf.mxu1 }
0x1129   : > { %v2915_v3 = vadd.f32 %v2912_v52, %v2905_v2  ;;  %v5906_v52 = vld [vmem:[#allocation2 + $0xf8] sm:$0xff]  }
0x112a   : > { %v2816_v32 = vpop.f32.mrf.mxu1  ;;  %5513 = vmatprep.subr.bf16.mxu1 %v5906_v52 }
0x112b   : > { %v2906_v39 = vmul.f32 %v2903_v25, %v2816_v32  ;;  %5514 = vmatpush3.bf16.msra.mxu1 %v5906_v52  ;;  %v5921_v52 = vld [vmem:[#allocation4 + $0xc0] sm:$0xff]  }
0x112c   : > { %v5497_v5 = vpop.f32.mrf.mxu1 }
0x112d   : > { %v2916_v30 = vadd.f32 %v2913_v21, %v2906_v39  ;;  %v5910_v39 = vld [vmem:[#allocation2 + $0xe8] sm:$0xff]   ;;  %v5914_v21 = vld [vmem:[#allocation2 + $0xd8] sm:$0xff]  }
0x112e   : > { %v2886_v47 = vpop.f32.mrf.mxu1 }
0x112f   : > { %v2921_v48 = vmul.f32 %v2920_v8, %v2886_v47 }
0x1130   : > { %v5506_v12 = vpop.f32.mrf.mxu1 }
0x1131   : > { %v2924_v62 = vadd.f32 %v2921_v48, %v2914_v31 }
0x1132   : > { %v2891_v58 = vpop.f32.mrf.mxu1 }
0x1133   : > { %v2931_v11 = vadd.f32 %v2930_v41, %v2924_v62  ;;  %v2922_v6 = vmul.f32 %v2920_v8, %v2891_v58  ;;  %v5907_v62 = vld [vmem:[#allocation4 + $0xf8] sm:$0xff]   ;;  %v5908_v58 = vld [vmem:[#allocation2 + $0xf0] sm:$0xff]  }
0x1134   : > { %v5509_v35 = vpop.f32.mrf.mxu1  ;;  %5533 = vmatprep.subr.bf16.mxu0 %v5907_v62  ;;  %5515 = vmatprep.subr.bf16.mxu1 %v5908_v58 }
0x1135   : > { %v2941_v19 = vmul.f32 %v2940_v20, %v2931_v11  ;;  %v2925_v24 = vadd.f32 %v2922_v6, %v2915_v3  ;;  %vm2934_vm0 = vcmp.ge.f32.partialorder %v2931_v11, 0.0  ;;  %v5909_v3 = vld [vmem:[#allocation4 + $0xf0] sm:$0xff]   ;;  %5534 = vmatpush3.bf16.msra.mxu0 %v5907_v62  ;;  %5516 = vmatpush3.bf16.msra.mxu1 %v5908_v58  ;;  %v5912_v6 = vld [vmem:[#allocation2 + $0xe0] sm:$0xff]   ;;  %v5922_v62 = vld [vmem:[%s7154_s1 + $0x138] sm:$0xff]  }
0x1136   : > { %v2896_v28 = vpop.f32.mrf.mxu1  ;;  %5535 = vmatprep.subr.bf16.mxu0 %v5909_v3  ;;  %5517 = vmatprep.subr.bf16.mxu1 %v5910_v39  ;;  %v5913_v35 = vld [vmem:[#allocation4 + $0xe0] sm:$0xff]  }
0x1137   : > { %v2932_v38 = vadd.f32 %v2930_v41, %v2925_v24  ;;  %v2923_v26 = vmul.f32 %v2920_v8, %v2896_v28  ;;  %v6823_v29 = vsel %vm2934_vm0, %v2931_v11, %v2941_v19  ;;  %v5911_v11 = vld [vmem:[#allocation4 + $0xe8] sm:$0xff]   ;;  %v5915_v19 = vld [vmem:[#allocation4 + $0xd8] sm:$0xff]   ;;  %v5916_v24 = vld [vmem:[#allocation2 + $0xd0] sm:$0xff]  }
0x1138   : > { %v5512_v5 = vpop.f32.mrf.mxu1  ;;  %v2960_v8 = vmul.f32 %v6823_v29, %v6823_v29  ;;  %v5917_v28 = vld [vmem:[#allocation4 + $0xd0] sm:$0xff]  }
0x1139   : > { %v2942_v60 = vmul.f32 %v2940_v20, %v2932_v38  ;;  %v2926_v43 = vadd.f32 %v2923_v26, %v2916_v30  ;;  %vm2935_vm1 = vcmp.ge.f32.partialorder %v2932_v38, 0.0  ;;  %5536 = vmatpush3.bf16.msra.mxu0 %v5909_v3  ;;  %5518 = vmatpush3.bf16.msra.mxu1 %v5910_v39 }
0x113a   : > { %5537 = vmatprep.subr.bf16.mxu0 %v5911_v11  ;;  %5519 = vmatprep.subr.bf16.mxu1 %v5912_v6 }
0x113b   : > { %v2933_v37 = vadd.f32 %v2930_v41, %v2926_v43  ;;  %v6825_v47 = vsel %vm2935_vm1, %v2932_v38, %v2942_v60 }
0x113c   : > { %v2961_v7 = vmul.f32 %v6825_v47, %v6825_v47  ;;  %v2947_v32 = vadd.f32 %v6825_v47, %v6823_v29 }
0x113d   : > { %v2943_v25 = vmul.f32 %v2940_v20, %v2933_v37  ;;  %vm2936_vm2 = vcmp.ge.f32.partialorder %v2933_v37, 0.0  ;;  %5538 = vmatpush3.bf16.msra.mxu0 %v5911_v11  ;;  %5520 = vmatpush3.bf16.msra.mxu1 %v5912_v6 }
0x113e   : > { %v2963_v41 = vadd.f32 %v2961_v7, %v2960_v8  ;;  %5539 = vmatprep.subr.bf16.mxu0 %v5913_v35  ;;  %5521 = vmatprep.subr.bf16.mxu1 %v5914_v21 }
0x113f   : > { %v6829_v34 = vsel %vm2936_vm2, %v2933_v37, %v2943_v25 }
0x1140   : > { %v2948_v31 = vsel %vm498_vm3, %v6829_v34, 0.0  ;;  %v2962_v2 = vmul.f32 %v6829_v34, %v6829_v34 }
0x1141   : > { %v2949_v48 = vadd.f32 %v2948_v31, %v2947_v32  ;;  %5540 = vmatpush3.bf16.msra.mxu0 %v5913_v35  ;;  %5522 = vmatpush3.bf16.msra.mxu1 %v5914_v21  ;;  %v5918_v31 = vld [vmem:[#allocation2 + $0xc8] sm:$0xff]   ;;  %v2994_v21 = vrot.slane %v6764_v51, %v6345_v9 }
0x1142   : > { %v2964_v12 = vsel %vm498_vm3, %v2962_v2, 0.0  ;;  %5541 = vmatprep.subr.bf16.mxu0 %v5915_v19  ;;  %5523 = vmatprep.subr.bf16.mxu1 %v5916_v24  ;;  %v5919_v2 = vld [vmem:[#allocation4 + $0xc8] sm:$0xff]  }
0x1143   : > { %2950 = vadd.xlane.f32.xlu0 %v2949_v48  ;;  %v2965_v20 = vadd.f32 %v2964_v12, %v2963_v41 }
0x1145   : > { %2966 = vadd.xlane.f32.xlu1 %v2965_v20  ;;  %5542 = vmatpush3.bf16.msra.mxu0 %v5915_v19  ;;  %v5920_v20 = vld [vmem:[#allocation2 + $0xc0] sm:$0xff]  }
0x1146   : > { %5543 = vmatprep.subr.bf16.mxu0 %v5917_v28  ;;  %5524 = vmatpush3.bf16.msra.mxu1 %v5916_v24 }
0x1147   : > { %5525 = vmatprep.subr.bf16.mxu1 %v5918_v31 }
0x1149   : > { %5544 = vmatpush3.bf16.msra.mxu0 %v5917_v28 }
0x114a   : > { %5545 = vmatprep.subr.bf16.mxu0 %v5919_v2  ;;  %5526 = vmatpush3.bf16.msra.mxu1 %v5918_v31  ;;  %v5927_v31 = vld [vmem:[%s7154_s1 + $0x110] sm:$0xff]  }
0x114b   : > { %5527 = vmatprep.subr.bf16.mxu1 %v5920_v20 }
0x114d   : > { %5546 = vmatpush3.bf16.msra.mxu0 %v5919_v2  ;;  %v5928_v2 = vld [vmem:[%s7154_s1 + $0x108] sm:$0xff]  }
0x114e   : > { %5547 = vmatprep.subr.bf16.mxu0 %v5921_v52  ;;  %5528 = vmatpush3.bf16.msra.mxu1 %v5920_v20 }
0x114f   : > { %5553 = vmatprep.subr.bf16.mxu1 %v5922_v62 }
0x1151   : > { %5548 = vmatpush3.bf16.msra.mxu0 %v5921_v52 }
0x1152   : > { %5573 = vmatprep.subr.mxu0 %v6066_v56 }
0x11cc   : > { %v2951_v30 = vpop.xlane.xlu0 %2950 }
0x11cd   : > { %v2952_v38 = vrot.slane %v2951_v30, 4 }
0x11ce   : > { %v2967_v26 = vpop.xlane.xlu1 %2966 }
0x11cf   : > { %v2953_v5 = vadd.f32 %v2952_v38, %v2951_v30  ;;  %v2968_v60 = vrot.slane %v2967_v26, 4  ;;  %v3001_v38 = vrot.slane %v6764_v51, %v6348_v17 }
0x11d1   : > { %v2954_v43 = vrot.slane %v2953_v5, 2  ;;  %v2969_v37 = vadd.f32 %v2968_v60, %v2967_v26 }
0x11d3   : > { %v2970_v25 = vrot.slane %v2969_v37, 2  ;;  %v2955_v7 = vadd.f32 %v2954_v43, %v2953_v5 }
0x11d5   : > { %v2956_v32 = vrot.slane %v2955_v7, 1  ;;  %v2971_v8 = vadd.f32 %v2970_v25, %v2969_v37 }
0x11d7   : > { %v2957_v48 = vadd.f32 %v2956_v32, %v2955_v7  ;;  %v2972_v41 = vrot.slane %v2971_v8, 1  ;;  %v5924_v7 = vld [vmem:[%s7154_s1 + $0x128] sm:$0xff]   ;;  %v5925_v32 = vld [vmem:[%s7154_s1 + $0x120] sm:$0xff]  }
0x11d9   : > { %5762 = vpush %v2957_v48  ;;  %v2973_v12 = vadd.f32 %v2972_v41, %v2971_v8  ;;  %v5926_v8 = vld [vmem:[%s7154_s1 + $0x118] sm:$0xff]   ;;  %v5929_v48 = vld [vmem:[%s7154_s1 + $0x100] sm:$0xff]  }
0x11da   : > { %v5991_v41 = vld [vmem:[%s7158_s5 + $0x20] sm:$0xff] }
0x11db   : > { %5764 = vpush %v2973_v12  ;;  %v6879_v12 = vrot.slane %v5991_v41, %v6552_v27 }
0x11dd   : > { %v2418_v20 = vadd.f32 %v6879_v12, %v6740_v45 }
0x120a   : > { %s5763_s14 = spop %5762 }
0x120b   : > { %s2959_s24 = smul.f32 0.0014204546, %s5763_s14 }
0x120c   : > { %s5765_s15 = spop %5764 }
0x120d   : > { %s2976_s16 = smul.f32 %s2959_s24, %s2959_s24  ;;  %v2979_v39 = vstv %s2959_s24 }
0x120e   : > { %s2975_s18 = smul.f32 0.0014204546, %s5765_s15  ;;  %v2980_v11 = vsub.f32 %v6823_v29, %v2979_v39  ;;  %v2981_v6 = vsub.f32 %v6825_v47, %v2979_v39  ;;  %v2982_v35 = vsub.f32 %v6829_v34, %v2979_v39  ;;  %v5923_v34 = vld [vmem:[%s7154_s1 + $0x130] sm:$0xff]  }
0x1210   : > { %s2977_s19 = ssub.f32 %s2975_s18, %s2976_s16 }
0x1212   : > { %s2978_s20 = smax.f32 %s6068_s25, %s2977_s19 }
0x1213   : > { %s2983_s23 = sadd.f32 1e-10, %s2978_s20 }
0x1215   : > { %v2984_v58 = vstv %s2983_s23 }
0x1216   : > { %5976 = vrsqrt.f32 %v2984_v58 }
0x1223   : > { %v5977_v3 = vpop.eup %5976 }
0x1224   : > { %5766 = vpush %v5977_v3  ;;  %v2416_v3 = vadd.f32 %v6879_v12, %v6744_v40 }
0x1255   : > { %s5767_s26 = spop %5766 }
0x1256   : > { %v2987_v19 = vstv %s5767_s26 }
0x1257   : > { %v2988_v24 = vmul.f32 %v2987_v19, %v2980_v11  ;;  %v2989_v28 = vmul.f32 %v2987_v19, %v2981_v6  ;;  %v2990_v30 = vmul.f32 %v2987_v19, %v2982_v35 }
0x1259   : > { %v2995_v26 = vmul.f32 %v2994_v21, %v2988_v24  ;;  %v2996_v5 = vmul.f32 %v2994_v21, %v2989_v28  ;;  %v2997_v60 = vmul.f32 %v2994_v21, %v2990_v30  ;;  %v3249_v21 = vrot.slane %v6764_v51, %v6383_v50 }
0x125b   : > { %v3004_v43 = vadd.f32 %v3001_v38, %v2997_v60  ;;  %v3002_v29 = vadd.f32 %v3001_v38, %v2995_v26  ;;  %v3003_v37 = vadd.f32 %v3001_v38, %v2996_v5 }
0x125d   : > { %v3006_v47 = vpack.c.bf16 %v3004_v43, %v3004_v43  ;;  %v3005_v25 = vpack.c.bf16 %v3003_v37, %v3002_v29 }
0x125f   : > { %5529 = vmatprep.mubr.bf16.mxu1 %v3005_v25  ;;  %5549 = vmatprep.mubr.bf16.mxu0 %v3005_v25 }
0x1260   : > { %5530 = vmatmul.mubr.bf16.vlgmr.msra.gmra.mxu1 %v3006_v47  ;;  %5550 = vmatmul.mubr.bf16.vlgmr.msra.gmra.mxu0 %v3006_v47 }
0x1261   : > { %5554 = vmatpush3.bf16.msra.mxu1 %v5922_v62  ;;  %5579 = vmatprep.mubr.msk.f32.mxu0 %vm6067_vm4, %v6066_v56 }
0x1262   : > { %5555 = vmatprep.subr.bf16.mxu1 %v5923_v34 }
0x1265   : > { %5556 = vmatpush3.bf16.msra.mxu1 %v5923_v34 }
0x1266   : > { %5557 = vmatprep.subr.bf16.mxu1 %v5924_v7 }
0x1269   : > { %5558 = vmatpush3.bf16.msra.mxu1 %v5924_v7 }
0x126a   : > { %5559 = vmatprep.subr.bf16.mxu1 %v5925_v32 }
0x126d   : > { %5560 = vmatpush3.bf16.msra.mxu1 %v5925_v32 }
0x126e   : > { %5561 = vmatprep.subr.bf16.mxu1 %v5926_v8 }
0x1271   : > { %5562 = vmatpush3.bf16.msra.mxu1 %v5926_v8 }
0x1272   : > { %5563 = vmatprep.subr.bf16.mxu1 %v5927_v31 }
0x1275   : > { %5564 = vmatpush3.bf16.msra.mxu1 %v5927_v31 }
0x1276   : > { %5565 = vmatprep.subr.bf16.mxu1 %v5928_v2 }
0x1279   : > { %5566 = vmatpush3.bf16.msra.mxu1 %v5928_v2 }
0x127a   : > { %5567 = vmatprep.subr.bf16.mxu1 %v5929_v48 }
0x127d   : > { %5568 = vmatpush3.bf16.msra.mxu1 %v5929_v48 }
0x1320   : > { %v5531_v52 = vpop.f32.mrf.mxu1  ;;  %v5551_v62 = vpop.f32.mrf.mxu0 }
0x1321   : > { %v6883_v58 = vadd.f32 %v5531_v52, %v2418_v20  ;;  %v3245_v35 = vadd.f32 %v5551_v62, %v6751_v18 }
0x1322   : > { %v3106_v39 = vpop.f32.mrf.mxu1  ;;  %v3229_v11 = vpop.f32.mrf.mxu0 }
0x1323   : > { %v6887_v6 = vadd.f32 %v3106_v39, %v2416_v3  ;;  %v3243_v45 = vadd.f32 %v3229_v11, %v6753_v54  ;;  %v6894_v38 = vadd.f32 %v3249_v21, %v3245_v35  ;;  %v6907_v54 = vld [vmem:[%s7158_s5 + $0x40] sm:$0xff] }
0x1324   : > { %v5532_v19 = vpop.f32.mrf.mxu1  ;;  %v5552_v24 = vpop.f32.mrf.mxu0  ;;  %v3278_v51 = vrot.slane %v6907_v54, %v6198_v15 }
0x1325   : > { %v6896_v26 = vadd.f32 %v3249_v21, %v3243_v45  ;;  %v3257_v18 = vpack.c.bf16 %v6894_v38, %v6894_v38 }
0x1326   : > { %v3232_v28 = vpop.f32.mrf.mxu0  ;;  %v6916_v60 = vpop.f32.mrf.mxu1 }
0x1327   : > { %v3244_v30 = vadd.f32 %v3232_v28, %v6755_v42  ;;  %v6912_v42 = vld [vmem:[%s7158_s5 + $0x48] sm:$0x3] }
0x1328   : > { %v3381_v29 = vrot.slane %v6912_v42, %v6198_v15 }
0x1329   : > { %v6898_v40 = vadd.f32 %v3249_v21, %v3244_v30 }
0x132b   : > { %v3256_v5 = vpack.c.bf16 %v6898_v40, %v6896_v26 }
0x132d   : > { %5569 = vmatprep.mubr.bf16.mxu1 %v3256_v5 }
0x132e   : > { %5570 = vmatmul.mubr.bf16.vlgmr.msra.gmra.mxu1 %v3257_v18 }
0x13ee   : > { %v5571_v43 = vpop.f32.mrf.mxu1 }
0x13ef   : > { %v3370_v37 = vadd.f32 %v5571_v43, %v3278_v51 }
0x13f0   : > { %v3361_v47 = vpop.f32.mrf.mxu1 }
0x13f1   : > { %v3362_v25 = vadd.f32 %v3361_v47, %v3278_v51  ;;  %v3384_v34 = vmul.f32 %v3381_v29, %v3370_v37  ;;  %vm3377_vm5 = vcmp.ge.f32.partialorder %v3370_v37, 0.0 }
0x13f2   : > { %v5572_v7 = vpop.f32.mrf.mxu1 }
0x13f3   : > { %v3382_v32 = vmul.f32 %v3381_v29, %v3362_v25  ;;  %vm3375_vm6 = vcmp.ge.f32.partialorder %v3362_v25, 0.0  ;;  %v3387_v2 = vsel %vm3377_vm5, %v3370_v37, %v3384_v34 }
0x13f4   : > { %v3364_v8 = vpop.f32.mrf.mxu1  ;;  %v3403_v52 = vmul.f32 %v3387_v2, %v3387_v2  ;;  %v3389_v11 = vsel %vm498_vm3, %v3387_v2, 0.0 }
0x13f5   : > { %v3365_v31 = vadd.f32 %v3364_v8, %v3278_v51  ;;  %v3385_v48 = vsel %vm3375_vm6, %v3362_v25, %v3382_v32 }
0x13f6   : > { %v3401_v3 = vmul.f32 %v3385_v48, %v3385_v48  ;;  %v3405_v19 = vsel %vm498_vm3, %v3403_v52, 0.0 }
0x13f7   : > { %vm3376_vm8 = vcmp.ge.f32.partialorder %v3365_v31, 0.0  ;;  %v3383_v41 = vmul.f32 %v3381_v29, %v3365_v31 }
0x13f9   : > { %v3386_v20 = vsel %vm3376_vm8, %v3365_v31, %v3383_v41 }
0x13fa   : > { %v3388_v62 = vadd.f32 %v3386_v20, %v3385_v48  ;;  %v3402_v39 = vmul.f32 %v3386_v20, %v3386_v20 }
0x13fc   : > { %v3390_v35 = vadd.f32 %v3389_v11, %v3388_v62  ;;  %v3404_v21 = vadd.f32 %v3402_v39, %v3401_v3  ;;  %v3435_v39 = vrot.slane %v6907_v54, %v6229_v59 }
0x13fe   : > { %3391 = vadd.xlane.f32.xlu0 %v3390_v35  ;;  %v3406_v24 = vadd.f32 %v3405_v19, %v3404_v21 }
0x1400   : > { %3407 = vadd.xlane.f32.xlu1 %v3406_v24  ;;  %v3442_v24 = vrot.slane %v6907_v54, %v6232_v61 }
0x1487   : > { %v3392_v45 = vpop.xlane.xlu0 %3391 }
0x1488   : > { %v3393_v28 = vrot.slane %v3392_v45, 4 }
0x1489   : > { %v3408_v30 = vpop.xlane.xlu1 %3407 }
0x148a   : > { %v3394_v5 = vadd.f32 %v3393_v28, %v3392_v45  ;;  %v3409_v18 = vrot.slane %v3408_v30, 4 }
0x148c   : > { %v3395_v51 = vrot.slane %v3394_v5, 2  ;;  %v3410_v43 = vadd.f32 %v3409_v18, %v3408_v30 }
0x148e   : > { %v3411_v29 = vrot.slane %v3410_v43, 2  ;;  %v3396_v37 = vadd.f32 %v3395_v51, %v3394_v5 }
0x1490   : > { %v3397_v47 = vrot.slane %v3396_v37, 1  ;;  %v3412_v25 = vadd.f32 %v3411_v29, %v3410_v43 }
0x1492   : > { %v3398_v34 = vadd.f32 %v3397_v47, %v3396_v37  ;;  %v3413_v7 = vrot.slane %v3412_v25, 1 }
0x1494   : > { %5768 = vpush %v3398_v34  ;;  %v3414_v32 = vadd.f32 %v3413_v7, %v3412_v25 }
0x1496   : > { %5770 = vpush %v3414_v32  ;;  %v3641_v32 = vrot.slane %v6907_v54, %v6315_v36 }
0x14c5   : > { %s5769_s27 = spop %5768 }
0x14c6   : > { %s3400_s28 = smul.f32 0.0014204546, %s5769_s27 }
0x14c7   : > { %s5771_s29 = spop %5770 }
0x14c8   : > { %s3417_s30 = smul.f32 %s3400_s28, %s3400_s28  ;;  %v3420_v41 = vstv %s3400_s28 }
0x14c9   : > { %s3416_s7 = smul.f32 0.0014204546, %s5771_s29  ;;  %v3421_v52 = vsub.f32 %v3385_v48, %v3420_v41  ;;  %v3422_v62 = vsub.f32 %v3386_v20, %v3420_v41  ;;  %v3423_v3 = vsub.f32 %v3387_v2, %v3420_v41 }
0x14cb   : > { %s3418_s8 = ssub.f32 %s3416_s7, %s3417_s30 }
0x14cd   : > { %s3419_s9 = smax.f32 %s6068_s25, %s3418_s8 }
0x14ce   : > { %s3424_s10 = sadd.f32 1e-10, %s3419_s9 }
0x14d0   : > { %v3425_v8 = vstv %s3424_s10 }
0x14d1   : > { %5978 = vrsqrt.f32 %v3425_v8 }
0x14de   : > { %v5979_v31 = vpop.eup %5978 }
0x14df   : > { %5772 = vpush %v5979_v31  ;;  %v3651_v31 = vrot.slane %v6912_v42, %v6229_v59 }
0x1510   : > { %s5773_s11 = spop %5772 }
0x1511   : > { %v3428_v11 = vstv %s5773_s11 }
0x1512   : > { %v3429_v35 = vmul.f32 %v3428_v11, %v3421_v52  ;;  %v3430_v21 = vmul.f32 %v3428_v11, %v3422_v62  ;;  %v3431_v19 = vmul.f32 %v3428_v11, %v3423_v3 }
0x1514   : > { %v3437_v45 = vmul.f32 %v3435_v39, %v3430_v21  ;;  %v3438_v28 = vmul.f32 %v3435_v39, %v3431_v19  ;;  %v3436_v30 = vmul.f32 %v3435_v39, %v3429_v35 }
0x1516   : > { %v3445_v5 = vadd.f32 %v3442_v24, %v3438_v28  ;;  %v3444_v18 = vadd.f32 %v3442_v24, %v3437_v45  ;;  %v3443_v2 = vadd.f32 %v3442_v24, %v3436_v30 }
0x1518   : > { %5574 = vmatpush3.msk.msra.mxu0 %vm498_vm3, %v3445_v5 }
0x1519   : > { %5575 = vmatprep.subr.mxu0 %v6066_v56 }
0x151a   : > { %5576 = vmatpush3.msra.mxu0 %v3444_v18 }
0x151b   : > { %5577 = vmatprep.subr.mxu0 %v6066_v56 }
0x151c   : > { %5578 = vmatpush3.msra.mxu0 %v3443_v2 }
0x151d   : > { %5580 = vmatmul.mubr.msk.f32.vlgmr.msra.gmra.mxu0 %vm557_vm7, %v6434_v44  ;;  %5588 = vmatprep.subr.mxu0 %v6066_v56 }
0x151e   : > { %5589 = vmatpush3.msk.msra.mxu0 %vm498_vm3, %v3445_v5  ;;  %5582 = vmatprep.mubr.msk.f32.mxu0 %vm6067_vm4, %v6066_v56 }
0x151f   : > { %5590 = vmatprep.subr.mxu0 %v6066_v56 }
0x1520   : > { %5591 = vmatpush3.msra.mxu0 %v3444_v18 }
0x1521   : > { %5583 = vmatmul.mubr.msk.f32.gmra.mxu0 %vm557_vm7, %v6447_v46  ;;  %5592 = vmatprep.subr.mxu0 %v6066_v56 }
0x1522   : > { %5593 = vmatpush3.msra.mxu0 %v3443_v2  ;;  %5585 = vmatprep.mubr.msk.f32.mxu0 %vm6067_vm4, %v6066_v56 }
0x1525   : > { %5586 = vmatmul.mubr.msk.f32.gmra.mxu0 %vm557_vm7, %v6458_v49  ;;  %v4881_v49 = vld [vmem:[%s7155_s2 + $0x10] sm:$0x7] }
0x1526   : > { %5594 = vmatprep.mubr.msk.f32.mxu0 %vm6067_vm4, %v6066_v56  ;;  %v3621_v51 = vrot.slane %v4881_v49, %v6229_v59  ;;  %v3631_v29 = vrot.slane %v4881_v49, %v6232_v61 }
0x1528   : > { %v3622_v47 = vmul.f32 %v3621_v51, %v3443_v2  ;;  %v3623_v41 = vmul.f32 %v3621_v51, %v3444_v18  ;;  %v3624_v19 = vmul.f32 %v3621_v51, %v3445_v5 }
0x1529   : > { %5595 = vmatmul.mubr.msk.f32.vlgmr.msra.gmra.mxu0 %vm557_vm7, %v6467_v53  ;;  %v3614_v53 = vrot.slane %v4881_v49, %v6198_v15 }
0x152a   : > { %5597 = vmatprep.mubr.msk.f32.mxu0 %vm6067_vm4, %v6066_v56 }
0x152d   : > { %5598 = vmatmul.mubr.msk.f32.gmra.mxu0 %vm557_vm7, %v6476_v55 }
0x152e   : > { %5600 = vmatprep.mubr.msk.f32.mxu0 %vm6067_vm4, %v6066_v56 }
0x1531   : > { %5601 = vmatmul.mubr.msk.f32.gmra.mxu0 %vm557_vm7, %v6484_v57 }
0x15dd   : > { %v3517_v44 = vpop.f32.mrf.mxu0 }
0x15de   : > { %v3615_v55 = vmul.f32 %v3614_v53, %v3517_v44 }
0x15df   : > { %v5581_v46 = vpop.f32.mrf.mxu0 }
0x15e0   : > { %v3625_v57 = vadd.f32 %v3622_v47, %v3615_v55 }
0x15e1   : > { %v3522_v48 = vpop.f32.mrf.mxu0 }
0x15e2   : > { %v3616_v34 = vmul.f32 %v3614_v53, %v3522_v48 }
0x15e3   : > { %v5584_v20 = vpop.f32.mrf.mxu0 }
0x15e4   : > { %v3626_v3 = vadd.f32 %v3623_v41, %v3616_v34  ;;  %v5934_v41 = vld [vmem:[#allocation2 + $0x128] sm:$0xff]  }
0x15e5   : > { %v3527_v43 = vpop.f32.mrf.mxu0 }
0x15e6   : > { %v3617_v39 = vmul.f32 %v3614_v53, %v3527_v43 }
0x15e7   : > { %v5587_v37 = vpop.f32.mrf.mxu0 }
0x15e8   : > { %v3627_v30 = vadd.f32 %v3624_v19, %v3617_v39  ;;  %v5938_v39 = vld [vmem:[#allocation2 + $0x118] sm:$0xff]  }
0x15e9   : > { %v3597_v25 = vpop.f32.mrf.mxu0 }
0x15ea   : > { %v3632_v7 = vmul.f32 %v3631_v29, %v3597_v25 }
0x15eb   : > { %v5596_v8 = vpop.f32.mrf.mxu0 }
0x15ec   : > { %v3635_v52 = vadd.f32 %v3632_v7, %v3625_v57  ;;  %v5930_v7 = vld [vmem:[#allocation2 + $0x138] sm:$0xff]   ;;  %v5932_v8 = vld [vmem:[#allocation2 + $0x130] sm:$0xff]  }
0x15ed   : > { %v3602_v62 = vpop.f32.mrf.mxu0  ;;  %5603 = vmatprep.subr.bf16.mxu0 %v5930_v7 }
0x15ee   : > { %v3642_v11 = vadd.f32 %v3641_v32, %v3635_v52  ;;  %v3633_v35 = vmul.f32 %v3631_v29, %v3602_v62  ;;  %5604 = vmatpush3.bf16.msra.mxu0 %v5930_v7  ;;  %v5935_v52 = vld [vmem:[#allocation4 + $0x128] sm:$0xff]   ;;  %v5936_v62 = vld [vmem:[#allocation2 + $0x120] sm:$0xff]  }
0x15ef   : > { %v5599_v21 = vpop.f32.mrf.mxu0  ;;  %5605 = vmatprep.subr.bf16.mxu0 %v5932_v8 }
0x15f0   : > { %v3652_v24 = vmul.f32 %v3651_v31, %v3642_v11  ;;  %v3636_v45 = vadd.f32 %v3633_v35, %v3626_v3  ;;  %vm3645_vm9 = vcmp.ge.f32.partialorder %v3642_v11, 0.0  ;;  %v5937_v3 = vld [vmem:[#allocation4 + $0x120] sm:$0xff]   ;;  %v5940_v35 = vld [vmem:[#allocation2 + $0x110] sm:$0xff]  }
0x15f1   : > { %v3607_v28 = vpop.f32.mrf.mxu0  ;;  %v5941_v21 = vld [vmem:[#allocation4 + $0x110] sm:$0xff]  }
0x15f2   : > { %v3643_v2 = vadd.f32 %v3641_v32, %v3636_v45  ;;  %v3634_v44 = vmul.f32 %v3631_v29, %v3607_v28  ;;  %v6966_v46 = vsel %vm3645_vm9, %v3642_v11, %v3652_v24  ;;  %5606 = vmatpush3.bf16.msra.mxu0 %v5932_v8  ;;  %v5939_v11 = vld [vmem:[#allocation4 + $0x118] sm:$0xff]  }
0x15f3   : > { %v5602_v49 = vpop.f32.mrf.mxu0  ;;  %v3671_v55 = vmul.f32 %v6966_v46, %v6966_v46  ;;  %5607 = vmatprep.subr.bf16.mxu0 %v5934_v41 }
0x15f4   : > { %v3653_v42 = vmul.f32 %v3651_v31, %v3643_v2  ;;  %v3637_v18 = vadd.f32 %v3634_v44, %v3627_v30  ;;  %vm3646_vm10 = vcmp.ge.f32.partialorder %v3643_v2, 0.0 }
0x15f6   : > { %v3644_v48 = vadd.f32 %v3641_v32, %v3637_v18  ;;  %v6968_v20 = vsel %vm3646_vm10, %v3643_v2, %v3653_v42  ;;  %v5931_v32 = vld [vmem:[#allocation4 + $0x138] sm:$0xff]   ;;  %5608 = vmatpush3.bf16.msra.mxu0 %v5934_v41  ;;  %v3705_v41 = vrot.slane %v6907_v54, %v6345_v9 }
0x15f7   : > { %v3672_v5 = vmul.f32 %v6968_v20, %v6968_v20  ;;  %v3658_v43 = vadd.f32 %v6968_v20, %v6966_v46  ;;  %5623 = vmatprep.subr.bf16.mxu1 %v5931_v32  ;;  %5609 = vmatprep.subr.bf16.mxu0 %v5936_v62 }
0x15f8   : > { %v3654_v53 = vmul.f32 %v3651_v31, %v3644_v48  ;;  %vm3647_vm11 = vcmp.ge.f32.partialorder %v3644_v48, 0.0  ;;  %v5933_v31 = vld [vmem:[#allocation4 + $0x130] sm:$0xff]   ;;  %5624 = vmatpush3.bf16.msra.mxu1 %v5931_v32 }
0x15f9   : > { %v3674_v25 = vadd.f32 %v3672_v5, %v3671_v55  ;;  %5625 = vmatprep.subr.bf16.mxu1 %v5933_v31  ;;  %v5943_v5 = vld [vmem:[#allocation4 + $0x108] sm:$0xff]  }
0x15fa   : > { %v6972_v51 = vsel %vm3647_vm11, %v3644_v48, %v3654_v53  ;;  %5610 = vmatpush3.bf16.msra.mxu0 %v5936_v62  ;;  %v5942_v53 = vld [vmem:[#allocation2 + $0x108] sm:$0xff]  }
0x15fb   : > { %v3659_v29 = vsel %vm498_vm3, %v6972_v51, 0.0  ;;  %v3673_v37 = vmul.f32 %v6972_v51, %v6972_v51  ;;  %5611 = vmatprep.subr.bf16.mxu0 %v5938_v39 }
0x15fc   : > { %v3660_v47 = vadd.f32 %v3659_v29, %v3658_v43  ;;  %5626 = vmatpush3.bf16.msra.mxu1 %v5933_v31 }
0x15fd   : > { %v3675_v57 = vsel %vm498_vm3, %v3673_v37, 0.0  ;;  %5627 = vmatprep.subr.bf16.mxu1 %v5935_v52  ;;  %v5944_v37 = vld [vmem:[#allocation2 + $0x100] sm:$0xff]  }
0x15fe   : > { %3661 = vadd.xlane.f32.xlu0 %v3660_v47  ;;  %v3676_v34 = vadd.f32 %v3675_v57, %v3674_v25  ;;  %5612 = vmatpush3.bf16.msra.mxu0 %v5938_v39  ;;  %v5945_v47 = vld [vmem:[#allocation4 + $0x100] sm:$0xff]   ;;  %v5946_v25 = vld [vmem:[%s7154_s1 + $0x178] sm:$0xff]  }
0x15ff   : > { %5613 = vmatprep.subr.bf16.mxu0 %v5940_v35 }
0x1600   : > { %3677 = vadd.xlane.f32.xlu1 %v3676_v34  ;;  %5628 = vmatpush3.bf16.msra.mxu1 %v5935_v52 }
0x1601   : > { %5629 = vmatprep.subr.bf16.mxu1 %v5937_v3 }
0x1602   : > { %5614 = vmatpush3.bf16.msra.mxu0 %v5940_v35 }
0x1603   : > { %5615 = vmatprep.subr.bf16.mxu0 %v5942_v53 }
0x1604   : > { %5630 = vmatpush3.bf16.msra.mxu1 %v5937_v3 }
0x1605   : > { %5631 = vmatprep.subr.bf16.mxu1 %v5939_v11 }
0x1606   : > { %5616 = vmatpush3.bf16.msra.mxu0 %v5942_v53 }
0x1607   : > { %5617 = vmatprep.subr.bf16.mxu0 %v5944_v37 }
0x1608   : > { %5632 = vmatpush3.bf16.msra.mxu1 %v5939_v11  ;;  %v3712_v11 = vrot.slane %v6907_v54, %v6348_v17 }
0x1609   : > { %5633 = vmatprep.subr.bf16.mxu1 %v5941_v21 }
0x160a   : > { %5618 = vmatpush3.bf16.msra.mxu0 %v5944_v37 }
0x160b   : > { %5643 = vmatprep.subr.bf16.mxu0 %v5946_v25 }
0x160c   : > { %5634 = vmatpush3.bf16.msra.mxu1 %v5941_v21 }
0x160d   : > { %5635 = vmatprep.subr.bf16.mxu1 %v5943_v5 }
0x1610   : > { %5636 = vmatpush3.bf16.msra.mxu1 %v5943_v5 }
0x1611   : > { %5637 = vmatprep.subr.bf16.mxu1 %v5945_v47 }
0x1614   : > { %5638 = vmatpush3.bf16.msra.mxu1 %v5945_v47 }
0x1615   : > { %5713 = vmatprep.subr.mxu1 %v6066_v56 }
0x1687   : > { %v3662_v19 = vpop.xlane.xlu0 %3661 }
0x1688   : > { %v3663_v24 = vrot.slane %v3662_v19, 4 }
0x1689   : > { %v3678_v45 = vpop.xlane.xlu1 %3677 }
0x168a   : > { %v3664_v28 = vadd.f32 %v3663_v24, %v3662_v19  ;;  %v3679_v30 = vrot.slane %v3678_v45, 4 }
0x168c   : > { %v3665_v2 = vrot.slane %v3664_v28, 2  ;;  %v3680_v44 = vadd.f32 %v3679_v30, %v3678_v45  ;;  %v5948_v30 = vld [vmem:[%s7154_s1 + $0x168] sm:$0xff]  }
0x168e   : > { %v3681_v49 = vrot.slane %v3680_v44, 2  ;;  %v3666_v42 = vadd.f32 %v3665_v2, %v3664_v28  ;;  %v5949_v2 = vld [vmem:[%s7154_s1 + $0x160] sm:$0xff]  }
0x1690   : > { %v3667_v18 = vrot.slane %v3666_v42, 1  ;;  %v3682_v48 = vadd.f32 %v3681_v49, %v3680_v44  ;;  %v5950_v44 = vld [vmem:[%s7154_s1 + $0x158] sm:$0xff]   ;;  %v5951_v49 = vld [vmem:[%s7154_s1 + $0x150] sm:$0xff]  }
0x1692   : > { %v3668_v43 = vadd.f32 %v3667_v18, %v3666_v42  ;;  %v3683_v55 = vrot.slane %v3682_v48, 1  ;;  %v5952_v42 = vld [vmem:[%s7154_s1 + $0x148] sm:$0xff]   ;;  %v5953_v18 = vld [vmem:[%s7154_s1 + $0x140] sm:$0xff]  }
0x1694   : > { %5774 = vpush %v3668_v43  ;;  %v3684_v29 = vadd.f32 %v3683_v55, %v3682_v48  ;;  %v5992_v48 = vld [vmem:[%s7158_s5 + $0x30] sm:$0xff] }
0x1695   : > { %v7023_v53 = vrot.slane %v5992_v48, %v6552_v27 }
0x1696   : > { %5776 = vpush %v3684_v29 }
0x1697   : > { %v3129_v5 = vadd.f32 %v7023_v53, %v6883_v58  ;;  %v3127_v37 = vadd.f32 %v7023_v53, %v6887_v6 }
0x16c5   : > { %s5775_s15 = spop %5774 }
0x16c6   : > { %s3670_s16 = smul.f32 0.0014204546, %s5775_s15 }
0x16c7   : > { %s5777_s18 = spop %5776 }
0x16c8   : > { %s3687_s19 = smul.f32 %s3670_s16, %s3670_s16  ;;  %v3690_v7 = vstv %s3670_s16 }
0x16c9   : > { %s3686_s20 = smul.f32 0.0014204546, %s5777_s18  ;;  %v3691_v32 = vsub.f32 %v6966_v46, %v3690_v7  ;;  %v3692_v8 = vsub.f32 %v6968_v20, %v3690_v7  ;;  %v3693_v31 = vsub.f32 %v6972_v51, %v3690_v7  ;;  %v5947_v51 = vld [vmem:[%s7154_s1 + $0x170] sm:$0xff]   ;;  %v3960_v7 = vrot.slane %v6907_v54, %v6383_v50 }
0x16ca   : > { %v7043_v50 = vld [vmem:[%s7158_s5 + $0x50] sm:$0xff] }
0x16cb   : > { %s3688_s23 = ssub.f32 %s3686_s20, %s3687_s19 }
0x16cd   : > { %s3689_s26 = smax.f32 %s6068_s25, %s3688_s23 }
0x16ce   : > { %s3694_s27 = sadd.f32 1e-10, %s3689_s26 }
0x16d0   : > { %v3695_v57 = vstv %s3694_s27 }
0x16d1   : > { %5980 = vrsqrt.f32 %v3695_v57 }
0x16de   : > { %v5981_v34 = vpop.eup %5980 }
0x16df   : > { %5778 = vpush %v5981_v34 }
0x1710   : > { %s5779_s28 = spop %5778 }
0x1711   : > { %v3698_v52 = vstv %s5779_s28 }
0x1712   : > { %v3699_v62 = vmul.f32 %v3698_v52, %v3691_v32  ;;  %v3700_v3 = vmul.f32 %v3698_v52, %v3692_v8  ;;  %v3701_v39 = vmul.f32 %v3698_v52, %v3693_v31 }
0x1714   : > { %v3706_v35 = vmul.f32 %v3705_v41, %v3699_v62  ;;  %v3707_v21 = vmul.f32 %v3705_v41, %v3700_v3  ;;  %v3708_v19 = vmul.f32 %v3705_v41, %v3701_v39 }
0x1716   : > { %v3715_v24 = vadd.f32 %v3712_v11, %v3708_v19  ;;  %v3713_v46 = vadd.f32 %v3712_v11, %v3706_v35  ;;  %v3714_v45 = vadd.f32 %v3712_v11, %v3707_v21 }
0x1718   : > { %v3717_v20 = vpack.c.bf16 %v3715_v24, %v3715_v24  ;;  %v3716_v28 = vpack.c.bf16 %v3714_v45, %v3713_v46 }
0x171a   : > { %5619 = vmatprep.mubr.bf16.mxu0 %v3716_v28  ;;  %5639 = vmatprep.mubr.bf16.mxu1 %v3716_v28 }
0x171b   : > { %5620 = vmatmul.mubr.bf16.vlgmr.msra.gmra.mxu0 %v3717_v20  ;;  %5640 = vmatmul.mubr.bf16.vlgmr.msra.gmra.mxu1 %v3717_v20 }
0x171c   : > { %5644 = vmatpush3.bf16.msra.mxu0 %v5946_v25  ;;  %5672 = vmatprep.mubr.msk.f32.mxu1 %vm6067_vm4, %v6066_v56 }
0x171d   : > { %5645 = vmatprep.subr.bf16.mxu0 %v5947_v51 }
0x1720   : > { %5646 = vmatpush3.bf16.msra.mxu0 %v5947_v51 }
0x1721   : > { %5647 = vmatprep.subr.bf16.mxu0 %v5948_v30 }
0x1724   : > { %5648 = vmatpush3.bf16.msra.mxu0 %v5948_v30 }
0x1725   : > { %5649 = vmatprep.subr.bf16.mxu0 %v5949_v2 }
0x1728   : > { %5650 = vmatpush3.bf16.msra.mxu0 %v5949_v2 }
0x1729   : > { %5651 = vmatprep.subr.bf16.mxu0 %v5950_v44 }
0x172c   : > { %5652 = vmatpush3.bf16.msra.mxu0 %v5950_v44 }
0x172d   : > { %5653 = vmatprep.subr.bf16.mxu0 %v5951_v49 }
0x1730   : > { %5654 = vmatpush3.bf16.msra.mxu0 %v5951_v49 }
0x1731   : > { %5655 = vmatprep.subr.bf16.mxu0 %v5952_v42 }
0x1734   : > { %5656 = vmatpush3.bf16.msra.mxu0 %v5952_v42 }
0x1735   : > { %5657 = vmatprep.subr.bf16.mxu0 %v5953_v18 }
0x1738   : > { %5658 = vmatpush3.bf16.msra.mxu0 %v5953_v18 }
0x1739   : > { %5663 = vmatprep.subr.mxu0 %v6066_v56 }
0x17db   : > { %v5621_v43 = vpop.f32.mrf.mxu0  ;;  %v5641_v55 = vpop.f32.mrf.mxu1 }
0x17dc   : > { %v7027_v29 = vadd.f32 %v5621_v43, %v3129_v5  ;;  %v3956_v34 = vadd.f32 %v5641_v55, %v6894_v38  ;;  %v7048_v38 = vld [vmem:[%s7158_s5 + $0x58] sm:$0x3] }
0x17dd   : > { %v3817_v47 = vpop.f32.mrf.mxu0  ;;  %v3940_v25 = vpop.f32.mrf.mxu1  ;;  %v4092_v11 = vrot.slane %v7048_v38, %v6198_v15 }
0x17de   : > { %v7031_v57 = vadd.f32 %v3817_v47, %v3127_v37  ;;  %v3954_v58 = vadd.f32 %v3940_v25, %v6896_v26  ;;  %v3963_v52 = vadd.f32 %v3960_v7, %v3956_v34  ;;  %v3989_v26 = vrot.slane %v7043_v50, %v6198_v15 }
0x17df   : > { %v5622_v32 = vpop.f32.mrf.mxu0  ;;  %v5642_v8 = vpop.f32.mrf.mxu1 }
0x17e0   : > { %v3961_v62 = vadd.f32 %v3960_v7, %v3954_v58  ;;  %v3968_v39 = vpack.c.bf16 %v3963_v52, %v3963_v52 }
0x17e1   : > { %v3943_v31 = vpop.f32.mrf.mxu1 }
0x17e2   : > { %v3955_v41 = vadd.f32 %v3943_v31, %v6898_v40  ;;  %v7052_v40 = vpop.f32.mrf.mxu0 }
0x17e4   : > { %v3962_v3 = vadd.f32 %v3960_v7, %v3955_v41 }
0x17e6   : > { %v3967_v6 = vpack.c.bf16 %v3962_v3, %v3961_v62 }
0x17e8   : > { %5659 = vmatprep.mubr.bf16.mxu0 %v3967_v6 }
0x17e9   : > { %5660 = vmatmul.mubr.bf16.vlgmr.msra.gmra.mxu0 %v3968_v39 }
0x17ea   : > { %5669 = vmatprep.mubr.msk.f32.mxu0 %vm6067_vm4, %v6066_v56 }
0x18a9   : > { %v5661_v54 = vpop.f32.mrf.mxu0 }
0x18aa   : > { %v4081_v35 = vadd.f32 %v5661_v54, %v3989_v26 }
0x18ab   : > { %v4072_v21 = vpop.f32.mrf.mxu0 }
0x18ac   : > { %v4073_v19 = vadd.f32 %v4072_v21, %v3989_v26  ;;  %v4095_v24 = vmul.f32 %v4092_v11, %v4081_v35  ;;  %vm4088_vm12 = vcmp.ge.f32.partialorder %v4081_v35, 0.0 }
0x18ad   : > { %v5662_v46 = vpop.f32.mrf.mxu0 }
0x18ae   : > { %v4093_v45 = vmul.f32 %v4092_v11, %v4073_v19  ;;  %vm4086_vm13 = vcmp.ge.f32.partialorder %v4073_v19, 0.0  ;;  %v4098_v51 = vsel %vm4088_vm12, %v4081_v35, %v4095_v24  ;;  %v4146_v46 = vrot.slane %v7043_v50, %v6229_v59 }
0x18af   : > { %v4075_v20 = vpop.f32.mrf.mxu0  ;;  %v4114_v49 = vmul.f32 %v4098_v51, %v4098_v51  ;;  %v4100_v5 = vsel %vm498_vm3, %v4098_v51, 0.0 }
0x18b0   : > { %v4076_v28 = vadd.f32 %v4075_v20, %v3989_v26  ;;  %v4096_v30 = vsel %vm4086_vm13, %v4073_v19, %v4093_v45 }
0x18b1   : > { %v4112_v18 = vmul.f32 %v4096_v30, %v4096_v30  ;;  %v4116_v37 = vsel %vm498_vm3, %v4114_v49, 0.0  ;;  %v4153_v49 = vrot.slane %v7043_v50, %v6232_v61 }
0x18b2   : > { %vm4087_vm14 = vcmp.ge.f32.partialorder %v4076_v28, 0.0  ;;  %v4094_v2 = vmul.f32 %v4092_v11, %v4076_v28 }
0x18b4   : > { %v4097_v44 = vsel %vm4087_vm14, %v4076_v28, %v4094_v2 }
0x18b5   : > { %v4099_v42 = vadd.f32 %v4097_v44, %v4096_v30  ;;  %v4113_v48 = vmul.f32 %v4097_v44, %v4097_v44 }
0x18b7   : > { %v4101_v43 = vadd.f32 %v4100_v5, %v4099_v42  ;;  %v4115_v55 = vadd.f32 %v4113_v48, %v4112_v18 }
0x18b9   : > { %4102 = vadd.xlane.f32.xlu0 %v4101_v43  ;;  %v4117_v47 = vadd.f32 %v4116_v37, %v4115_v55 }
0x18bb   : > { %4118 = vadd.xlane.f32.xlu1 %v4117_v47 }
0x1942   : > { %v4103_v25 = vpop.xlane.xlu0 %4102 }
0x1943   : > { %v4104_v34 = vrot.slane %v4103_v25, 4 }
0x1944   : > { %v4119_v7 = vpop.xlane.xlu1 %4118 }
0x1945   : > { %v4105_v32 = vadd.f32 %v4104_v34, %v4103_v25  ;;  %v4120_v8 = vrot.slane %v4119_v7, 4 }
0x1947   : > { %v4106_v58 = vrot.slane %v4105_v32, 2  ;;  %v4121_v31 = vadd.f32 %v4120_v8, %v4119_v7  ;;  %v4352_v8 = vrot.slane %v7043_v50, %v6315_v36 }
0x1949   : > { %v4122_v41 = vrot.slane %v4121_v31, 2  ;;  %v4107_v52 = vadd.f32 %v4106_v58, %v4105_v32 }
0x194b   : > { %v4108_v62 = vrot.slane %v4107_v52, 1  ;;  %v4123_v3 = vadd.f32 %v4122_v41, %v4121_v31 }
0x194d   : > { %v4109_v6 = vadd.f32 %v4108_v62, %v4107_v52  ;;  %v4124_v39 = vrot.slane %v4123_v3, 1 }
0x194f   : > { %5780 = vpush %v4109_v6  ;;  %v4125_v26 = vadd.f32 %v4124_v39, %v4123_v3 }
0x1951   : > { %5782 = vpush %v4125_v26 }
0x1980   : > { %s5781_s29 = spop %5780 }
0x1981   : > { %s4111_s30 = smul.f32 0.0014204546, %s5781_s29 }
0x1982   : > { %s5783_s7 = spop %5782 }
0x1983   : > { %s4128_s8 = smul.f32 %s4111_s30, %s4111_s30  ;;  %v4131_v35 = vstv %s4111_s30 }
0x1984   : > { %s4127_s9 = smul.f32 0.0014204546, %s5783_s7  ;;  %v4132_v21 = vsub.f32 %v4096_v30, %v4131_v35  ;;  %v4133_v19 = vsub.f32 %v4097_v44, %v4131_v35  ;;  %v4134_v24 = vsub.f32 %v4098_v51, %v4131_v35 }
0x1986   : > { %s4129_s10 = ssub.f32 %s4127_s9, %s4128_s8  ;;  %s281_s8 = scalar_lea.vmem %s7159_s6, %s5719_s17 }
0x1988   : > { %s4130_s11 = smax.f32 %s6068_s25, %s4129_s10 }
0x1989   : > { %s4135_s12 = sadd.f32 1e-10, %s4130_s11 }
0x198b   : > { %v4136_v54 = vstv %s4135_s12 }
0x198c   : > { %5982 = vrsqrt.f32 %v4136_v54 }
0x1999   : > { %v5983_v11 = vpop.eup %5982 }
0x199a   : > { %5784 = vpush %v5983_v11 }
0x19cb   : > { %s5785_s13 = spop %5784 }
0x19cc   : > { %v4139_v45 = vstv %s5785_s13 }
0x19cd   : > { %v4140_v20 = vmul.f32 %v4139_v45, %v4132_v21  ;;  %v4141_v28 = vmul.f32 %v4139_v45, %v4133_v19  ;;  %v4142_v2 = vmul.f32 %v4139_v45, %v4134_v24 }
0x19cf   : > { %v4148_v42 = vmul.f32 %v4146_v46, %v4141_v28  ;;  %v4149_v18 = vmul.f32 %v4146_v46, %v4142_v2  ;;  %v4147_v48 = vmul.f32 %v4146_v46, %v4140_v20 }
0x19d1   : > { %v4156_v5 = vadd.f32 %v4153_v49, %v4149_v18  ;;  %v4155_v43 = vadd.f32 %v4153_v49, %v4148_v42  ;;  %v4154_v51 = vadd.f32 %v4153_v49, %v4147_v48 }
0x19d3   : > { %5664 = vmatpush3.msk.msra.mxu0 %vm498_vm3, %v4156_v5  ;;  %5716 = vmatpush3.msk.msra.mxu1 %vm498_vm3, %v4156_v5 }
0x19d4   : > { %5665 = vmatprep.subr.mxu0 %v6066_v56  ;;  %5714 = vmatprep.subr.mxu1 %v6066_v56 }
0x19d5   : > { %5666 = vmatpush3.msra.mxu0 %v4155_v43  ;;  %5717 = vmatpush3.msra.mxu1 %v4155_v43 }
0x19d6   : > { %5667 = vmatprep.subr.mxu0 %v6066_v56  ;;  %5715 = vmatprep.subr.mxu1 %v6066_v56 }
0x19d7   : > { %5668 = vmatpush3.msra.mxu0 %v4154_v51  ;;  %5718 = vmatpush3.msra.mxu1 %v4154_v51 }
0x19d8   : > { %5670 = vmatmul.mubr.msk.f32.vlgmr.msra.gmra.mxu0 %vm557_vm7, %v6615_v16  ;;  %5673 = vmatmul.mubr.msk.f32.vlgmr.msra.gmra.mxu1 %vm557_vm7, %v6628_v1 }
0x19d9   : > { %5678 = vmatprep.subr.mxu1 %v6066_v56  ;;  %5675 = vmatprep.mubr.msk.f32.mxu1 %vm6067_vm4, %v6066_v56 }
0x19da   : > { %5679 = vmatpush3.msk.msra.mxu1 %vm498_vm3, %v4156_v5 }
0x19db   : > { %5680 = vmatprep.subr.mxu1 %v6066_v56 }
0x19dc   : > { %5681 = vmatpush3.msra.mxu1 %v4155_v43 }
0x19dd   : > { %5676 = vmatmul.mubr.msk.f32.gmra.mxu1 %vm557_vm7, %v6639_v0  ;;  %5682 = vmatprep.subr.mxu1 %v6066_v56  ;;  %v4932_v0 = vld [vmem:[%s7155_s2 + $0x14] sm:$0x7] }
0x19de   : > { %5683 = vmatpush3.msra.mxu1 %v4154_v51  ;;  %5684 = vmatprep.mubr.msk.f32.mxu1 %vm6067_vm4, %v6066_v56  ;;  %v4332_v55 = vrot.slane %v4932_v0, %v6229_v59  ;;  %v4342_v47 = vrot.slane %v4932_v0, %v6232_v61 }
0x19e0   : > { %v4333_v25 = vmul.f32 %v4332_v55, %v4154_v51  ;;  %v4334_v31 = vmul.f32 %v4332_v55, %v4155_v43  ;;  %v4335_v26 = vmul.f32 %v4332_v55, %v4156_v5  ;;  %v5958_v55 = vld [vmem:[#allocation2 + $0x158] sm:$0xff]  }
0x19e1   : > { %5685 = vmatmul.mubr.msk.f32.vlgmr.msra.gmra.mxu1 %vm557_vm7, %v6648_v14  ;;  %v4325_v14 = vrot.slane %v4932_v0, %v6198_v15  ;;  %v4362_v15 = vrot.slane %v7048_v38, %v6229_v59  ;;  %v5954_v0 = vld [vmem:[#allocation2 + $0x178] sm:$0xff]  }
0x19e2   : > { %5687 = vmatprep.mubr.msk.f32.mxu1 %vm6067_vm4, %v6066_v56  ;;  %5693 = vmatprep.subr.bf16.mxu1 %v5954_v0 }
0x19e3   : > { %5694 = vmatpush3.bf16.msra.mxu1 %v5954_v0 }
0x19e5   : > { %5688 = vmatmul.mubr.msk.f32.gmra.mxu1 %vm557_vm7, %v6657_v10 }
0x19e6   : > { %5690 = vmatprep.mubr.msk.f32.mxu1 %vm6067_vm4, %v6066_v56 }
0x19e9   : > { %5691 = vmatmul.mubr.msk.f32.gmra.mxu1 %vm557_vm7, %v6665_v22 }
0x1a98   : > { %v4228_v16 = vpop.f32.mrf.mxu0  ;;  %v4233_v1 = vpop.f32.mrf.mxu1 }
0x1a99   : > { %v4326_v10 = vmul.f32 %v4325_v14, %v4228_v16  ;;  %v4327_v7 = vmul.f32 %v4325_v14, %v4233_v1 }
0x1a9a   : > { %v5674_v30 = vpop.f32.mrf.mxu1  ;;  %v5671_v44 = vpop.f32.mrf.mxu0 }
0x1a9b   : > { %v4336_v22 = vadd.f32 %v4333_v25, %v4326_v10  ;;  %v4337_v62 = vadd.f32 %v4334_v31, %v4327_v7  ;;  %v5956_v30 = vld [vmem:[#allocation2 + $0x168] sm:$0xff]   ;;  %v5957_v44 = vld [vmem:[#allocation2 + $0x160] sm:$0xff]  }
0x1a9c   : > { %v5960_v31 = vld [vmem:[#allocation2 + $0x148] sm:$0xff]  }
0x1a9d   : > { %v4238_v37 = vpop.f32.mrf.mxu1 }
0x1a9e   : > { %v4328_v3 = vmul.f32 %v4325_v14, %v4238_v37  ;;  %v5955_v14 = vld [vmem:[#allocation2 + $0x170] sm:$0xff]  }
0x1a9f   : > { %v5677_v56 = vpop.f32.mrf.mxu1  ;;  %5695 = vmatprep.subr.bf16.mxu1 %v5955_v14  ;;  %v5959_v37 = vld [vmem:[#allocation2 + $0x150] sm:$0xff]  }
0x1aa0   : > { %v4338_v21 = vadd.f32 %v4335_v26, %v4328_v3  ;;  %5696 = vmatpush3.bf16.msra.mxu1 %v5955_v14  ;;  %v5961_v3 = vld [vmem:[#allocation2 + $0x140] sm:$0xff]  }
0x1aa1   : > { %v4308_v34 = vpop.f32.mrf.mxu1  ;;  %5697 = vmatprep.subr.bf16.mxu1 %v5956_v30 }
0x1aa2   : > { %v4343_v32 = vmul.f32 %v4342_v47, %v4308_v34 }
0x1aa3   : > { %v5686_v58 = vpop.f32.mrf.mxu1 }
0x1aa4   : > { %v4346_v41 = vadd.f32 %v4343_v32, %v4336_v22  ;;  %5698 = vmatpush3.bf16.msra.mxu1 %v5956_v30 }
0x1aa5   : > { %v4313_v52 = vpop.f32.mrf.mxu1  ;;  %5699 = vmatprep.subr.bf16.mxu1 %v5957_v44 }
0x1aa6   : > { %v4353_v6 = vadd.f32 %v4352_v8, %v4346_v41  ;;  %v4344_v61 = vmul.f32 %v4342_v47, %v4313_v52 }
0x1aa7   : > { %v5689_v39 = vpop.f32.mrf.mxu1 }
0x1aa8   : > { %v4363_v54 = vmul.f32 %v4362_v15, %v4353_v6  ;;  %v4347_v11 = vadd.f32 %v4344_v61, %v4337_v62  ;;  %vm4356_vm4 = vcmp.ge.f32.partialorder %v4353_v6, 0.0  ;;  %5700 = vmatpush3.bf16.msra.mxu1 %v5957_v44 }
0x1aa9   : > { %v4318_v35 = vpop.f32.mrf.mxu1  ;;  %5701 = vmatprep.subr.bf16.mxu1 %v5958_v55 }
0x1aaa   : > { %v4354_v19 = vadd.f32 %v4352_v8, %v4347_v11  ;;  %v4345_v36 = vmul.f32 %v4342_v47, %v4318_v35  ;;  %v7103_v24 = vsel %vm4356_vm4, %v4353_v6, %v4363_v54  ;;  %v4416_v35 = vrot.slane %v7043_v50, %v6345_v9 }
0x1aab   : > { %v5692_v46 = vpop.f32.mrf.mxu1  ;;  %v4382_v18 = vmul.f32 %v7103_v24, %v7103_v24  ;;  %v952_v9 = vadd.f32 %v6414_v13, %v6558_v33  ;;  %v4548_v33 = vrot.slane %v7043_v50, %v6552_v27 }
0x1aac   : > { %v4364_v59 = vmul.f32 %v4362_v15, %v4354_v19  ;;  %v4348_v38 = vadd.f32 %v4345_v36, %v4338_v21  ;;  %vm4357_vm7 = vcmp.ge.f32.partialorder %v4354_v19, 0.0  ;;  %5702 = vmatpush3.bf16.msra.mxu1 %v5958_v55 }
0x1aad   : > { %5703 = vmatprep.subr.bf16.mxu1 %v5959_v37 }
0x1aae   : > { %v4355_v45 = vadd.f32 %v4352_v8, %v4348_v38  ;;  %v7105_v20 = vsel %vm4357_vm7, %v4354_v19, %v4364_v59  ;;  %v4423_v59 = vrot.slane %v7043_v50, %v6348_v17 }
0x1aaf   : > { %v4383_v2 = vmul.f32 %v7105_v20, %v7105_v20  ;;  %v4369_v42 = vadd.f32 %v7105_v20, %v7103_v24 }
0x1ab0   : > { %v4365_v28 = vmul.f32 %v4362_v15, %v4355_v45  ;;  %vm4358_vm15 = vcmp.ge.f32.partialorder %v4355_v45, 0.0  ;;  %5704 = vmatpush3.bf16.msra.mxu1 %v5959_v37 }
0x1ab1   : > { %v4385_v51 = vadd.f32 %v4383_v2, %v4382_v18  ;;  %5705 = vmatprep.subr.bf16.mxu1 %v5960_v31 }
0x1ab2   : > { %v7109_v49 = vsel %vm4358_vm15, %v4355_v45, %v4365_v28 }
0x1ab3   : > { %v4370_v48 = vsel %vm498_vm3, %v7109_v49, 0.0  ;;  %v4384_v5 = vmul.f32 %v7109_v49, %v7109_v49 }
0x1ab4   : > { %v4371_v43 = vadd.f32 %v4370_v48, %v4369_v42  ;;  %5706 = vmatpush3.bf16.msra.mxu1 %v5960_v31 }
0x1ab5   : > { %v4386_v16 = vsel %vm498_vm3, %v4384_v5, 0.0  ;;  %5707 = vmatprep.subr.bf16.mxu1 %v5961_v3 }
0x1ab6   : > { %4372 = vadd.xlane.f32.xlu0 %v4371_v43  ;;  %v4387_v1 = vadd.f32 %v4386_v16, %v4385_v51  ;;  %v5993_v51 = vld [vmem:[%s7158_s5 + $0x40] sm:$0xff] }
0x1ab7   : > { %v3837_v16 = vrot.slane %v5993_v51, %v6552_v27 }
0x1ab8   : > { %4388 = vadd.xlane.f32.xlu1 %v4387_v1  ;;  %5708 = vmatpush3.bf16.msra.mxu1 %v5961_v3 }
0x1ab9   : > { %v3840_v13 = vadd.f32 %v3837_v16, %v7027_v29 }
0x1b3f   : > { %v4373_v10 = vpop.xlane.xlu0 %4372 }
0x1b40   : > { %v4374_v47 = vrot.slane %v4373_v10, 4 }
0x1b41   : > { %v4389_v56 = vpop.xlane.xlu1 %4388 }
0x1b42   : > { %v4375_v25 = vadd.f32 %v4374_v47, %v4373_v10  ;;  %v4390_v34 = vrot.slane %v4389_v56, 4 }
0x1b44   : > { %v4376_v22 = vrot.slane %v4375_v25, 2  ;;  %v4391_v7 = vadd.f32 %v4390_v34, %v4389_v56 }
0x1b46   : > { %v4377_v32 = vadd.f32 %v4376_v22, %v4375_v25  ;;  %v4392_v8 = vrot.slane %v4391_v7, 2 }
0x1b48   : > { %v4393_v58 = vadd.f32 %v4392_v8, %v4391_v7  ;;  %v4378_v15 = vrot.slane %v4377_v32, 1 }
0x1b4a   : > { %v4379_v41 = vadd.f32 %v4378_v15, %v4377_v32  ;;  %v4394_v52 = vrot.slane %v4393_v58, 1 }
0x1b4c   : > { %5786 = vpush %v4379_v41  ;;  %v4395_v62 = vadd.f32 %v4394_v52, %v4393_v58 }
0x1b4e   : > { %5788 = vpush %v4395_v62 }
0x1b7d   : > { %s5787_s15 = spop %5786 }
0x1b7e   : > { %s4381_s16 = smul.f32 0.0014204546, %s5787_s15 }
0x1b7f   : > { %s5789_s18 = spop %5788 }
0x1b80   : > { %s4398_s19 = smul.f32 %s4381_s16, %s4381_s16  ;;  %v4401_v39 = vstv %s4381_s16 }
0x1b81   : > { %s4397_s20 = smul.f32 0.0014204546, %s5789_s18  ;;  %v4402_v26 = vsub.f32 %v7103_v24, %v4401_v39  ;;  %v4403_v54 = vsub.f32 %v7105_v20, %v4401_v39  ;;  %v4404_v11 = vsub.f32 %v7109_v49, %v4401_v39  ;;  %v1681_v49 = vadd.f32 %v6595_v63, %v952_v9 }
0x1b83   : > { %s4399_s23 = ssub.f32 %s4397_s20, %s4398_s19  ;;  %v1688_v48 = vadd.f32 %v6736_v23, %v1681_v49 }
0x1b85   : > { %s4400_s26 = smax.f32 %s6068_s25, %s4399_s23  ;;  %v2410_v17 = vadd.f32 %v6773_v4, %v1688_v48 }
0x1b86   : > { %s4405_s27 = sadd.f32 1e-10, %s4400_s26 }
0x1b87   : > { %v2417_v5 = vadd.f32 %v6879_v12, %v2410_v17  ;;  %v3838_v12 = vadd.f32 %v3837_v16, %v7031_v57 }
0x1b88   : > { %v4406_v6 = vstv %s4405_s27 }
0x1b89   : > { %5984 = vrsqrt.f32 %v4406_v6  ;;  %v3121_v43 = vadd.f32 %v6916_v60, %v2417_v5 }
0x1b8b   : > { %v3128_v1 = vadd.f32 %v7023_v53, %v3121_v43 }
0x1b8d   : > { %v3832_v23 = vadd.f32 %v7052_v40, %v3128_v1 }
0x1b8f   : > { %v3839_v30 = vadd.f32 %v3837_v16, %v3832_v23 }
0x1b96   : > { %v5985_v61 = vpop.eup %5984 }
0x1b97   : > { %5790 = vpush %v5985_v61 }
0x1bc8   : > { %s5791_s28 = spop %5790 }
0x1bc9   : > { %v4409_v21 = vstv %s5791_s28 }
0x1bca   : > { %v4410_v19 = vmul.f32 %v4409_v21, %v4402_v26  ;;  %v4411_v36 = vmul.f32 %v4409_v21, %v4403_v54  ;;  %v4412_v46 = vmul.f32 %v4409_v21, %v4404_v11 }
0x1bcc   : > { %v4417_v38 = vmul.f32 %v4416_v35, %v4410_v19  ;;  %v4418_v45 = vmul.f32 %v4416_v35, %v4411_v36  ;;  %v4419_v28 = vmul.f32 %v4416_v35, %v4412_v46 }
0x1bce   : > { %v4426_v2 = vadd.f32 %v4423_v59, %v4419_v28  ;;  %v4424_v24 = vadd.f32 %v4423_v59, %v4417_v38  ;;  %v4425_v42 = vadd.f32 %v4423_v59, %v4418_v45 }
0x1bd0   : > { %v4428_v20 = vpack.c.bf16 %v4426_v2, %v4426_v2  ;;  %v4427_v18 = vpack.c.bf16 %v4425_v42, %v4424_v24 }
0x1bd2   : > { %5709 = vmatprep.mubr.bf16.mxu1 %v4427_v18 }
0x1bd3   : > { %5710 = vmatmul.mubr.bf16.vlgmr.msra.gmra.mxu1 %v4428_v20 }
0x1c93   : > { %v5711_v63 = vpop.f32.mrf.mxu1 }
0x1c94   : > { %v4544_v4 = vadd.f32 %v5711_v63, %v3840_v13 }
0x1c95   : > { %v4528_v60 = vpop.f32.mrf.mxu1 }
0x1c96   : > { %v4551_v0 = vadd.f32 %v4548_v33, %v4544_v4  ;;  %v4542_v14 = vadd.f32 %v4528_v60, %v3838_v12 }
0x1c97   : > { %v5712_v53 = vpop.f32.mrf.mxu1 }
0x1c98   : > { %4554 = vst [vmem:[%s281_s8 + $0x10] sm:$0x3f] %v4551_v0  ;;  %v4549_v29 = vadd.f32 %v4548_v33, %v4542_v14 }
0x1c99   : > { %v4531_v44 = vpop.f32.mrf.mxu1 }
0x1c9a   : > { %4552 = vst [vmem:[%s281_s8] sm:$0xff] %v4549_v29  ;;  %v4543_v27 = vadd.f32 %v4531_v44, %v3839_v30 }
0x1c9c   : > { %v4550_v50 = vadd.f32 %v4548_v33, %v4543_v27 }
0x1c9e   : > { %4553 = vst [vmem:[%s281_s8 + $0x8] sm:$0xff] %v4550_v50 }
0x1c9f PF: > { %s18_s21 = sadd.s32 1, %s6060_s21  }
0x1ca0   : > { %p15_p2 = scmp.ge.s32.totalorder %s18_s21, 4  }
0x1ca2   :  { %17 = sbr.rel (!%p15_p2) target bundleno = 2 (0x2), region = 107 }
0x1ca7   :  { %4576 = vsyncpa [#allocation3], 1 }
0x1ca8   :  { %4578 = vsyncpa [#allocation3 + $0x1], 1 }
0x1ca9   :  { %4579 = vsyncpa [#allocation5], 1 }

</bundles_post_ra>
